<compile_context>
chip_gen: v7x
topology: tpu7x:2x2x1
jax: 0.10.0
libtpu: 0.0.40
codegen_flags: <defaults>
</compile_context>

<pallas_src>
import jax
import jax.numpy as jnp
from jax.experimental import pallas as pl
from jax.experimental.pallas import tpu as pltpu


def _extra_control_kernel(x_ref, w1_ref, b1_ref, w2_ref, b2_ref, o_ref):
    # x_ref : (1, C, tp)   f32 input pixels (channels on sublanes, pixels on lanes)
    # w1_ref: (inner, C)   bf16 ff1 conv weight (squeezed)
    # b1_ref: (inner, 1)   f32 ff1 bias (column)
    # w2_ref: (C, inner)   bf16 ff2 conv weight (squeezed)
    # b2_ref: (C, 1)       f32 ff2 bias (column)
    # o_ref : (1, C, tp)   f32 output pixels
    x = x_ref[0]                                     # (C, tp) f32
    xb = x.astype(jnp.bfloat16)

    # MXU matmul #1, f32 accumulation; bias broadcasts along lanes.
    h = jnp.dot(w1_ref[...], xb,
                preferred_element_type=jnp.float32) + b1_ref[...]   # (inner, tp)
    h = h * jax.nn.sigmoid(h)                        # SiLU in f32 (EUP slot; ~free vs MXU)

    # MXU matmul #2.
    y = jnp.dot(w2_ref[...], h.astype(jnp.bfloat16),
                preferred_element_type=jnp.float32) + b2_ref[...]   # (C, tp)

    o_ref[0] = (y + x).astype(o_ref.dtype)           # residual in f32


def _pick_spatial_tile(hw, c, inner, requested, vmem_budget_bytes):
    """Choose a lane-axis (pixel) tile that fits the VMEM budget."""
    if hw <= 128:
        return hw                                    # full-extent lane block is always legal

    def vmem_est(t):
        io = 2 * 2 * c * t * 4                       # x + out tiles, double-buffered, f32
        wts = 2 * 2 * inner * c * 2                  # w1 + w2, double-buffered, bf16
        bias = 2 * 2 * (inner + c) * 4               # biases
        h = inner * t * (4 + 2)                      # f32 intermediate + bf16 copy
        return io + wts + bias + h

    tp = min(requested, hw)
    tp = max(128, (tp // 128) * 128)                 # multiple of 128 lanes
    while tp > 128 and vmem_est(tp) > vmem_budget_bytes:
        tp -= 128
    return tp


def extra_control_layer(x_nchw, w1, b1, w2, b2, *,
                        spatial_tile=1024,
                        vmem_budget_bytes=40 * 1024 * 1024):
    """Pallas implementation of ExtraControlLayer.forward (NCHW in / NCHW out).

    x_nchw: (N, C, H, W)  activations
    w1:     (inner, C)    == ff1.weight[:, :, 0, 0]
    b1:     (inner,)      == ff1.bias
    w2:     (C, inner)    == ff2.weight[:, :, 0, 0]
    b2:     (C,)          == ff2.bias
    """
    N, C, H, W = x_nchw.shape
    inner = w1.shape[0]
    assert w1.shape == (inner, C) and w2.shape == (C, inner)
    HW = H * W

    x3 = x_nchw.reshape(N, C, HW)                    # pure reshape, no transpose

    # bf16 weights for the MXU; biases stay f32 (bias/SiLU/residual run in f32).
    w1_b = w1.astype(jnp.bfloat16)
    w2_b = w2.astype(jnp.bfloat16)
    b1c = b1.reshape(inner, 1).astype(jnp.float32)
    b2c = b2.reshape(C, 1).astype(jnp.float32)

    tp = _pick_spatial_tile(HW, C, inner, spatial_tile, vmem_budget_bytes)
    # Spatial axis innermost (fastest varying): weights + biases (constant block
    # index) stay resident in VMEM across the whole grid sweep.
    grid = (N, pl.cdiv(HW, tp))                      # remainder handled by Pallas masking

    itemsize = jnp.dtype(x_nchw.dtype).itemsize
    cost = pl.CostEstimate(
        flops=4 * N * HW * C * inner,                # two matmuls
        transcendentals=N * HW * inner,              # sigmoid
        bytes_accessed=2 * N * C * HW * itemsize     # x read + y write
        + 2 * inner * C * 2                          # bf16 weights
        + (inner + C) * 4,                           # biases
    )

    out = pl.pallas_call(
        _extra_control_kernel,
        out_shape=jax.ShapeDtypeStruct((N, C, HW), x_nchw.dtype),
        grid_spec=pltpu.PrefetchScalarGridSpec(
            num_scalar_prefetch=0,
            grid=grid,
            in_specs=[
                pl.BlockSpec((1, C, tp), lambda n, s: (n, 0, s)),     # x pixels
                pl.BlockSpec((inner, C), lambda n, s: (0, 0)),        # w1 (resident)
                pl.BlockSpec((inner, 1), lambda n, s: (0, 0)),        # b1
                pl.BlockSpec((C, inner), lambda n, s: (0, 0)),        # w2 (resident)
                pl.BlockSpec((C, 1), lambda n, s: (0, 0)),            # b2
            ],
            out_specs=pl.BlockSpec((1, C, tp), lambda n, s: (n, 0, s)),
        ),
        compiler_params=pltpu.CompilerParams(
            dimension_semantics=("parallel", "parallel"),
            vmem_limit_bytes=int(vmem_budget_bytes),
        ),
        cost_estimate=cost,
    )(x3, w1_b, b1c, w2_b, b2c)

    return out.reshape(N, C, H, W)


# ------------------------- references (for checking) -------------------------

def _reference_f32(x, w1, b1, w2, b2):
    N, C, H, W = x.shape
    xm = x.reshape(N, C, H * W)
    h = jnp.einsum('ic,ncs->nis', w1, xm) + b1[None, :, None]
    h = h * jax.nn.sigmoid(h)
    y = jnp.einsum('ci,nis->ncs', w2, h) + b2[None, :, None]
    return (y + xm).reshape(N, C, H, W)


def _reference_bf16_matmul(x, w1, b1, w2, b2):
    # Mirrors the kernel's precision: bf16 matmul operands, f32 accumulation,
    # f32 bias / SiLU / residual.
    N, C, H, W = x.shape
    xm = x.reshape(N, C, H * W)
    h = jnp.einsum('ic,ncs->nis',
                   w1.astype(jnp.bfloat16), xm.astype(jnp.bfloat16),
                   preferred_element_type=jnp.float32) + b1[None, :, None]
    h = h * jax.nn.sigmoid(h)
    y = jnp.einsum('ci,nis->ncs',
                   w2.astype(jnp.bfloat16), h.astype(jnp.bfloat16),
                   preferred_element_type=jnp.float32) + b2[None, :, None]
    return (y + xm).reshape(N, C, H, W)


if __name__ == "__main__":
    # Small, MXU-friendly shapes consistent with the module (out_dim plays the
    # channel role; inner_dim = out_dim * 4 as in the module default).
    # TODO(synk): for the module default out_dim=320, consider padding channels
    # to a multiple of 128 to keep MXU/lane utilization full.
    out_dim = 128
    inner_dim = out_dim * 4
    N, H, W = 2, 16, 16

    key = jax.random.PRNGKey(0)
    kx, kw1, kb1, kw2, kb2 = jax.random.split(key, 5)

    x = jax.random.normal(kx, (N, out_dim, H, W), dtype=jnp.float32)

    scale1 = 1.0 / jnp.sqrt(out_dim)
    scale2 = 1.0 / jnp.sqrt(inner_dim)
    # Conv2d weights are (out_ch, in_ch, 1, 1); we use the squeezed matrices.
    w1 = jax.random.normal(kw1, (inner_dim, out_dim), dtype=jnp.float32) * scale1
    b1 = jax.random.normal(kb1, (inner_dim,), dtype=jnp.float32) * scale1
    w2 = jax.random.normal(kw2, (out_dim, inner_dim), dtype=jnp.float32) * scale2
    b2 = jax.random.normal(kb2, (out_dim,), dtype=jnp.float32) * scale2

    y = extra_control_layer(x, w1, b1, w2, b2, spatial_tile=1024)
    y = jax.block_until_ready(y)
    assert y.shape == x.shape

    # Tight check against a precision-matched (bf16-matmul) reference.
    y_bf = _reference_bf16_matmul(x, w1, b1, w2, b2)
    assert jnp.allclose(y, y_bf, atol=1e-3, rtol=1e-3), \
        float(jnp.max(jnp.abs(y - y_bf)))

    # Loose check against the pure-f32 module semantics.
    y_f32 = _reference_f32(x, w1, b1, w2, b2)
    assert jnp.allclose(y, y_f32, atol=5e-2, rtol=5e-2), \
        float(jnp.max(jnp.abs(y - y_f32)))

    print("KERNEL_OK")
</pallas_src>

<mosaic_0001>
module attributes {stable_mosaic.version = 11 : i64} {
  func.func @_extra_control_kernel(%arg0: i32, %arg1: i32, %arg2: memref<1x128x256xf32, #tpu.memory_space<vmem>>, %arg3: memref<512x128xbf16, #tpu.memory_space<vmem>>, %arg4: memref<512x1xf32, #tpu.memory_space<vmem>>, %arg5: memref<128x512xbf16, #tpu.memory_space<vmem>>, %arg6: memref<128x1xf32, #tpu.memory_space<vmem>>, %arg7: memref<1x128x256xf32, #tpu.memory_space<vmem>>) attributes {dimension_semantics = [#tpu.dimension_semantics<parallel>, #tpu.dimension_semantics<parallel>], iteration_bounds = array<i64: 2, 1>, scalar_prefetch = 0 : i64, scratch_operands = 0 : i64, tpu.core_type = #tpu.core_type<tc>, window_params = [{transform_indices = @transform_0, window_bounds = array<i64: 1, 128, 256>}, {pipeline_mode = #tpu.pipeline_mode<synchronous>, transform_indices = @transform_1, window_bounds = array<i64: 512, 128>}, {pipeline_mode = #tpu.pipeline_mode<synchronous>, transform_indices = @transform_2, window_bounds = array<i64: 512, 1>}, {pipeline_mode = #tpu.pipeline_mode<synchronous>, transform_indices = @transform_3, window_bounds = array<i64: 128, 512>}, {pipeline_mode = #tpu.pipeline_mode<synchronous>, transform_indices = @transform_4, window_bounds = array<i64: 128, 1>}, {transform_indices = @transform_5, window_bounds = array<i64: 1, 128, 256>}]} {
    %c0 = arith.constant 0 : index
    %c0_0 = arith.constant 0 : index
    %c0_1 = arith.constant 0 : index
    %0 = vector.load %arg2[%c0, %c0_0, %c0_1] : memref<1x128x256xf32, #tpu.memory_space<vmem>>, vector<1x128x256xf32>
    %1 = vector.shape_cast %0 : vector<1x128x256xf32> to vector<128x256xf32>
    %2 = arith.truncf %1 : vector<128x256xf32> to vector<128x256xbf16>
    %c0_2 = arith.constant 0 : index
    %c0_3 = arith.constant 0 : index
    %3 = vector.load %arg3[%c0_2, %c0_3] : memref<512x128xbf16, #tpu.memory_space<vmem>>, vector<512x128xbf16>
    %cst = arith.constant dense<0.000000e+00> : vector<512x256xf32>
    %4 = tpu.matmul %3, %2, %cst {dimension_numbers = #tpu.dot_dimension_numbers<[1], [0], [0], [1], [0, 0, 1, 1], [], []>} : vector<512x128xbf16>, vector<128x256xbf16>, vector<512x256xf32> -> vector<512x256xf32>
    %c0_4 = arith.constant 0 : index
    %c0_5 = arith.constant 0 : index
    %5 = vector.load %arg4[%c0_4, %c0_5] : memref<512x1xf32, #tpu.memory_space<vmem>>, vector<512x1xf32>
    %6 = vector.broadcast %5 : vector<512x1xf32> to vector<512x256xf32>
    %7 = arith.addf %4, %6 : vector<512x256xf32>
    %8 = arith.negf %7 : vector<512x256xf32>
    %9 = math.exp %8 : vector<512x256xf32>
    %cst_6 = arith.constant 1.000000e+00 : f32
    %10 = vector.broadcast %cst_6 : f32 to vector<512x256xf32>
    %11 = arith.addf %10, %9 : vector<512x256xf32>
    %12 = arith.divf %10, %11 : vector<512x256xf32>
    %13 = arith.mulf %7, %12 : vector<512x256xf32>
    %c0_7 = arith.constant 0 : index
    %c0_8 = arith.constant 0 : index
    %14 = vector.load %arg5[%c0_7, %c0_8] : memref<128x512xbf16, #tpu.memory_space<vmem>>, vector<128x512xbf16>
    %15 = arith.truncf %13 : vector<512x256xf32> to vector<512x256xbf16>
    %cst_9 = arith.constant dense<0.000000e+00> : vector<128x256xf32>
    %16 = tpu.matmul %14, %15, %cst_9 {dimension_numbers = #tpu.dot_dimension_numbers<[1], [0], [0], [1], [0, 0, 1, 1], [], []>} : vector<128x512xbf16>, vector<512x256xbf16>, vector<128x256xf32> -> vector<128x256xf32>
    %c0_10 = arith.constant 0 : index
    %c0_11 = arith.constant 0 : index
    %17 = vector.load %arg6[%c0_10, %c0_11] : memref<128x1xf32, #tpu.memory_space<vmem>>, vector<128x1xf32>
    %18 = vector.broadcast %17 : vector<128x1xf32> to vector<128x256xf32>
    %19 = arith.addf %16, %18 : vector<128x256xf32>
    %20 = arith.addf %19, %1 : vector<128x256xf32>
    %c0_12 = arith.constant 0 : index
    %c0_13 = arith.constant 0 : index
    %c0_14 = arith.constant 0 : index
    %21 = vector.load %arg7[%c0_12, %c0_13, %c0_14] : memref<1x128x256xf32, #tpu.memory_space<vmem>>, vector<1x128x256xf32>
    %22 = vector.shape_cast %21 : vector<1x128x256xf32> to vector<128x256xf32>
    %23 = vector.shape_cast %20 : vector<128x256xf32> to vector<1x128x256xf32>
    tpu.vector_store %arg7[%c0_12, %c0_13, %c0_14], %23 {strides = array<i32>} : memref<1x128x256xf32, #tpu.memory_space<vmem>>, vector<1x128x256xf32>,
    return
  }
  func.func @transform_0(%arg0: i32, %arg1: i32) -> (i32, i32, i32) {
    %c0_i32 = arith.constant 0 : i32
    %c0_i32_0 = arith.constant 0 : i32
    return %arg0, %c0_i32, %arg1 : i32, i32, i32
  }
  func.func @transform_1(%arg0: i32, %arg1: i32) -> (i32, i32) {
    %c0_i32 = arith.constant 0 : i32
    %c0_i32_0 = arith.constant 0 : i32
    %c0_i32_1 = arith.constant 0 : i32
    return %c0_i32, %c0_i32_0 : i32, i32
  }
  func.func @transform_2(%arg0: i32, %arg1: i32) -> (i32, i32) {
    %c0_i32 = arith.constant 0 : i32
    %c0_i32_0 = arith.constant 0 : i32
    %c0_i32_1 = arith.constant 0 : i32
    return %c0_i32, %c0_i32_0 : i32, i32
  }
  func.func @transform_3(%arg0: i32, %arg1: i32) -> (i32, i32) {
    %c0_i32 = arith.constant 0 : i32
    %c0_i32_0 = arith.constant 0 : i32
    %c0_i32_1 = arith.constant 0 : i32
    return %c0_i32, %c0_i32_0 : i32, i32
  }
  func.func @transform_4(%arg0: i32, %arg1: i32) -> (i32, i32) {
    %c0_i32 = arith.constant 0 : i32
    %c0_i32_0 = arith.constant 0 : i32
    %c0_i32_1 = arith.constant 0 : i32
    return %c0_i32, %c0_i32_0 : i32, i32
  }
  func.func @transform_5(%arg0: i32, %arg1: i32) -> (i32, i32, i32) {
    %c0_i32 = arith.constant 0 : i32
    %c0_i32_0 = arith.constant 0 : i32
    return %arg0, %c0_i32, %arg1 : i32, i32, i32
  }
}

</mosaic_0001>

<bundles_post_ra>
// kernel: tpu_custom_call.1
= control target key start
LH: loop header
LB: loop body
LE: loop exit
PB: predicated region body
PF: predicated region fallthrough
CT: control target
= control target key end

     0   :  { %10 = vsyncpa [#allocation3], 0  ;;  %s5944_s0 = inlined_call_operand.vmem [shape: f32[2,128,256], index: 0, kind: input, shape index: {}]   ;;  %s5945_s1 = inlined_call_operand.hbm [shape: bf16[512,128], index: 1, kind: input, shape index: {}]   ;;  %s5946_s2 = inlined_call_operand.vmem [shape: f32[512,1], index: 2, kind: input, shape index: {}]   ;;  %s5947_s3 = inlined_call_operand.hbm [shape: bf16[128,512], index: 3, kind: input, shape index: {}]   ;;  %s5948_s4 = inlined_call_operand.vmem [shape: f32[128,1], index: 4, kind: input, shape index: {}]   ;;  %s5949_s5 = inlined_call_operand.hbm [shape: f32[2,128,256], index: 5, kind: output, shape index: {}]  }
   0x1   :  { %11 = vsyncpa [#allocation6], 0 }
   0x2   :  { %12 = vsyncpa [#allocation4], 0 }
   0x3   :  { %14 = vsyncpa [#allocation4 + $0x1], 0  ;;  %s4165_s18 = smov 0   ;;  %s4167_s19 = smov 0  }
   0x4   :  { %s4169_s20 = smov 0   ;;  %s4171_s21 = smov 0  }
   0x5   :  { %s4173_s22 = smov 0   ;;  %s4175_s23 = smov 0  }
   0x6 LB: > { %s2981_s24 = sadd.s32 4294967295, %s4123_s23   ;;  %s2982_s25 = sadd.s32 4294967294, %s4123_s23   ;;  %s4123_s23 = sphi %s4175_s23, %s20_s23   ;;  %s4119_s22 = sphi %s4173_s22, %s6226_s22   ;;  %s4115_s21 = sphi %s4171_s21, %s6225_s21   ;;  %s4111_s20 = sphi %s4169_s20, %s6224_s20   ;;  %s4107_s19 = sphi %s4167_s19, %s6223_s19   ;;  %s4103_s18 = sphi %s4165_s18, %s6222_s18  }
   0x7   : > { %s32_s26 = sadd.s32 1, %s4119_s22  ;;  %s153_s27 = sadd.s32 1, %s4111_s20 }
   0x8   : > { %p34_p0 = scmp.ge.s32.totalorder %s32_s26, 2  ;;  %p163_p1 = scmp.ne.s32.totalorder %s4111_s20, %s4107_s19 }
   0x9   : > { %p164_p2 = scmp.eq.s32.totalorder %s2981_s24, 1  ;;  %p169_p3 = scmp.ne.s32.totalorder %s4107_s19, %s4103_s18 }
   0xa   : > { %s6228_s26 = smov (%p34_p0, %s32_s26), 0  ;;  %p170_p5 = scmp.eq.s32.totalorder %s2982_s25, 1 }
   0xb   : > { %6021 = sst [smem:[#allocation11_spill]] %s6228_s26  ;;  %p4205_p4 = por %p164_p2, %p163_p1 }
   0xc   : > { %s148_s29 = ssub.s32 %s4119_s22, %s6228_s26  ;;  %p2983_p6 = scmp.ge.s32.totalorder %s4123_s23, 1 }
   0xd   : > { %s6022_s28 = scalar_select %p4205_p4, 1, 0 }
   0xe   : > { %p151_p7 = scmp.eq.s32.totalorder %s148_s29, 0  ;;  %p4212_p8 = por %p170_p5, %p169_p3 }
   0xf   : > { %p177_p9 = scmp.lt.s32.totalorder %s4123_s23, 3  ;;  %p4224_p11 = scmp.eq.s32.totalorder %s2981_s24, 0 }
  0x10   : > { %s6023_s30 = scalar_select %p4212_p8, 1, 0 }
  0x11   : > { %s4218_s6 = scalar_select %p151_p7, %s4111_s20, %s153_s27  }
  0x12   : > { %p4220_p10 = pnand %p2983_p6, %p177_p9  ;;  %s4125_s9 = smov [#allocation2]  }
  0x13   : > { %s6025_s8 = scalar_select %p4224_p11, 1, 0 }
  0x14   : > { %s6024_s7 = scalar_select %p4220_p10, 1, 0 }
  0x15   : > { %p3282_p12 = pneg %p4220_p10  ;;  %s189_s10 = sshll.u32 %s4125_s9, 4  ;;  %s190_s10 = int_to_ptr.vmem [resolvable:$true] %s189_s10 }
  0x16   : > { %s4126_s12 = smov [#allocation5]   ;;  %s3981_s16 = scalar_lea.hbm %s5945_s1, 4096 }
  0x17   : > { %p4232_p13 = pnand %p4224_p11, %p3282_p12  ;;  %s205_s13 = sshll.u32 %s4126_s12, 4  ;;  %s4236_s13 = int_to_ptr.vmem [resolvable:$true] %s205_s13 }
  0x18   : > { %p3982_p0 = scmp.ne.s32.totalorder %s5945_s1, %s3981_s16  ;;  %p3988_p5 = scmp.lt.u32.totalorder %s3981_s16, %s5945_s1 }
  0x19   : > { %p3983_p1 = pneg %p4232_p13 }
  0x1b   : > { %p3984_p2 = pnand %p3983_p1, %p3982_p0 }
  0x1d   : > { %p3985_p3 = pneg %p3984_p2 }
  0x1f   : > { %p3990_p6 = pnand %p3988_p5, %p3985_p3 }
  0x21   : > { %3993 = shalt.err (!%p3990_p6)
}
  0x22   : > { %s3994_s29 = scalar_lea.vmem %s190_s10, 4096  ;;  %p4002_p8 = scmp.lt.s32.totalorder %s190_s10, %s190_s10 }
  0x23   : > { %p3995_p7 = scmp.ne.s32.totalorder %s190_s10, %s3994_s29  ;;  %p4003_p4 = scmp.lt.s32.totalorder %s3994_s29, %s3994_s29 }
  0x25   : > { %p3997_p9 = pnand %p3995_p7, %p3983_p1  ;;  %p4004_p11 = por %p4003_p4, %p4002_p8 }
  0x27   : > { %p3998_p12 = pneg %p3997_p9 }
  0x29   : > { %p4005_p10 = pnand %p4004_p11, %p3998_p12 }
  0x2b   : > { %4008 = shalt.err (!%p4005_p10)
}
  0x2c   : > { %s4127_s9 = smov 64   ;;  %s4128_s12 = smov 4  }
  0x2d   : > { %3285 = dma.hbm_to_vmem [thread:$0]  (!%p4232_p13), %s5945_s1, 4096, %s190_s10, [#allocation3], %s4127_s9, %s4127_s9, %s4128_s12  }
  0x2e   : > { %s4009_s24 = scalar_lea.hbm %s5947_s3, 4096 }
  0x2f   : > { %p4010_p0 = scmp.ne.s32.totalorder %s5947_s3, %s4009_s24  ;;  %p4016_p10 = scmp.lt.u32.totalorder %s4009_s24, %s5947_s3 }
  0x31   : > { %p4012_p4 = pnand %p4010_p0, %p3983_p1 }
  0x33   : > { %p4013_p8 = pneg %p4012_p4 }
  0x35   : > { %p4018_p11 = pnand %p4016_p10, %p4013_p8 }
  0x37   : > { %4021 = shalt.err (!%p4018_p11)
}
  0x38   : > { %s4022_s10 = scalar_lea.vmem %s4236_s13, 4096  ;;  %p4030_p6 = scmp.lt.s32.totalorder %s4236_s13, %s4236_s13 }
  0x39   : > { %p4023_p2 = scmp.ne.s32.totalorder %s4236_s13, %s4022_s10  ;;  %p4031_p7 = scmp.lt.s32.totalorder %s4022_s10, %s4022_s10 }
  0x3b   : > { %p4025_p3 = pnand %p4023_p2, %p3983_p1  ;;  %p4032_p9 = por %p4031_p7, %p4030_p6 }
  0x3d   : > { %p4026_p5 = pneg %p4025_p3 }
  0x3f   : > { %p4033_p12 = pnand %p4032_p9, %p4026_p5 }
  0x41   : > { %4036 = shalt.err (!%p4033_p12)
}
  0x42   : > { %s4129_s26 = smov 256   ;;  %s4130_s9 = smov 16  }
  0x43   : > { %3288 = dma.hbm_to_vmem [thread:$0]  (!%p4232_p13), %s5947_s3, 4096, %s4236_s13, [#allocation6], %s4129_s26, %s4129_s26, %s4130_s9  }
  0x44   : > { %p6027_p0 = scmp.ne.s32.totalorder %s6024_s7, 0 }
  0x46   : > { %237 = sbr.rel (%p6027_p0) target bundleno = 941 (0x3ad), region = 40 }
  0x4d   : > { %p6028_p1 = scmp.ne.s32.totalorder %s6025_s8, 0 }
  0x4f   : > { %4090 = dma.done.wait (%p6028_p1), [#allocation3], 4096  }
  0x50   : > { %4092 = vsyncadd (%p6028_p1), [#allocation3], 4294963200 }
  0x51   : > { %4094 = dma.done.wait (%p6028_p1), [#allocation6], 4096  }
  0x52   : > { %4096 = vsyncadd (%p6028_p1), [#allocation6], 4294963200  ;;  %p274_p4 = scmp.lt.s32.totalorder %s4115_s21, 1  ;;  %v4131_v0 = vmov 0   ;;  %v397_v33 = vld [vmem:[%s5946_s2] sm:$0xff]  ;;  %v399_v38 = vld [vmem:[%s5946_s2 + $0x10] sm:$0xff] }
  0x53   : > { %1005 = vmatprep.mubr.bf16.mxu0 %v4131_v0  ;;  %1245 = vmatprep.mubr.bf16.mxu1 %v4131_v0  ;;  %v398_v40 = vld [vmem:[%s5946_s2 + $0x8] sm:$0xff]  ;;  %v400_v41 = vld [vmem:[%s5946_s2 + $0x18] sm:$0xff]  ;;  %v401_v48 = vld [vmem:[%s5946_s2 + $0x20] sm:$0xff]  ;;  %s270_s14 = sand.u32 1, %s4107_s19   ;;  %s3191_s13 = sshll.u32 %s4115_s21, 12 }
  0x54   : > { %s275_s7 = scalar_select %p274_p4, %s4115_s21, 1  ;;  %3355 = vset.pattern.permute.xlu0 %v4131_v0  ;;  %3356 = vset.pattern.permute.xlu1 %v4131_v0  ;;  %v402_v49 = vld [vmem:[%s5946_s2 + $0x28] sm:$0xff]  ;;  %v403_v54 = vld [vmem:[%s5946_s2 + $0x30] sm:$0xff]  ;;  %v404_v55 = vld [vmem:[%s5946_s2 + $0x38] sm:$0xff] }
  0x55   : > { %463 = vperm.xlu0 %3355, %v397_v33   ;;  %473 = vperm.xlu1 %3356, %v399_v38   ;;  %v3357_v57 = vld [vmem:[#allocation2] sm:$0xff]   ;;  %v406_v60 = vld [vmem:[%s5946_s2 + $0x48] sm:$0xff]  ;;  %v407_v61 = vld [vmem:[%s5946_s2 + $0x50] sm:$0xff]  ;;  %s5888_s24 = scalar_lea.hbm %s5949_s5, %s3191_s13  ;;  %s5898_s21 = scalar_lea.sflag [#allocation4], %s270_s14 }
  0x56   : > { %s3190_s11 = sshll.u32 %s275_s7, 8  ;;  %v3358_v58 = vld [vmem:[#allocation2 + $0xc0] sm:$0xff]   ;;  %v408_v62 = vld [vmem:[%s5946_s2 + $0x58] sm:$0xff]  ;;  %v3359_v63 = vld [vmem:[#allocation2 + $0x8] sm:$0xff]   ;;  %s2990_s7 = sshll.u32 %s270_s14, 8 }
  0x57   : > { %s4304_s16 = scalar_lea.vmem %s5944_s0, %s3190_s11  ;;  %v405_v59 = vld [vmem:[%s5946_s2 + $0x40] sm:$0xff]  ;;  %v430_v33 = vld [vmem:[%s5946_s2 + $0x108] sm:$0xff]  ;;  %s5823_s11 = scalar_lea.vmem [#allocation7], %s2990_s7 }
  0x58   : > { %v286_v1 = vld [vmem:[%s4304_s16 + $0x8] sm:$0xff]  ;;  %v288_v2 = vld [vmem:[%s4304_s16 + $0x18] sm:$0xff]  ;;  %v285_v3 = vld [vmem:[%s4304_s16] sm:$0xff]  ;;  %s2880_s15 = sshll.u32 %s5823_s11, 4  ;;  %p6219_p8 = scmp.ne.s32.totalorder %s6022_s28, 0  ;;  %s5890_s15 = int_to_ptr.vmem [resolvable:$true] %s2880_s15 }
  0x59   : > { %v318_v4 = vpack.c.bf16 %v288_v2, %v286_v1  ;;  %v287_v5 = vld [vmem:[%s4304_s16 + $0x10] sm:$0xff]  ;;  %v290_v6 = vld [vmem:[%s4304_s16 + $0x28] sm:$0xff]  ;;  %v292_v7 = vld [vmem:[%s4304_s16 + $0x38] sm:$0xff]  ;;  %468 = vperm.xlu0 %3355, %v398_v40   ;;  %478 = vperm.xlu1 %3356, %v400_v41   ;;  %s4037_s25 = scalar_lea.vmem %s5890_s15, 4096  ;;  %s4132_s27 = smov [#allocation7]  }
  0x5a   : > { %v317_v8 = vpack.c.bf16 %v287_v5, %v285_v3  ;;  %v320_v9 = vpack.c.bf16 %v292_v7, %v290_v6  ;;  %v289_v10 = vld [vmem:[%s4304_s16 + $0x20] sm:$0xff]  ;;  %v291_v11 = vld [vmem:[%s4304_s16 + $0x30] sm:$0xff]  ;;  %v294_v12 = vld [vmem:[%s4304_s16 + $0x48] sm:$0xff]  ;;  %p4038_p13 = scmp.ne.s32.totalorder %s5890_s15, %s4037_s25  ;;  %s4041_s29 = sshll.u32 %s4132_s27, 4  ;;  %s4042_s29 = int_to_ptr.vmem [resolvable:$false] %s4041_s29 }
  0x5b   : > { %973 = vmatprep.subr.bf16.mxu0 %v318_v4  ;;  %3192 = vmatprep.subr.bf16.mxu1 %v318_v4  ;;  %v296_v13 = vld [vmem:[%s4304_s16 + $0x58] sm:$0xff]  ;;  %v319_v14 = vpack.c.bf16 %v291_v11, %v289_v10  ;;  %v293_v16 = vld [vmem:[%s4304_s16 + $0x40] sm:$0xff]  ;;  %v295_v17 = vld [vmem:[%s4304_s16 + $0x50] sm:$0xff]  ;;  %s4043_s10 = scalar_lea.vmem %s4042_s29, 8192  ;;  %p4044_p2 = scmp.lt.s32.totalorder %s5890_s15, %s4042_s29 }
  0x5c   : > { %974 = vmatpush1.bf16.msra.mxu0 %v317_v8  ;;  %3200 = vmatpush1.bf16.msra.mxu1 %v317_v8  ;;  %v322_v15 = vpack.c.bf16 %v296_v13, %v294_v12  ;;  %v298_v18 = vld [vmem:[%s4304_s16 + $0x68] sm:$0xff]  ;;  %v300_v19 = vld [vmem:[%s4304_s16 + $0x78] sm:$0xff]  ;;  %v321_v20 = vpack.c.bf16 %v295_v17, %v293_v16  ;;  %v297_v22 = vld [vmem:[%s4304_s16 + $0x60] sm:$0xff]  ;;  %p4039_p10 = pnand %p4038_p13, %p6219_p8  ;;  %p4045_p3 = scmp.lt.s32.totalorder %s4043_s10, %s4037_s25 }
  0x5d   : > { %975 = vmatprep.subr.bf16.mxu0 %v320_v9  ;;  %3193 = vmatprep.subr.bf16.mxu1 %v320_v9  ;;  %v324_v21 = vpack.c.bf16 %v300_v19, %v298_v18  ;;  %v299_v23 = vld [vmem:[%s4304_s16 + $0x70] sm:$0xff]  ;;  %v302_v24 = vld [vmem:[%s4304_s16 + $0x88] sm:$0xff]  ;;  %v304_v25 = vld [vmem:[%s4304_s16 + $0x98] sm:$0xff] }
  0x5e   : > { %v301_v26 = vld [vmem:[%s4304_s16 + $0x80] sm:$0xff]  ;;  %v323_v27 = vpack.c.bf16 %v299_v23, %v297_v22  ;;  %v303_v28 = vld [vmem:[%s4304_s16 + $0x90] sm:$0xff]  ;;  %v326_v29 = vpack.c.bf16 %v304_v25, %v302_v24  ;;  %v306_v30 = vld [vmem:[%s4304_s16 + $0xa8] sm:$0xff]  ;;  %483 = vperm.xlu0 %3355, %v401_v48   ;;  %488 = vperm.xlu1 %3356, %v402_v49   ;;  %p4040_p11 = pneg %p4039_p10  ;;  %p4046_p5 = por %p4045_p3, %p4044_p2 }
  0x5f   : > { %v308_v31 = vld [vmem:[%s4304_s16 + $0xb8] sm:$0xff]  ;;  %v305_v32 = vld [vmem:[%s4304_s16 + $0xa0] sm:$0xff]  ;;  %v325_v34 = vpack.c.bf16 %v303_v28, %v301_v26  ;;  %v307_v35 = vld [vmem:[%s4304_s16 + $0xb0] sm:$0xff] }
  0x60   : > { %976 = vmatpush1.bf16.msra.mxu0 %v319_v14  ;;  %3201 = vmatpush1.bf16.msra.mxu1 %v319_v14  ;;  %v328_v36 = vpack.c.bf16 %v308_v31, %v306_v30  ;;  %v310_v37 = vld [vmem:[%s4304_s16 + $0xc8] sm:$0xff]  ;;  %v312_v39 = vld [vmem:[%s4304_s16 + $0xd8] sm:$0xff]  ;;  %v327_v42 = vpack.c.bf16 %v307_v35, %v305_v32  ;;  %v309_v43 = vld [vmem:[%s4304_s16 + $0xc0] sm:$0xff]  ;;  %p4047_p6 = pnand %p4046_p5, %p4040_p11 }
  0x61   : > { %977 = vmatprep.subr.bf16.mxu0 %v322_v15  ;;  %3194 = vmatprep.subr.bf16.mxu1 %v322_v15  ;;  %v330_v44 = vpack.c.bf16 %v312_v39, %v310_v37  ;;  %v311_v45 = vld [vmem:[%s4304_s16 + $0xd0] sm:$0xff]  ;;  %v314_v46 = vld [vmem:[%s4304_s16 + $0xe8] sm:$0xff]  ;;  %v316_v47 = vld [vmem:[%s4304_s16 + $0xf8] sm:$0xff] }
  0x62   : > { %v329_v50 = vpack.c.bf16 %v311_v45, %v309_v43  ;;  %v332_v51 = vpack.c.bf16 %v316_v47, %v314_v46  ;;  %v313_v52 = vld [vmem:[%s4304_s16 + $0xe0] sm:$0xff]  ;;  %v315_v53 = vld [vmem:[%s4304_s16 + $0xf0] sm:$0xff]  ;;  %493 = vperm.xlu0 %3355, %v403_v54   ;;  %498 = vperm.xlu1 %3356, %v404_v55   ;;  %v3360_v1 = vld [vmem:[#allocation2 + $0xc8] sm:$0xff]  }
  0x63   : > { %v331_v56 = vpack.c.bf16 %v315_v53, %v313_v52  ;;  %v409_v2 = vld [vmem:[%s5946_s2 + $0x60] sm:$0xff]  ;;  %v410_v3 = vld [vmem:[%s5946_s2 + $0x68] sm:$0xff]  ;;  %v411_v4 = vld [vmem:[%s5946_s2 + $0x70] sm:$0xff] }
  0x64   : > { %978 = vmatpush1.bf16.msra.mxu0 %v321_v20  ;;  %3202 = vmatpush1.bf16.msra.mxu1 %v321_v20  ;;  %v412_v5 = vld [vmem:[%s5946_s2 + $0x78] sm:$0xff]  ;;  %v3361_v6 = vld [vmem:[#allocation2 + $0x10] sm:$0xff]   ;;  %v413_v8 = vld [vmem:[%s5946_s2 + $0x80] sm:$0xff] }
  0x65   : > { %979 = vmatprep.subr.bf16.mxu0 %v324_v21  ;;  %3195 = vmatprep.subr.bf16.mxu1 %v324_v21  ;;  %v3362_v7 = vld [vmem:[#allocation2 + $0xd0] sm:$0xff]   ;;  %v414_v9 = vld [vmem:[%s5946_s2 + $0x88] sm:$0xff]  ;;  %v416_v11 = vld [vmem:[%s5946_s2 + $0x98] sm:$0xff] }
  0x66   : > { %503 = vperm.xlu0 %3355, %v405_v59   ;;  %508 = vperm.xlu1 %3356, %v406_v60   ;;  %v415_v10 = vld [vmem:[%s5946_s2 + $0x90] sm:$0xff]  ;;  %v3363_v12 = vld [vmem:[#allocation2 + $0x18] sm:$0xff]   ;;  %v417_v14 = vld [vmem:[%s5946_s2 + $0xa0] sm:$0xff] }
  0x67   : > { %v3364_v13 = vld [vmem:[#allocation2 + $0xd8] sm:$0xff]   ;;  %v418_v15 = vld [vmem:[%s5946_s2 + $0xa8] sm:$0xff]  ;;  %v419_v16 = vld [vmem:[%s5946_s2 + $0xb0] sm:$0xff] }
  0x68   : > { %980 = vmatpush1.bf16.msra.mxu0 %v323_v27  ;;  %3203 = vmatpush1.bf16.msra.mxu1 %v323_v27  ;;  %v420_v17 = vld [vmem:[%s5946_s2 + $0xb8] sm:$0xff]  ;;  %v3365_v18 = vld [vmem:[#allocation2 + $0x20] sm:$0xff]   ;;  %v422_v21 = vld [vmem:[%s5946_s2 + $0xc8] sm:$0xff] }
  0x69   : > { %981 = vmatprep.subr.bf16.mxu0 %v326_v29  ;;  %3196 = vmatprep.subr.bf16.mxu1 %v326_v29  ;;  %v3366_v19 = vld [vmem:[#allocation2 + $0xe0] sm:$0xff]   ;;  %v423_v22 = vld [vmem:[%s5946_s2 + $0xd0] sm:$0xff]  ;;  %v424_v23 = vld [vmem:[%s5946_s2 + $0xd8] sm:$0xff] }
  0x6a   : > { %513 = vperm.xlu0 %3355, %v407_v61   ;;  %518 = vperm.xlu1 %3356, %v408_v62   ;;  %v421_v20 = vld [vmem:[%s5946_s2 + $0xc0] sm:$0xff]  ;;  %v3367_v24 = vld [vmem:[#allocation2 + $0x28] sm:$0xff]   ;;  %v427_v28 = vld [vmem:[%s5946_s2 + $0xf0] sm:$0xff] }
  0x6b   : > { %v3368_v25 = vld [vmem:[#allocation2 + $0xe8] sm:$0xff]   ;;  %v425_v26 = vld [vmem:[%s5946_s2 + $0xe0] sm:$0xff]  ;;  %v428_v29 = vld [vmem:[%s5946_s2 + $0xf8] sm:$0xff] }
  0x6c   : > { %982 = vmatpush1.bf16.msra.mxu0 %v325_v34  ;;  %3204 = vmatpush1.bf16.msra.mxu1 %v325_v34  ;;  %v426_v27 = vld [vmem:[%s5946_s2 + $0xe8] sm:$0xff]  ;;  %v3369_v30 = vld [vmem:[#allocation2 + $0x30] sm:$0xff]   ;;  %v429_v32 = vld [vmem:[%s5946_s2 + $0x100] sm:$0xff] }
  0x6d   : > { %983 = vmatprep.subr.bf16.mxu0 %v328_v36  ;;  %3197 = vmatprep.subr.bf16.mxu1 %v328_v36  ;;  %v3370_v31 = vld [vmem:[#allocation2 + $0xf0] sm:$0xff]   ;;  %v432_v35 = vld [vmem:[%s5946_s2 + $0x118] sm:$0xff]  ;;  %v433_v38 = vld [vmem:[%s5946_s2 + $0x120] sm:$0xff] }
  0x6e   : > { %523 = vperm.xlu0 %3355, %v409_v2   ;;  %528 = vperm.xlu1 %3356, %v410_v3   ;;  %v431_v34 = vld [vmem:[%s5946_s2 + $0x110] sm:$0xff]  ;;  %v3371_v36 = vld [vmem:[#allocation2 + $0x38] sm:$0xff]   ;;  %v434_v39 = vld [vmem:[%s5946_s2 + $0x128] sm:$0xff] }
  0x6f   : > { %v3372_v37 = vld [vmem:[#allocation2 + $0xf8] sm:$0xff]   ;;  %v435_v40 = vld [vmem:[%s5946_s2 + $0x130] sm:$0xff]  ;;  %v437_v43 = vld [vmem:[%s5946_s2 + $0x140] sm:$0xff] }
  0x70   : > { %984 = vmatpush1.bf16.msra.mxu0 %v327_v42  ;;  %3205 = vmatpush1.bf16.msra.mxu1 %v327_v42  ;;  %v436_v41 = vld [vmem:[%s5946_s2 + $0x138] sm:$0xff]  ;;  %v3373_v42 = vld [vmem:[#allocation2 + $0x40] sm:$0xff]   ;;  %v439_v45 = vld [vmem:[%s5946_s2 + $0x150] sm:$0xff] }
  0x71   : > { %985 = vmatprep.subr.bf16.mxu0 %v330_v44  ;;  %3198 = vmatprep.subr.bf16.mxu1 %v330_v44  ;;  %v438_v44 = vld [vmem:[%s5946_s2 + $0x148] sm:$0xff]  ;;  %v440_v46 = vld [vmem:[%s5946_s2 + $0x158] sm:$0xff]  ;;  %v441_v48 = vld [vmem:[%s5946_s2 + $0x160] sm:$0xff] }
  0x72   : > { %533 = vperm.xlu0 %3355, %v411_v4   ;;  %538 = vperm.xlu1 %3356, %v412_v5   ;;  %v3374_v47 = vld [vmem:[#allocation2 + $0x48] sm:$0xff]   ;;  %v3375_v52 = vld [vmem:[#allocation2 + $0x50] sm:$0xff]   ;;  %v445_v53 = vld [vmem:[%s5946_s2 + $0x180] sm:$0xff] }
  0x73   : > { %v442_v49 = vld [vmem:[%s5946_s2 + $0x168] sm:$0xff]  ;;  %v447_v55 = vld [vmem:[%s5946_s2 + $0x190] sm:$0xff]  ;;  %v452_v61 = vld [vmem:[%s5946_s2 + $0x1b8] sm:$0xff] }
  0x74   : > { %986 = vmatpush1.bf16.msra.mxu0 %v329_v50  ;;  %3206 = vmatpush1.bf16.msra.mxu1 %v329_v50  ;;  %v443_v50 = vld [vmem:[%s5946_s2 + $0x170] sm:$0xff]  ;;  %v446_v54 = vld [vmem:[%s5946_s2 + $0x188] sm:$0xff]  ;;  %v3377_v62 = vld [vmem:[#allocation2 + $0x60] sm:$0xff]  }
  0x75   : > { %987 = vmatprep.subr.bf16.mxu0 %v332_v51  ;;  %3199 = vmatprep.subr.bf16.mxu1 %v332_v51  ;;  %v444_v51 = vld [vmem:[%s5946_s2 + $0x178] sm:$0xff]  ;;  %v450_v59 = vld [vmem:[%s5946_s2 + $0x1a8] sm:$0xff]  ;;  %v451_v60 = vld [vmem:[%s5946_s2 + $0x1b0] sm:$0xff] }
  0x76   : > { %543 = vperm.xlu0 %3355, %v413_v8   ;;  %548 = vperm.xlu1 %3356, %v414_v9   ;;  %v455_v2 = vld [vmem:[%s5946_s2 + $0x1d0] sm:$0xff]  ;;  %v456_v3 = vld [vmem:[%s5946_s2 + $0x1d8] sm:$0xff]  ;;  %v3378_v4 = vld [vmem:[#allocation2 + $0x68] sm:$0xff]  }
  0x77   : > { %v457_v5 = vld [vmem:[%s5946_s2 + $0x1e0] sm:$0xff]  ;;  %v460_v8 = vld [vmem:[%s5946_s2 + $0x1f8] sm:$0xff]  ;;  %v3379_v9 = vld [vmem:[#allocation2 + $0x70] sm:$0xff]  }
  0x78   : > { %988 = vmatpush1.bf16.msra.mxu0 %v331_v56  ;;  %3207 = vmatpush1.bf16.msra.mxu1 %v331_v56  ;;  %v448_v56 = vld [vmem:[%s5946_s2 + $0x198] sm:$0xff] }
  0x7a   : > { %553 = vperm.xlu0 %3355, %v415_v10   ;;  %558 = vperm.xlu1 %3356, %v416_v11   ;;  %v2318_v10 = vld [vmem:[%s5948_s4] sm:$0xff]  ;;  %v2319_v11 = vld [vmem:[%s5948_s4 + $0x8] sm:$0xff] }
  0x7b   : > { %1006 = vmatmul.mubr.bf16.vlgmr.msra.gmra.mrb[0].mxu0 %v3357_v57  ;;  %1246 = vmatmul.mubr.bf16.vlgmr.msra.gmra.mrb[0].mxu1 %v3358_v58  ;;  %v3376_v57 = vld [vmem:[#allocation2 + $0x58] sm:$0xff]   ;;  %v449_v58 = vld [vmem:[%s5946_s2 + $0x1a0] sm:$0xff] }
  0x7c   : > { %1015 = vmatprep.mubr.bf16.mxu0 %v4131_v0  ;;  %1255 = vmatprep.mubr.bf16.mxu1 %v4131_v0 }
  0x7e   : > { %563 = vperm.xlu0 %3355, %v417_v14   ;;  %568 = vperm.xlu1 %3356, %v418_v15   ;;  %v2320_v14 = vld [vmem:[%s5948_s4 + $0x10] sm:$0xff]  ;;  %v2321_v15 = vld [vmem:[%s5948_s4 + $0x18] sm:$0xff] }
  0x82   : > { %573 = vperm.xlu0 %3355, %v419_v16   ;;  %578 = vperm.xlu1 %3356, %v420_v17  }
  0x83   : > { %1016 = vmatmul.mubr.bf16.gmra.mrb[4].mxu0 %v3359_v63  ;;  %1256 = vmatmul.mubr.bf16.gmra.mrb[4].mxu1 %v3360_v1  ;;  %v453_v63 = vld [vmem:[%s5946_s2 + $0x1c0] sm:$0xff]  ;;  %v454_v1 = vld [vmem:[%s5946_s2 + $0x1c8] sm:$0xff] }
  0x84   : > { %1025 = vmatprep.mubr.bf16.mxu0 %v4131_v0  ;;  %1265 = vmatprep.mubr.bf16.mxu1 %v4131_v0 }
  0x86   : > { %583 = vperm.xlu0 %3355, %v421_v20   ;;  %588 = vperm.xlu1 %3356, %v422_v21   ;;  %v2323_v20 = vld [vmem:[%s5948_s4 + $0x28] sm:$0xff] }
  0x8a   : > { %593 = vperm.xlu0 %3355, %v423_v22   ;;  %598 = vperm.xlu1 %3356, %v424_v23   ;;  %v2324_v23 = vld [vmem:[%s5948_s4 + $0x30] sm:$0xff] }
  0x8b   : > { %1026 = vmatmul.mubr.bf16.gmra.mrb[8].mxu0 %v3361_v6  ;;  %1266 = vmatmul.mubr.bf16.gmra.mrb[8].mxu1 %v3362_v7  ;;  %v458_v6 = vld [vmem:[%s5946_s2 + $0x1e8] sm:$0xff]  ;;  %v459_v7 = vld [vmem:[%s5946_s2 + $0x1f0] sm:$0xff] }
  0x8c   : > { %1035 = vmatprep.mubr.bf16.mxu0 %v4131_v0  ;;  %1275 = vmatprep.mubr.bf16.mxu1 %v4131_v0 }
  0x8e   : > { %603 = vperm.xlu0 %3355, %v425_v26   ;;  %608 = vperm.xlu1 %3356, %v426_v27   ;;  %v3381_v27 = vld [vmem:[#allocation2 + $0x80] sm:$0xff]  }
  0x92   : > { %613 = vperm.xlu0 %3355, %v427_v28   ;;  %618 = vperm.xlu1 %3356, %v428_v29   ;;  %v2326_v28 = vld [vmem:[%s5948_s4 + $0x40] sm:$0xff]  ;;  %v2327_v29 = vld [vmem:[%s5948_s4 + $0x48] sm:$0xff] }
  0x93   : > { %1036 = vmatmul.mubr.bf16.gmra.mrb[12].mxu0 %v3363_v12  ;;  %1276 = vmatmul.mubr.bf16.gmra.mrb[12].mxu1 %v3364_v13 }
  0x94   : > { %1045 = vmatprep.mubr.bf16.mxu0 %v4131_v0  ;;  %1285 = vmatprep.mubr.bf16.mxu1 %v4131_v0 }
  0x96   : > { %623 = vperm.xlu0 %3355, %v429_v32   ;;  %628 = vperm.xlu1 %3356, %v430_v33   ;;  %v2328_v32 = vld [vmem:[%s5948_s4 + $0x50] sm:$0xff]  ;;  %v2329_v33 = vld [vmem:[%s5948_s4 + $0x58] sm:$0xff] }
  0x9a   : > { %633 = vperm.xlu0 %3355, %v431_v34   ;;  %638 = vperm.xlu1 %3356, %v432_v35  }
  0x9b   : > { %1046 = vmatmul.mubr.bf16.gmra.mrb[16].mxu0 %v3365_v18  ;;  %1286 = vmatmul.mubr.bf16.gmra.mrb[16].mxu1 %v3366_v19  ;;  %v3380_v18 = vld [vmem:[#allocation2 + $0x78] sm:$0xff]   ;;  %v2322_v19 = vld [vmem:[%s5948_s4 + $0x20] sm:$0xff] }
  0x9c   : > { %1055 = vmatprep.mubr.bf16.mxu0 %v4131_v0  ;;  %1295 = vmatprep.mubr.bf16.mxu1 %v4131_v0 }
  0x9e   : > { %643 = vperm.xlu0 %3355, %v433_v38   ;;  %648 = vperm.xlu1 %3356, %v434_v39   ;;  %v2331_v38 = vld [vmem:[%s5948_s4 + $0x68] sm:$0xff] }
  0xa2   : > { %653 = vperm.xlu0 %3355, %v435_v40   ;;  %658 = vperm.xlu1 %3356, %v436_v41   ;;  %v2332_v41 = vld [vmem:[%s5948_s4 + $0x70] sm:$0xff] }
  0xa3   : > { %1056 = vmatmul.mubr.bf16.gmra.mrb[20].mxu0 %v3367_v24  ;;  %1296 = vmatmul.mubr.bf16.gmra.mrb[20].mxu1 %v3368_v25  ;;  %v2325_v24 = vld [vmem:[%s5948_s4 + $0x38] sm:$0xff] }
  0xa4   : > { %1065 = vmatprep.mubr.bf16.mxu0 %v4131_v0  ;;  %1305 = vmatprep.mubr.bf16.mxu1 %v4131_v0 }
  0xa6   : > { %663 = vperm.xlu0 %3355, %v437_v43   ;;  %668 = vperm.xlu1 %3356, %v438_v44  }
  0xaa   : > { %673 = vperm.xlu0 %3355, %v439_v45   ;;  %678 = vperm.xlu1 %3356, %v440_v46   ;;  %v3383_v45 = vld [vmem:[#allocation2 + $0x90] sm:$0xff]  }
  0xab   : > { %1066 = vmatmul.mubr.bf16.gmra.mrb[24].mxu0 %v3369_v30  ;;  %1306 = vmatmul.mubr.bf16.gmra.mrb[24].mxu1 %v3370_v31 }
  0xac   : > { %1075 = vmatprep.mubr.bf16.mxu0 %v4131_v0  ;;  %1315 = vmatprep.mubr.bf16.mxu1 %v4131_v0 }
  0xae   : > { %683 = vperm.xlu0 %3355, %v441_v48   ;;  %688 = vperm.xlu1 %3356, %v442_v49  }
  0xb2   : > { %693 = vperm.xlu0 %3355, %v443_v50   ;;  %698 = vperm.xlu1 %3356, %v444_v51   ;;  %v3384_v50 = vld [vmem:[#allocation2 + $0x98] sm:$0xff]  }
  0xb3   : > { %1076 = vmatmul.mubr.bf16.gmra.mrb[28].mxu0 %v3371_v36  ;;  %1316 = vmatmul.mubr.bf16.gmra.mrb[28].mxu1 %v3372_v37  ;;  %v3382_v36 = vld [vmem:[#allocation2 + $0x88] sm:$0xff]   ;;  %v2330_v37 = vld [vmem:[%s5948_s4 + $0x60] sm:$0xff] }
  0xb4   : > { %1085 = vmatprep.mubr.bf16.mxu0 %v4131_v0 }
  0xb6   : > { %703 = vperm.xlu0 %3355, %v445_v53   ;;  %708 = vperm.xlu1 %3356, %v446_v54  }
  0xba   : > { %713 = vperm.xlu0 %3355, %v447_v55   ;;  %718 = vperm.xlu1 %3356, %v448_v56   ;;  %v3385_v55 = vld [vmem:[#allocation2 + $0xa0] sm:$0xff]  }
  0xbb   : > { %1086 = vmatmul.mubr.bf16.gmra.mrb[32].mxu0 %v3373_v42  ;;  %v2333_v42 = vld [vmem:[%s5948_s4 + $0x78] sm:$0xff] }
  0xbc   : > { %1095 = vmatprep.mubr.bf16.mxu0 %v4131_v0 }
  0xbe   : > { %723 = vperm.xlu0 %3355, %v449_v58   ;;  %728 = vperm.xlu1 %3356, %v450_v59  }
  0xc2   : > { %733 = vperm.xlu0 %3355, %v451_v60   ;;  %738 = vperm.xlu1 %3356, %v452_v61   ;;  %v3386_v60 = vld [vmem:[#allocation2 + $0xa8] sm:$0xff]  }
  0xc3   : > { %1096 = vmatmul.mubr.bf16.gmra.mrb[36].mxu0 %v3374_v47 }
  0xc4   : > { %1105 = vmatprep.mubr.bf16.mxu0 %v4131_v0 }
  0xc6   : > { %743 = vperm.xlu0 %3355, %v453_v63   ;;  %748 = vperm.xlu1 %3356, %v454_v1  }
  0xca   : > { %753 = vperm.xlu0 %3355, %v455_v2   ;;  %758 = vperm.xlu1 %3356, %v456_v3   ;;  %v3387_v2 = vld [vmem:[#allocation2 + $0xb0] sm:$0xff]  }
  0xcb   : > { %1106 = vmatmul.mubr.bf16.gmra.mrb[40].mxu0 %v3375_v52 }
  0xcc   : > { %1115 = vmatprep.mubr.bf16.mxu0 %v4131_v0 }
  0xce   : > { %763 = vperm.xlu0 %3355, %v457_v5   ;;  %768 = vperm.xlu1 %3356, %v458_v6  }
  0xd2   : > { %773 = vperm.xlu0 %3355, %v459_v7   ;;  %778 = vperm.xlu1 %3356, %v460_v8   ;;  %v3388_v7 = vld [vmem:[#allocation2 + $0xb8] sm:$0xff]  }
  0xd3   : > { %1116 = vmatmul.mubr.bf16.gmra.mrb[44].mxu0 %v3376_v57 }
  0xd4   : > { %1125 = vmatprep.mubr.bf16.mxu0 %v4131_v0  ;;  %v4557_v12 = vpop.permute.xlu0 %463  ;;  %v4559_v13 = vpop.permute.xlu1 %473 }
  0xd6   : > { %2336 = vperm.xlu0 %3355, %v2318_v10   ;;  %2341 = vperm.xlu1 %3356, %v2319_v11  }
  0xd8   : > { %v4568_v16 = vpop.permute.xlu0 %468  ;;  %v4570_v17 = vpop.permute.xlu1 %478 }
  0xda   : > { %2346 = vperm.xlu0 %3355, %v2320_v14   ;;  %2351 = vperm.xlu1 %3356, %v2321_v15  }
  0xdb   : > { %1126 = vmatmul.mubr.bf16.gmra.mrb[48].mxu0 %v3377_v62 }
  0xdc   : > { %1135 = vmatprep.mubr.bf16.mxu0 %v4131_v0 }
  0xdd   : > { %v4578_v21 = vpop.permute.xlu0 %483  ;;  %v4580_v22 = vpop.permute.xlu1 %488 }
  0xde   : > { %2356 = vperm.xlu0 %3355, %v2322_v19   ;;  %2361 = vperm.xlu1 %3356, %v2323_v20  }
  0xe1   : > { %v4589_v25 = vpop.permute.xlu0 %493  ;;  %v4591_v26 = vpop.permute.xlu1 %498 }
  0xe2   : > { %2366 = vperm.xlu0 %3355, %v2324_v23   ;;  %2371 = vperm.xlu1 %3356, %v2325_v24  }
  0xe3   : > { %1136 = vmatmul.mubr.bf16.gmra.mrb[52].mxu0 %v3378_v4 }
  0xe4   : > { %1145 = vmatprep.mubr.bf16.mxu0 %v4131_v0 }
  0xe5   : > { %v4599_v30 = vpop.permute.xlu0 %503  ;;  %v4601_v31 = vpop.permute.xlu1 %508 }
  0xe6   : > { %2376 = vperm.xlu0 %3355, %v2326_v28   ;;  %2381 = vperm.xlu1 %3356, %v2327_v29  }
  0xe9   : > { %v4610_v34 = vpop.permute.xlu0 %513  ;;  %v4612_v35 = vpop.permute.xlu1 %518 }
  0xea   : > { %2386 = vperm.xlu0 %3355, %v2328_v32   ;;  %2391 = vperm.xlu1 %3356, %v2329_v33  }
  0xeb   : > { %1146 = vmatmul.mubr.bf16.gmra.mrb[56].mxu0 %v3379_v9 }
  0xec   : > { %1155 = vmatprep.mubr.bf16.mxu0 %v4131_v0 }
  0xed   : > { %v4620_v39 = vpop.permute.xlu0 %523  ;;  %v4622_v40 = vpop.permute.xlu1 %528 }
  0xee   : > { %2396 = vperm.xlu0 %3355, %v2330_v37   ;;  %2401 = vperm.xlu1 %3356, %v2331_v38  }
  0xf1   : > { %v4631_v43 = vpop.permute.xlu0 %533  ;;  %v4633_v44 = vpop.permute.xlu1 %538 }
  0xf2   : > { %6029 = vst [vmem:[#allocation12_spill] sm:$0xff] %v4631_v43  ;;  %6030 = vst [vmem:[#allocation13_spill] sm:$0xff] %v4633_v44  ;;  %2406 = vperm.xlu0 %3355, %v2332_v41   ;;  %2411 = vperm.xlu1 %3356, %v2333_v42  }
  0xf3   : > { %1156 = vmatmul.mubr.bf16.gmra.mrb[60].mxu0 %v3380_v18 }
  0xf4   : > { %1165 = vmatprep.mubr.bf16.mxu0 %v4131_v0 }
  0xf5   : > { %v4635_v46 = vpop.permute.xlu0 %543  ;;  %v4637_v47 = vpop.permute.xlu1 %548 }
  0xf6   : > { %6031 = vst [vmem:[#allocation14_spill] sm:$0xff] %v4635_v46  ;;  %6032 = vst [vmem:[#allocation15_spill] sm:$0xff] %v4637_v47 }
  0xf9   : > { %v4640_v48 = vpop.permute.xlu0 %553  ;;  %v4642_v49 = vpop.permute.xlu1 %558 }
  0xfa   : > { %6033 = vst [vmem:[#allocation16_spill] sm:$0xff] %v4640_v48  ;;  %6034 = vst [vmem:[#allocation17_spill] sm:$0xff] %v4642_v49 }
  0xfb   : > { %1166 = vmatmul.mubr.bf16.gmra.mrb[64].mxu0 %v3381_v27 }
  0xfc   : > { %1175 = vmatprep.mubr.bf16.mxu0 %v4131_v0 }
  0xfd   : > { %v4644_v51 = vpop.permute.xlu0 %563  ;;  %v4646_v52 = vpop.permute.xlu1 %568 }
  0xfe   : > { %6035 = vst [vmem:[#allocation18_spill] sm:$0xff] %v4644_v51  ;;  %6036 = vst [vmem:[#allocation19_spill] sm:$0xff] %v4646_v52 }
 0x101   : > { %v4649_v53 = vpop.permute.xlu0 %573  ;;  %v4651_v54 = vpop.permute.xlu1 %578 }
 0x102   : > { %6037 = vst [vmem:[#allocation20_spill] sm:$0xff] %v4649_v53  ;;  %6038 = vst [vmem:[#allocation21_spill] sm:$0xff] %v4651_v54 }
 0x103   : > { %1176 = vmatmul.mubr.bf16.gmra.mrb[68].mxu0 %v3382_v36 }
 0x104   : > { %1185 = vmatprep.mubr.bf16.mxu0 %v4131_v0 }
 0x105   : > { %v4653_v56 = vpop.permute.xlu0 %583  ;;  %v4655_v57 = vpop.permute.xlu1 %588 }
 0x106   : > { %6039 = vst [vmem:[#allocation22_spill] sm:$0xff] %v4653_v56  ;;  %6040 = vst [vmem:[#allocation23_spill] sm:$0xff] %v4655_v57 }
 0x109   : > { %v4658_v58 = vpop.permute.xlu0 %593  ;;  %v4660_v59 = vpop.permute.xlu1 %598 }
 0x10a   : > { %6041 = vst [vmem:[#allocation24_spill] sm:$0xff] %v4658_v58  ;;  %6042 = vst [vmem:[#allocation25_spill] sm:$0xff] %v4660_v59 }
 0x10b   : > { %1186 = vmatmul.mubr.bf16.gmra.mrb[72].mxu0 %v3383_v45 }
 0x10c   : > { %1195 = vmatprep.mubr.bf16.mxu0 %v4131_v0 }
 0x10d   : > { %v4662_v61 = vpop.permute.xlu0 %603  ;;  %v4664_v62 = vpop.permute.xlu1 %608 }
 0x10e   : > { %6043 = vst [vmem:[#allocation26_spill] sm:$0xff] %v4662_v61  ;;  %6044 = vst [vmem:[#allocation27_spill] sm:$0xff] %v4664_v62 }
 0x111   : > { %v4667_v63 = vpop.permute.xlu0 %613  ;;  %v4669_v1 = vpop.permute.xlu1 %618 }
 0x112   : > { %6045 = vst [vmem:[#allocation28_spill] sm:$0xff] %v4667_v63  ;;  %6046 = vst [vmem:[#allocation29_spill] sm:$0xff] %v4669_v1 }
 0x113   : > { %1196 = vmatmul.mubr.bf16.gmra.mrb[76].mxu0 %v3384_v50 }
 0x114   : > { %1205 = vmatprep.mubr.bf16.mxu0 %v4131_v0 }
 0x115   : > { %v4671_v3 = vpop.permute.xlu0 %623  ;;  %v4673_v4 = vpop.permute.xlu1 %628 }
 0x116   : > { %6047 = vst [vmem:[#allocation30_spill] sm:$0xff] %v4671_v3  ;;  %6048 = vst [vmem:[#allocation31_spill] sm:$0xff] %v4673_v4 }
 0x119   : > { %v4676_v5 = vpop.permute.xlu0 %633  ;;  %v4678_v6 = vpop.permute.xlu1 %638 }
 0x11a   : > { %6049 = vst [vmem:[#allocation32_spill] sm:$0xff] %v4676_v5  ;;  %6050 = vst [vmem:[#allocation33_spill] sm:$0xff] %v4678_v6 }
 0x11b   : > { %1206 = vmatmul.mubr.bf16.gmra.mrb[80].mxu0 %v3385_v55 }
 0x11c   : > { %1215 = vmatprep.mubr.bf16.mxu0 %v4131_v0 }
 0x11d   : > { %v4680_v8 = vpop.permute.xlu0 %643  ;;  %v4682_v9 = vpop.permute.xlu1 %648 }
 0x11e   : > { %6051 = vst [vmem:[#allocation34_spill] sm:$0xff] %v4680_v8  ;;  %6052 = vst [vmem:[#allocation35_spill] sm:$0xff] %v4682_v9 }
 0x121   : > { %v4684_v10 = vpop.permute.xlu0 %653  ;;  %v4686_v11 = vpop.permute.xlu1 %658 }
 0x122   : > { %6053 = vst [vmem:[#allocation36_spill] sm:$0xff] %v4684_v10  ;;  %6054 = vst [vmem:[#allocation37_spill] sm:$0xff] %v4686_v11 }
 0x123   : > { %1216 = vmatmul.mubr.bf16.gmra.mrb[84].mxu0 %v3386_v60 }
 0x124   : > { %1225 = vmatprep.mubr.bf16.mxu0 %v4131_v0 }
 0x125   : > { %v4688_v14 = vpop.permute.xlu0 %663  ;;  %v4690_v15 = vpop.permute.xlu1 %668 }
 0x126   : > { %6055 = vst [vmem:[#allocation38_spill] sm:$0xff] %v4688_v14  ;;  %6056 = vst [vmem:[#allocation39_spill] sm:$0xff] %v4690_v15 }
 0x129   : > { %v4692_v18 = vpop.permute.xlu0 %673 }
 0x12a   : > { %6057 = vst [vmem:[#allocation40_spill] sm:$0xff] %v4692_v18 }
 0x12b   : > { %1226 = vmatmul.mubr.bf16.gmra.mrb[88].mxu0 %v3387_v2 }
 0x12c   : > { %1235 = vmatprep.mubr.bf16.mxu0 %v4131_v0  ;;  %v4694_v0 = vpop.permute.xlu1 %678 }
 0x12d   : > { %6058 = vst [vmem:[#allocation41_spill] sm:$0xff] %v4694_v0  ;;  %v4696_v19 = vpop.permute.xlu0 %683 }
 0x12e   : > { %6059 = vst [vmem:[#allocation42_spill] sm:$0xff] %v4696_v19 }
 0x130   : > { %v4698_v20 = vpop.permute.xlu1 %688 }
 0x131   : > { %6060 = vst [vmem:[#allocation43_spill] sm:$0xff] %v4698_v20  ;;  %v4700_v23 = vpop.permute.xlu0 %693 }
 0x132   : > { %6061 = vst [vmem:[#allocation44_spill] sm:$0xff] %v4700_v23 }
 0x133   : > { %1236 = vmatmul.mubr.bf16.gmra.mrb[92].mxu0 %v3388_v7 }
 0x134   : > { %v4702_v24 = vpop.permute.xlu1 %698 }
 0x135   : > { %6062 = vst [vmem:[#allocation45_spill] sm:$0xff] %v4702_v24  ;;  %v704_v27 = vpop.permute.xlu0 %703 }
 0x138   : > { %v709_v28 = vpop.permute.xlu1 %708 }
 0x14e   : > { %v1007_v29 = vpop.f32.mrb[0].mxu0  ;;  %v1247_v32 = vpop.f32.mrb[0].mxu1 }
 0x14f   : > { %v4705_v33 = vadd.f32 %v1007_v29, %v4557_v12  ;;  %v1009_v36 = vpop.f32.mrb[1].mxu0  ;;  %v4707_v37 = vadd.f32 %v1247_v32, %v704_v27  ;;  %v1249_v38 = vpop.f32.mrb[1].mxu1 }
 0x150   : > { %v4710_v41 = vadd.f32 %v1009_v36, %v4557_v12  ;;  %v1011_v42 = vpop.f32.mrb[2].mxu0  ;;  %v4712_v45 = vadd.f32 %v1249_v38, %v704_v27  ;;  %v1251_v50 = vpop.f32.mrb[2].mxu1 }
 0x151   : > { %v3025_v55 = vmul.f32 -1.442695, %v4705_v33  ;;  %v4716_v60 = vadd.f32 %v1011_v42, %v4568_v16  ;;  %v1013_v2 = vpop.f32.mrb[3].mxu0  ;;  %v4718_v7 = vadd.f32 %v1251_v50, %v709_v28  ;;  %v1253_v29 = vpop.f32.mrb[3].mxu1  ;;  %v3121_v36 = vmul.f32 -1.442695, %v4707_v37 }
 0x152   : > { %v3026_v32 = vmul.f32 -1.442695, %v4710_v41  ;;  %v4722_v24 = vadd.f32 %v1013_v2, %v4568_v16  ;;  %v4724_v12 = vadd.f32 %v1253_v29, %v709_v28  ;;  %v3122_v42 = vmul.f32 -1.442695, %v4712_v45  ;;  %v4730_v50 = vpop.permute.xlu0 %713 }
 0x153   : > { %3437 = vpow2.f32 %v3025_v55  ;;  %v3027_v27 = vmul.f32 -1.442695, %v4716_v60  ;;  %v3123_v23 = vmul.f32 -1.442695, %v4718_v7 }
 0x154   : > { %3439 = vpow2.f32 %v3026_v32  ;;  %v3028_v38 = vmul.f32 -1.442695, %v4722_v24  ;;  %v3124_v28 = vmul.f32 -1.442695, %v4724_v12 }
 0x155   : > { %3441 = vpow2.f32 %v3027_v27 }
 0x156   : > { %3443 = vpow2.f32 %v3028_v38  ;;  %v1017_v16 = vpop.f32.mrb[4].mxu0  ;;  %v1257_v2 = vpop.f32.mrb[4].mxu1 }
 0x157   : > { %v4735_v55 = vadd.f32 %v1017_v16, %v4559_v13  ;;  %v1019_v29 = vpop.f32.mrb[5].mxu0  ;;  %3445 = vpow2.f32 %v3121_v36  ;;  %v4738_v32 = vadd.f32 %v1257_v2, %v4730_v50  ;;  %v4740_v20 = vpop.f32.mrb[5].mxu1 }
 0x158   : > { %v4743_v27 = vadd.f32 %v1019_v29, %v4559_v13  ;;  %v1021_v19 = vpop.f32.mrb[6].mxu0  ;;  %3447 = vpow2.f32 %v3122_v42  ;;  %v4745_v38 = vpop.f32.mrb[6].mxu1 }
 0x159   : > { %v3029_v0 = vmul.f32 -1.442695, %v4735_v55  ;;  %v4749_v18 = vadd.f32 %v1021_v19, %v4570_v17  ;;  %v1023_v16 = vpop.f32.mrb[7].mxu0  ;;  %3449 = vpow2.f32 %v3123_v23  ;;  %v4751_v36 = vpop.f32.mrb[7].mxu1  ;;  %v3125_v42 = vmul.f32 -1.442695, %v4738_v32 }
 0x15a   : > { %v3030_v2 = vmul.f32 -1.442695, %v4743_v27  ;;  %v4755_v15 = vadd.f32 %v1023_v16, %v4570_v17  ;;  %3451 = vpow2.f32 %v3124_v28 }
 0x15b   : > { %3453 = vpow2.f32 %v3029_v0  ;;  %v3031_v13 = vmul.f32 -1.442695, %v4749_v18 }
 0x15c   : > { %3455 = vpow2.f32 %v3030_v2  ;;  %v3032_v29 = vmul.f32 -1.442695, %v4755_v15 }
 0x15d   : > { %v3438_v19 = vpop.eup %3437  ;;  %3457 = vpow2.f32 %v3031_v13 }
 0x15e   : > { %v3440_v14 = vpop.eup %3439  ;;  %v1710_v23 = vadd.f32 1.0, %v3438_v19  ;;  %3459 = vpow2.f32 %v3032_v29  ;;  %v1027_v11 = vpop.f32.mrb[8].mxu0 }
 0x15f   : > { %v4760_v10 = vpop.f32.mrb[8].mxu1  ;;  %v3442_v9 = vpop.eup %3441  ;;  %v1711_v17 = vadd.f32 1.0, %v3440_v14  ;;  %v4763_v28 = vadd.f32 %v1027_v11, %v4578_v21  ;;  %3461 = vpow2.f32 %v3125_v42 }
 0x160   : > { %v1029_v0 = vpop.f32.mrb[9].mxu0  ;;  %v4765_v16 = vpop.f32.mrb[9].mxu1  ;;  %3463 = vrcp.f32 %v1710_v23  ;;  %v1712_v8 = vadd.f32 1.0, %v3442_v9 }
 0x161   : > { %v3444_v2 = vpop.eup %3443  ;;  %v4768_v13 = vadd.f32 %v1029_v0, %v4578_v21  ;;  %v1031_v19 = vpop.f32.mrb[10].mxu0  ;;  %3465 = vrcp.f32 %v1711_v17  ;;  %v3033_v14 = vmul.f32 -1.442695, %v4763_v28 }
 0x162   : > { %v4770_v29 = vpop.f32.mrb[10].mxu1  ;;  %v3446_v6 = vpop.eup %3445  ;;  %v1713_v5 = vadd.f32 1.0, %v3444_v2  ;;  %v4774_v11 = vadd.f32 %v1031_v19, %v4580_v22  ;;  %3467 = vrcp.f32 %v1712_v8 }
 0x163   : > { %v1033_v42 = vpop.f32.mrb[11].mxu0  ;;  %v4776_v4 = vpop.f32.mrb[11].mxu1  ;;  %v3034_v21 = vmul.f32 -1.442695, %v4768_v13 }
 0x164   : > { %v4778_v3 = vpop.eup %3447  ;;  %v4782_v9 = vadd.f32 %v1033_v42, %v4580_v22  ;;  %3469 = vrcp.f32 %v1713_v5  ;;  %v3035_v17 = vmul.f32 -1.442695, %v4774_v11 }
 0x165   : > { %v4784_v23 = vpop.eup %3449  ;;  %3471 = vpow2.f32 %v3033_v14 }
 0x166   : > { %v4787_v0 = vpop.eup %3451  ;;  %v3036_v2 = vmul.f32 -1.442695, %v4782_v9  ;;  %3473 = vpow2.f32 %v3034_v21  ;;  %v1037_v8 = vpop.f32.mrb[12].mxu0 }
 0x167   : > { %v3454_v19 = vpop.eup %3453  ;;  %3475 = vpow2.f32 %v3035_v17  ;;  %v4790_v62 = vpop.f32.mrb[12].mxu1  ;;  %v4793_v5 = vadd.f32 %v1037_v8, %v4589_v25 }
 0x168   : > { %v3456_v1 = vpop.eup %3455  ;;  %v1714_v63 = vadd.f32 1.0, %v3454_v19  ;;  %3477 = vpow2.f32 %v3036_v2  ;;  %v1039_v61 = vpop.f32.mrb[13].mxu0 }
 0x169   : > { %v3458_v22 = vpop.eup %3457  ;;  %v1715_v42 = vadd.f32 1.0, %v3456_v1  ;;  %v4795_v59 = vpop.f32.mrb[13].mxu1  ;;  %v4798_v21 = vadd.f32 %v1039_v61, %v4589_v25  ;;  %v3037_v2 = vmul.f32 -1.442695, %v4793_v5 }
 0x16a   : > { %v3460_v14 = vpop.eup %3459  ;;  %3479 = vrcp.f32 %v1714_v63  ;;  %v1716_v58 = vadd.f32 1.0, %v3458_v22  ;;  %v1041_v19 = vpop.f32.mrb[14].mxu0 }
 0x16b   : > { %v4800_v17 = vpop.f32.mrb[14].mxu1  ;;  %v4802_v57 = vpop.eup %3461  ;;  %3481 = vrcp.f32 %v1715_v42  ;;  %v1717_v1 = vadd.f32 1.0, %v3460_v14  ;;  %v4806_v8 = vadd.f32 %v1041_v19, %v4591_v26  ;;  %v3038_v25 = vmul.f32 -1.442695, %v4798_v21 }
 0x16c   : > { %v1043_v56 = vpop.f32.mrb[15].mxu0  ;;  %v4808_v54 = vpop.f32.mrb[15].mxu1  ;;  %3483 = vrcp.f32 %v1716_v58  ;;  %v1806_v19 = vadd.f32 1.0, %v3446_v6 }
 0x16d   : > { %v3464_v63 = vpop.eup %3463  ;;  %v4812_v61 = vadd.f32 %v1043_v56, %v4591_v26  ;;  %3485 = vrcp.f32 %v1717_v1  ;;  %v3039_v42 = vmul.f32 -1.442695, %v4806_v8 }
 0x16e   : > { %v3466_v22 = vpop.eup %3465  ;;  %3487 = vpow2.f32 %v3037_v2  ;;  %v2094_v51 = vmul.f32 %v3464_v63, %v4705_v33  ;;  %v1047_v56 = vpop.f32.mrb[16].mxu0 }
 0x16f   : > { %v3468_v14 = vpop.eup %3467  ;;  %v3040_v53 = vmul.f32 -1.442695, %v4812_v61  ;;  %3489 = vpow2.f32 %v3038_v25  ;;  %v2095_v48 = vmul.f32 %v3466_v22, %v4710_v41  ;;  %v4820_v1 = vpop.f32.mrb[16].mxu1  ;;  %v4823_v6 = vadd.f32 %v1047_v56, %v4599_v30 }
 0x170   : > { %v3470_v52 = vpop.eup %3469  ;;  %v2096_v49 = vmul.f32 %v3468_v14, %v4716_v60  ;;  %3491 = vpow2.f32 %v3039_v42  ;;  %v1049_v33 = vpop.f32.mrb[17].mxu0 }
 0x171   : > { %v3472_v58 = vpop.eup %3471  ;;  %v2097_v26 = vmul.f32 %v3470_v52, %v4722_v24  ;;  %3493 = vpow2.f32 %v3040_v53  ;;  %v4825_v63 = vpop.f32.mrb[17].mxu1  ;;  %v4828_v41 = vadd.f32 %v1049_v33, %v4599_v30 }
 0x172   : > { %v3474_v47 = vpop.eup %3473  ;;  %v2254_v2 = vpack.c.bf16 %v2096_v49, %v2094_v51  ;;  %v1718_v46 = vadd.f32 1.0, %v3472_v58  ;;  %v1051_v52 = vpop.f32.mrb[18].mxu0  ;;  %3495 = vrcp.f32 %v1806_v19  ;;  %v3041_v51 = vmul.f32 -1.442695, %v4823_v6 }
 0x173   : > { %v3476_v60 = vpop.eup %3475  ;;  %v1719_v25 = vadd.f32 1.0, %v3474_v47  ;;  %v2255_v24 = vpack.c.bf16 %v2097_v26, %v2095_v48  ;;  %v4830_v22 = vpop.f32.mrb[18].mxu1  ;;  %v4834_v53 = vadd.f32 %v1051_v52, %v4601_v31  ;;  %v3042_v56 = vmul.f32 -1.442695, %v4828_v41 }
 0x174   : > { %v3478_v42 = vpop.eup %3477  ;;  %3497 = vrcp.f32 %v1718_v46  ;;  %v1720_v49 = vadd.f32 1.0, %v3476_v60  ;;  %v1053_v14 = vpop.f32.mrb[19].mxu0 }
 0x175   : > { %v4836_v58 = vpop.f32.mrb[19].mxu1  ;;  %v3480_v47 = vpop.eup %3479  ;;  %3499 = vrcp.f32 %v1719_v25  ;;  %v1721_v30 = vadd.f32 1.0, %v3478_v42  ;;  %v4840_v48 = vadd.f32 %v1053_v14, %v4601_v31  ;;  %2574 = vmatprep.subr.bf16.mxu1 %v2255_v24  ;;  %v3043_v46 = vmul.f32 -1.442695, %v4834_v53 }
 0x176   : > { %6063 = vst [vmem:[#allocation46_spill] sm:$0xff] %v4836_v58  ;;  %v3482_v19 = vpop.eup %3481  ;;  %3501 = vrcp.f32 %v1720_v49  ;;  %2575 = vmatpush1.bf16.msra.mxu1 %v2254_v2  ;;  %v2098_v52 = vmul.f32 %v3480_v47, %v4735_v55  ;;  %v1057_v49 = vpop.f32.mrb[20].mxu0 }
 0x177   : > { %v3484_v26 = vpop.eup %3483  ;;  %3503 = vrcp.f32 %v1721_v30  ;;  %v3044_v33 = vmul.f32 -1.442695, %v4840_v48  ;;  %v2099_v31 = vmul.f32 %v3482_v19, %v4743_v27  ;;  %v4848_v14 = vpop.f32.mrb[20].mxu1  ;;  %v4857_v19 = vadd.f32 %v4740_v20, %v4730_v50 }
 0x178   : > { %v3486_v60 = vpop.eup %3485  ;;  %v2100_v25 = vmul.f32 %v3484_v26, %v4749_v18  ;;  %3505 = vpow2.f32 %v3041_v51  ;;  %v1059_v43 = vpop.f32.mrb[21].mxu0  ;;  %v1810_v20 = vadd.f32 1.0, %v4802_v57 }
 0x179   : > { %v3488_v42 = vpop.eup %3487  ;;  %v2101_v24 = vmul.f32 %v3486_v60, %v4755_v15  ;;  %3507 = vpow2.f32 %v3042_v56  ;;  %v4850_v58 = vpop.f32.mrb[21].mxu1  ;;  %v1807_v56 = vadd.f32 1.0, %v4778_v3 }
 0x17a   : > { %v3490_v2 = vpop.eup %3489  ;;  %v2256_v44 = vpack.c.bf16 %v2100_v25, %v2098_v52  ;;  %v1722_v30 = vadd.f32 1.0, %v3488_v42  ;;  %3509 = vpow2.f32 %v3043_v46  ;;  %v1061_v18 = vpop.f32.mrb[22].mxu0  ;;  %v1808_v25 = vadd.f32 1.0, %v4784_v23 }
 0x17b   : > { %v3492_v55 = vpop.eup %3491  ;;  %v1723_v47 = vadd.f32 1.0, %v3490_v2  ;;  %3511 = vpow2.f32 %v3044_v33  ;;  %v2257_v51 = vpack.c.bf16 %v2101_v24, %v2099_v31  ;;  %v4852_v26 = vpop.f32.mrb[22].mxu1  ;;  %v1809_v31 = vadd.f32 1.0, %v4787_v0 }
 0x17c   : > { %v3494_v27 = vpop.eup %3493  ;;  %3513 = vrcp.f32 %v1722_v30  ;;  %v1724_v15 = vadd.f32 1.0, %v3492_v55  ;;  %v1063_v46 = vpop.f32.mrb[23].mxu0  ;;  %v3126_v30 = vmul.f32 -1.442695, %v4857_v19 }
 0x17d   : > { %v4859_v60 = vpop.f32.mrb[23].mxu1  ;;  %v4861_v52 = vpop.eup %3495  ;;  %3515 = vrcp.f32 %v1723_v47  ;;  %v1725_v33 = vadd.f32 1.0, %v3494_v27  ;;  %2576 = vmatprep.subr.bf16.mxu1 %v2257_v51 }
 0x17e   : > { %v3498_v42 = vpop.eup %3497  ;;  %3517 = vrcp.f32 %v1724_v15  ;;  %2577 = vmatpush1.bf16.msra.mxu1 %v2256_v44  ;;  %v719_v50 = vpop.permute.xlu1 %718  ;;  %v4873_v44 = vadd.f32 %v1057_v49, %v4610_v34  ;;  %v4888_v49 = vadd.f32 %v1059_v43, %v4610_v34  ;;  %v4902_v43 = vadd.f32 %v1061_v18, %v4612_v35 }
 0x17f   : > { %v3500_v3 = vpop.eup %3499  ;;  %3519 = vrcp.f32 %v1725_v33  ;;  %v724_v2 = vpop.permute.xlu0 %723  ;;  %v4868_v55 = vadd.f32 %v4745_v38, %v719_v50  ;;  %v2102_v47 = vmul.f32 %v3498_v42, %v4763_v28  ;;  %v4881_v38 = vadd.f32 %v4751_v36, %v719_v50 }
 0x180   : > { %v3502_v24 = vpop.eup %3501  ;;  %3521 = vrcp.f32 %v1807_v56  ;;  %v4875_v0 = vpop.f32.mrb[24].mxu0  ;;  %v3045_v34 = vmul.f32 -1.442695, %v4873_v44 }
 0x181   : > { %v3504_v23 = vpop.eup %3503  ;;  %v2104_v51 = vmul.f32 %v3502_v24, %v4774_v11  ;;  %3523 = vrcp.f32 %v1808_v25  ;;  %v4877_v57 = vpop.f32.mrb[24].mxu1  ;;  %v3127_v50 = vmul.f32 -1.442695, %v4868_v55 }
 0x182   : > { %v3506_v27 = vpop.eup %3505  ;;  %v2105_v15 = vmul.f32 %v3504_v23, %v4782_v9  ;;  %3525 = vrcp.f32 %v1809_v31  ;;  %v4883_v56 = vpop.f32.mrb[25].mxu0  ;;  %v2103_v31 = vmul.f32 %v3500_v3, %v4768_v13  ;;  %v4905_v13 = vadd.f32 %v4760_v10, %v724_v2 }
 0x183   : > { %v4885_v28 = vpop.f32.mrb[25].mxu1  ;;  %v3508_v11 = vpop.eup %3507  ;;  %v2258_v33 = vpack.c.bf16 %v2104_v51, %v2102_v47  ;;  %v1726_v25 = vadd.f32 1.0, %v3506_v27  ;;  %3527 = vrcp.f32 %v1810_v20 }
 0x184   : > { %6064 = vst [vmem:[#allocation47_spill] sm:$0xff] %v4885_v28  ;;  %v4890_v42 = vpop.f32.mrb[26].mxu0  ;;  %v4892_v24 = vpop.f32.mrb[26].mxu1  ;;  %v1727_v36 = vadd.f32 1.0, %v3508_v11  ;;  %3529 = vpow2.f32 %v3126_v30  ;;  %v2259_v3 = vpack.c.bf16 %v2105_v15, %v2103_v31  ;;  %v3046_v11 = vmul.f32 -1.442695, %v4888_v49 }
 0x185   : > { %6065 = vst [vmem:[#allocation48_spill] sm:$0xff] %v4892_v24  ;;  %v3510_v9 = vpop.eup %3509  ;;  %v4896_v23 = vpop.f32.mrb[27].mxu0  ;;  %3531 = vrcp.f32 %v1726_v25 }
 0x186   : > { %v4898_v28 = vpop.f32.mrb[27].mxu1  ;;  %v3512_v47 = vpop.eup %3511  ;;  %v1728_v20 = vadd.f32 1.0, %v3510_v9  ;;  %3533 = vrcp.f32 %v1727_v36  ;;  %v3128_v9 = vmul.f32 -1.442695, %v4881_v38  ;;  %v4913_v36 = vadd.f32 %v4765_v16, %v724_v2  ;;  %2578 = vmatprep.subr.bf16.mxu1 %v2259_v3 }
 0x187   : > { %6066 = vst [vmem:[#allocation49_spill] sm:$0xff] %v4898_v28  ;;  %v3514_v51 = vpop.eup %3513  ;;  %v1729_v27 = vadd.f32 1.0, %v3512_v47  ;;  %v4909_v28 = vadd.f32 %v1063_v46, %v4612_v35  ;;  %v729_v18 = vpop.permute.xlu1 %728  ;;  %v3047_v47 = vmul.f32 -1.442695, %v4902_v43  ;;  %2579 = vmatpush1.bf16.msra.mxu1 %v2258_v33  ;;  %v4926_v16 = vmul.f32 %v4861_v52, %v4707_v37 }
 0x188   : > { %v3516_v30 = vpop.eup %3515  ;;  %3535 = vrcp.f32 %v1728_v20  ;;  %v734_v24 = vpop.permute.xlu0 %733  ;;  %v2106_v15 = vmul.f32 %v3514_v51, %v4793_v5  ;;  %v3129_v2 = vmul.f32 -1.442695, %v4905_v13  ;;  %v4930_v5 = vadd.f32 %v4770_v29, %v729_v18 }
 0x189   : > { %v3518_v25 = vpop.eup %3517  ;;  %3537 = vrcp.f32 %v1729_v27  ;;  %v4918_v35 = vpop.f32.mrb[28].mxu0  ;;  %6068 = vst [vmem:[#allocation51_spill] sm:$0xff] %v4926_v16  ;;  %v3048_v27 = vmul.f32 -1.442695, %v4909_v28  ;;  %v4938_v3 = vadd.f32 %v4776_v4, %v729_v18 }
 0x18a   : > { %v3520_v10 = vpop.eup %3519  ;;  %v2108_v31 = vmul.f32 %v3518_v25, %v4806_v8  ;;  %3539 = vpow2.f32 %v3045_v34  ;;  %v4920_v46 = vpop.f32.mrb[28].mxu1  ;;  %v3130_v25 = vmul.f32 -1.442695, %v4913_v36 }
 0x18b   : > { %6067 = vst [vmem:[#allocation50_spill] sm:$0xff] %v4920_v46  ;;  %v4922_v20 = vpop.eup %3521  ;;  %3541 = vpow2.f32 %v3127_v50  ;;  %v4932_v8 = vpop.f32.mrb[29].mxu0  ;;  %v2109_v18 = vmul.f32 %v3520_v10, %v4812_v61 }
 0x18c   : > { %v4934_v34 = vpop.f32.mrb[29].mxu1  ;;  %v3524_v33 = vpop.eup %3523  ;;  %v2260_v51 = vpack.c.bf16 %v2108_v31, %v2106_v15  ;;  %3543 = vpow2.f32 %v3046_v11  ;;  %v4951_v15 = vadd.f32 %v4790_v62, %v734_v24  ;;  %v3131_v62 = vmul.f32 -1.442695, %v4930_v5 }
 0x18d   : > { %6069 = vst [vmem:[#allocation52_spill] sm:$0xff] %v4934_v34  ;;  %v4940_v37 = vpop.f32.mrb[30].mxu0  ;;  %v4942_v52 = vpop.f32.mrb[30].mxu1  ;;  %v4947_v29 = vmul.f32 %v3524_v33, %v4718_v7  ;;  %3545 = vpow2.f32 %v3128_v9  ;;  %v2107_v34 = vmul.f32 %v3516_v30, %v4798_v21 }
 0x18e   : > { %6070 = vst [vmem:[#allocation53_spill] sm:$0xff] %v4942_v52  ;;  %v4944_v50 = vpop.eup %3525  ;;  %v4953_v11 = vpop.f32.mrb[31].mxu0  ;;  %3547 = vpow2.f32 %v3047_v47  ;;  %v4961_v52 = vadd.f32 %v4795_v59, %v734_v24  ;;  %v3133_v61 = vmul.f32 -1.442695, %v4951_v15 }
 0x18f   : > { %6071 = vst [vmem:[#allocation54_spill] sm:$0xff] %v4947_v29  ;;  %6072 = vst [vmem:[#allocation55_spill] sm:$0xff] %v4953_v11  ;;  %v4955_v31 = vpop.f32.mrb[31].mxu1  ;;  %v4957_v4 = vpop.eup %3527  ;;  %3549 = vpow2.f32 %v3129_v2  ;;  %v2261_v10 = vpack.c.bf16 %v2109_v18, %v2107_v34 }
 0x190   : > { %6073 = vst [vmem:[#allocation56_spill] sm:$0xff] %v4955_v31  ;;  %v3530_v7 = vpop.eup %3529  ;;  %3551 = vpow2.f32 %v3048_v27  ;;  %v3132_v31 = vmul.f32 -1.442695, %v4938_v3  ;;  %v3134_v24 = vmul.f32 -1.442695, %v4961_v52  ;;  %v4970_v47 = vpop.f32.mrb[32].mxu0 }
 0x191   : > { %v3532_v33 = vpop.eup %3531  ;;  %v1811_v46 = vadd.f32 1.0, %v3530_v7  ;;  %3553 = vpow2.f32 %v3130_v25  ;;  %v4978_v30 = vpop.f32.mrb[33].mxu0  ;;  %2580 = vmatprep.subr.bf16.mxu1 %v2261_v10 }
 0x192   : > { %v3534_v11 = vpop.eup %3533  ;;  %v4973_v9 = vmul.f32 %v3532_v33, %v4823_v6  ;;  %v4980_v25 = vpop.f32.mrb[34].mxu0  ;;  %2581 = vmatpush1.bf16.msra.mxu1 %v2260_v51 }
 0x193   : > { %v3536_v59 = vpop.eup %3535  ;;  %3555 = vrcp.f32 %v1811_v46  ;;  %v4984_v6 = vpop.f32.mrb[35].mxu0 }
 0x194   : > { %v3538_v2 = vpop.eup %3537  ;;  %v4976_v21 = vmul.f32 %v3536_v59, %v4834_v53  ;;  %3557 = vpow2.f32 %v3131_v62 }
 0x195   : > { %v3540_v27 = vpop.eup %3539  ;;  %3559 = vpow2.f32 %v3132_v31  ;;  %v4988_v31 = vadd.f32 %v4875_v0, %v4620_v39  ;;  %v2113_v10 = vmul.f32 %v3538_v2, %v4840_v48  ;;  %v4997_v0 = vadd.f32 %v4883_v56, %v4620_v39 }
 0x196   : > { %v3542_v46 = vpop.eup %3541  ;;  %v2262_v34 = vpack.c.bf16 %v4976_v21, %v4973_v9  ;;  %v1730_v18 = vadd.f32 1.0, %v3540_v27  ;;  %3561 = vpow2.f32 %v3133_v61  ;;  %v739_v21 = vpop.permute.xlu1 %738  ;;  %v5003_v2 = vmul.f32 %v4922_v20, %v4712_v45 }
 0x197   : > { %v3544_v7 = vpop.eup %3543  ;;  %v1812_v53 = vadd.f32 1.0, %v3542_v46  ;;  %3563 = vpow2.f32 %v3134_v24  ;;  %v4992_v27 = vadd.f32 %v4800_v17, %v739_v21  ;;  %v2111_v46 = vmul.f32 %v3534_v11, %v4828_v41  ;;  %v744_v45 = vpop.permute.xlu0 %743 }
 0x198   : > { %v3546_v62 = vpop.eup %3545  ;;  %3565 = vrcp.f32 %v1730_v18  ;;  %v1731_v33 = vadd.f32 1.0, %v3544_v7  ;;  %v4999_v7 = vpop.f32.mrb[36].mxu0  ;;  %6074 = vst [vmem:[#allocation57_spill] sm:$0xff] %v5003_v2  ;;  %v3049_v17 = vmul.f32 -1.442695, %v4988_v31  ;;  %v5010_v11 = vmul.f32 %v4944_v50, %v4724_v12 }
 0x199   : > { %v3548_v59 = vpop.eup %3547  ;;  %3567 = vrcp.f32 %v1812_v53  ;;  %v1813_v9 = vadd.f32 1.0, %v3546_v62  ;;  %v5006_v62 = vpop.f32.mrb[37].mxu0  ;;  %v2263_v56 = vpack.c.bf16 %v2113_v10, %v2111_v46  ;;  %v3135_v20 = vmul.f32 -1.442695, %v4992_v27 }
 0x19a   : > { %v3550_v61 = vpop.eup %3549  ;;  %3569 = vrcp.f32 %v1731_v33  ;;  %v1732_v51 = vadd.f32 1.0, %v3548_v59  ;;  %6075 = vst [vmem:[#allocation58_spill] sm:$0xff] %v5010_v11  ;;  %v5012_v33 = vpop.f32.mrb[38].mxu0  ;;  %v5021_v12 = vadd.f32 %v4820_v1, %v744_v45  ;;  %v5024_v10 = vadd.f32 %v4825_v63, %v744_v45 }
 0x19b   : > { %v3552_v24 = vpop.eup %3551  ;;  %3571 = vrcp.f32 %v1813_v9  ;;  %v1814_v18 = vadd.f32 1.0, %v3550_v61  ;;  %v5016_v9 = vadd.f32 %v4808_v54, %v739_v21  ;;  %v5018_v61 = vpop.f32.mrb[39].mxu0  ;;  %2582 = vmatprep.subr.bf16.mxu1 %v2263_v56  ;;  %v5028_v54 = vadd.f32 %v4890_v42, %v4622_v40 }
 0x19c   : > { %v3554_v48 = vpop.eup %3553  ;;  %3573 = vrcp.f32 %v1732_v51  ;;  %v1733_v53 = vadd.f32 1.0, %v3552_v24  ;;  %v749_v50 = vpop.permute.xlu1 %748  ;;  %2583 = vmatpush1.bf16.msra.mxu1 %v2262_v34 }
 0x19d   : > { %v3556_v41 = vpop.eup %3555  ;;  %3575 = vrcp.f32 %v1814_v18  ;;  %v1815_v39 = vadd.f32 1.0, %v3554_v48  ;;  %v5031_v21 = vadd.f32 %v4830_v22, %v749_v50  ;;  %v5042_v22 = vadd.f32 %v4896_v23, %v4622_v40 }
 0x19e   : > { %v3558_v59 = vpop.eup %3557  ;;  %3577 = vrcp.f32 %v1733_v53  ;;  %v3050_v53 = vmul.f32 -1.442695, %v4997_v0  ;;  %v3136_v56 = vmul.f32 -1.442695, %v5016_v9  ;;  %v5046_v45 = vpop.f32.mrb[40].mxu0 }
 0x19f   : > { %v3560_v51 = vpop.eup %3559  ;;  %3579 = vrcp.f32 %v1815_v39  ;;  %v1816_v24 = vadd.f32 1.0, %v3558_v59  ;;  %v3137_v59 = vmul.f32 -1.442695, %v5021_v12  ;;  %v5055_v40 = vpop.f32.mrb[41].mxu0 }
 0x1a0   : > { %v3562_v46 = vpop.eup %3561  ;;  %v1817_v18 = vadd.f32 1.0, %v3560_v51  ;;  %3581 = vpow2.f32 %v3049_v17  ;;  %v5038_v17 = vmul.f32 %v4957_v4, %v4738_v32  ;;  %v3051_v4 = vmul.f32 -1.442695, %v5028_v54  ;;  %v5062_v63 = vpop.f32.mrb[42].mxu0 }
 0x1a1   : > { %v3564_v48 = vpop.eup %3563  ;;  %3583 = vrcp.f32 %v1816_v24  ;;  %v1818_v1 = vadd.f32 1.0, %v3562_v46  ;;  %v5049_v24 = vmul.f32 %v3556_v41, %v4857_v19  ;;  %v3138_v46 = vmul.f32 -1.442695, %v5024_v10 }
 0x1a2   : > { %v3566_v39 = vpop.eup %3565  ;;  %6076 = vst [vmem:[#allocation59_spill] sm:$0xff] %v5038_v17  ;;  %3585 = vrcp.f32 %v1817_v18  ;;  %v1819_v42 = vadd.f32 1.0, %v3564_v48  ;;  %v3139_v18 = vmul.f32 -1.442695, %v5031_v21  ;;  %v6079_v48 = vld [vmem:[#allocation46_spill] sm:$0xff] }
 0x1a3   : > { %v3568_v34 = vpop.eup %3567  ;;  %3587 = vrcp.f32 %v1818_v1  ;;  %6077 = vst [vmem:[#allocation60_spill] sm:$0xff] %v5049_v24  ;;  %v5060_v1 = vadd.f32 %v6079_v48, %v749_v50  ;;  %v2114_v29 = vmul.f32 %v3566_v39, %v4873_v44 }
 0x1a4   : > { %v3570_v51 = vpop.eup %3569  ;;  %v5052_v32 = vmul.f32 %v3568_v34, %v4868_v55  ;;  %3589 = vrcp.f32 %v1819_v42  ;;  %v754_v42 = vpop.permute.xlu0 %753 }
 0x1a5   : > { %v3572_v23 = vpop.eup %3571  ;;  %3591 = vpow2.f32 %v3135_v20  ;;  %v3052_v20 = vmul.f32 -1.442695, %v5042_v22  ;;  %v5070_v34 = vpop.f32.mrb[43].mxu0  ;;  %v5075_v48 = vadd.f32 %v4848_v14, %v754_v42  ;;  %v2115_v44 = vmul.f32 %v3570_v51, %v4888_v49 }
 0x1a6   : > { %6078 = vst [vmem:[#allocation61_spill] sm:$0xff] %v5052_v32  ;;  %v3574_v19 = vpop.eup %3573  ;;  %v5067_v41 = vmul.f32 %v3572_v23, %v4881_v38  ;;  %3593 = vpow2.f32 %v3050_v53  ;;  %v5078_v38 = vadd.f32 %v4850_v58, %v754_v42  ;;  %v6081_v53 = vld [vmem:[#allocation12_spill] sm:$0xff]  ;;  %v3140_v58 = vmul.f32 -1.442695, %v5060_v1  ;;  %v5093_v55 = vpop.f32.mrb[44].mxu0 }
 0x1a7   : > { %v3576_v16 = vpop.eup %3575  ;;  %v2116_v50 = vmul.f32 %v3574_v19, %v4902_v43  ;;  %3595 = vpow2.f32 %v3136_v56  ;;  %v5082_v23 = vadd.f32 %v4918_v35, %v6081_v53  ;;  %v3141_v19 = vmul.f32 -1.442695, %v5075_v48 }
 0x1a8   : > { %6080 = vst [vmem:[#allocation46_spill] sm:$0xff] %v5067_v41  ;;  %v3578_v2 = vpop.eup %3577  ;;  %3597 = vpow2.f32 %v3051_v4  ;;  %v5089_v56 = vmul.f32 %v3576_v16, %v4905_v13  ;;  %v3142_v13 = vmul.f32 -1.442695, %v5078_v38  ;;  %v5102_v16 = vpop.f32.mrb[45].mxu0 }
 0x1a9   : > { %v3580_v17 = vpop.eup %3579  ;;  %v2264_v43 = vpack.c.bf16 %v2116_v50, %v2114_v29  ;;  %v2117_v39 = vmul.f32 %v3578_v2, %v4909_v28  ;;  %3599 = vpow2.f32 %v3137_v59  ;;  %v3053_v51 = vmul.f32 -1.442695, %v5082_v23 }
 0x1aa   : > { %v3582_v14 = vpop.eup %3581  ;;  %6082 = vst [vmem:[#allocation12_spill] sm:$0xff] %v5089_v56  ;;  %3601 = vpow2.f32 %v3052_v20  ;;  %v5096_v29 = vmul.f32 %v3580_v17, %v4913_v36 }
 0x1ab   : > { %v3584_v4 = vpop.eup %3583  ;;  %v1734_v35 = vadd.f32 1.0, %v3582_v14  ;;  %3603 = vpow2.f32 %v3138_v46  ;;  %v2265_v42 = vpack.c.bf16 %v2117_v39, %v2115_v44  ;;  %v5110_v46 = vpop.f32.mrb[46].mxu0 }
 0x1ac   : > { %v3586_v49 = vpop.eup %3585  ;;  %6083 = vst [vmem:[#allocation62_spill] sm:$0xff] %v5096_v29  ;;  %v5099_v28 = vmul.f32 %v3584_v4, %v4930_v5  ;;  %3605 = vpow2.f32 %v3139_v18  ;;  %v5116_v17 = vpop.f32.mrb[47].mxu0 }
 0x1ad   : > { %v5104_v2 = vpop.eup %3587  ;;  %v5107_v59 = vmul.f32 %v3586_v49, %v4938_v3  ;;  %3607 = vrcp.f32 %v1734_v35  ;;  %2584 = vmatprep.subr.bf16.mxu1 %v2265_v42  ;;  %v759_v14 = vpop.permute.xlu1 %758 }
 0x1ae   : > { %6084 = vst [vmem:[#allocation63_spill] sm:$0xff] %v5099_v28  ;;  %v5112_v36 = vpop.eup %3589  ;;  %3609 = vpow2.f32 %v3140_v58  ;;  %2585 = vmatpush1.bf16.msra.mxu1 %v2264_v43  ;;  %v5121_v58 = vadd.f32 %v4852_v26, %v759_v14  ;;  %v5132_v26 = vadd.f32 %v4859_v60, %v759_v14  ;;  %v6089_v60 = vld [vmem:[#allocation13_spill] sm:$0xff] }
 0x1af   : > { %6085 = vst [vmem:[#allocation64_spill] sm:$0xff] %v5107_v59  ;;  %v3592_v18 = vpop.eup %3591  ;;  %3611 = vpow2.f32 %v3141_v19  ;;  %v5123_v19 = vpop.f32.mrb[48].mxu0  ;;  %v5144_v14 = vadd.f32 %v4940_v37, %v6089_v60  ;;  %v6092_v37 = vld [vmem:[#allocation48_spill] sm:$0xff] }
 0x1b0   : > { %v3594_v20 = vpop.eup %3593  ;;  %v1820_v3 = vadd.f32 1.0, %v3592_v18  ;;  %3613 = vpow2.f32 %v3142_v13  ;;  %v5125_v18 = vpop.f32.mrb[49].mxu0 }
 0x1b1   : > { %v3596_v44 = vpop.eup %3595  ;;  %v1735_v39 = vadd.f32 1.0, %v3594_v20  ;;  %3615 = vpow2.f32 %v3053_v51  ;;  %6086 = vst [vmem:[#allocation65_spill] sm:$0xff] %v5125_v18  ;;  %v5129_v51 = vadd.f32 %v4932_v8, %v6081_v53  ;;  %v3391_v8 = vld [vmem:[#allocation5 + $0x4] ss:$16 sps:$4 sm:$0xff]  }
 0x1b2   : > { %v3598_v4 = vpop.eup %3597  ;;  %3617 = vrcp.f32 %v1820_v3  ;;  %v1821_v35 = vadd.f32 1.0, %v3596_v44  ;;  %v5134_v3 = vpop.f32.mrb[50].mxu0  ;;  %2606 = vmatprep.mubr.bf16.mxu1 %v3391_v8 }
 0x1b3   : > { %v3600_v43 = vpop.eup %3599  ;;  %3619 = vrcp.f32 %v1735_v39  ;;  %v1736_v42 = vadd.f32 1.0, %v3598_v4  ;;  %6087 = vst [vmem:[#allocation66_spill] sm:$0xff] %v5134_v3  ;;  %v764_v4 = vpop.permute.xlu0 %763  ;;  %v3054_v29 = vmul.f32 -1.442695, %v5129_v51 }
 0x1b4   : > { %v3602_v49 = vpop.eup %3601  ;;  %3621 = vrcp.f32 %v1821_v35  ;;  %v1822_v13 = vadd.f32 1.0, %v3600_v43  ;;  %v3143_v35 = vmul.f32 -1.442695, %v5121_v58  ;;  %v5137_v43 = vpop.f32.mrb[51].mxu0 }
 0x1b5   : > { %v3604_v5 = vpop.eup %3603  ;;  %3623 = vrcp.f32 %v1736_v42  ;;  %v1737_v20 = vadd.f32 1.0, %v3602_v49  ;;  %6088 = vst [vmem:[#allocation67_spill] sm:$0xff] %v5137_v43  ;;  %v5140_v49 = vadd.f32 %v4877_v57, %v764_v4 }
 0x1b6   : > { %v3606_v44 = vpop.eup %3605  ;;  %3625 = vrcp.f32 %v1822_v13  ;;  %v1823_v39 = vadd.f32 1.0, %v3604_v5  ;;  %v6090_v13 = vld [vmem:[#allocation47_spill] sm:$0xff]  ;;  %v5163_v8 = vpop.f32.mrb[52].mxu0 }
 0x1b7   : > { %v3608_v50 = vpop.eup %3607  ;;  %3627 = vrcp.f32 %v1737_v20  ;;  %v1824_v42 = vadd.f32 1.0, %v3606_v44  ;;  %v5147_v5 = vadd.f32 %v6090_v13, %v764_v4  ;;  %v3144_v20 = vmul.f32 -1.442695, %v5132_v26  ;;  %v769_v44 = vpop.permute.xlu1 %768  ;;  %6094 = vst [vmem:[#allocation47_spill] sm:$0xff] %v5163_v8 }
 0x1b8   : > { %v3610_v53 = vpop.eup %3609  ;;  %3629 = vrcp.f32 %v1823_v39  ;;  %v6091_v39 = vld [vmem:[#allocation55_spill] sm:$0xff]  ;;  %v5156_v24 = vadd.f32 %v6092_v37, %v769_v44  ;;  %v3145_v13 = vmul.f32 -1.442695, %v5140_v49  ;;  %v5169_v37 = vpop.f32.mrb[53].mxu0  ;;  %v2118_v43 = vmul.f32 %v3608_v50, %v4988_v31 }
 0x1b9   : > { %v3612_v56 = vpop.eup %3611  ;;  %3631 = vrcp.f32 %v1824_v42  ;;  %v1825_v28 = vadd.f32 1.0, %v3610_v53  ;;  %v5153_v32 = vadd.f32 %v6091_v39, %v6089_v60  ;;  %v5160_v42 = vmul.f32 %v5104_v2, %v4951_v15  ;;  %v6095_v39 = vld [vmem:[#allocation49_spill] sm:$0xff]  ;;  %6096 = vst [vmem:[#allocation55_spill] sm:$0xff] %v5169_v37  ;;  %v774_v2 = vpop.permute.xlu0 %773  ;;  %v6100_v37 = vld [vmem:[#allocation50_spill] sm:$0xff] }
 0x1ba   : > { %v3614_v57 = vpop.eup %3613  ;;  %v1826_v59 = vadd.f32 1.0, %v3612_v56  ;;  %3633 = vpow2.f32 %v3143_v35  ;;  %v3055_v60 = vmul.f32 -1.442695, %v5144_v14  ;;  %v5167_v41 = vadd.f32 %v6095_v39, %v769_v44 }
 0x1bb   : > { %v3616_v4 = vpop.eup %3615  ;;  %6093 = vst [vmem:[#allocation13_spill] sm:$0xff] %v5160_v42  ;;  %3635 = vrcp.f32 %v1825_v28  ;;  %v1827_v53 = vadd.f32 1.0, %v3614_v57  ;;  %v5173_v15 = vmul.f32 %v5112_v36, %v4961_v52  ;;  %v5179_v57 = vpop.f32.mrb[54].mxu0  ;;  %v3056_v44 = vmul.f32 -1.442695, %v5153_v32 }
 0x1bc   : > { %v3618_v56 = vpop.eup %3617  ;;  %3637 = vrcp.f32 %v1826_v59  ;;  %v1738_v35 = vadd.f32 1.0, %v3616_v4  ;;  %v3146_v59 = vmul.f32 -1.442695, %v5147_v5  ;;  %6099 = vst [vmem:[#allocation68_spill] sm:$0xff] %v5179_v57  ;;  %v3147_v39 = vmul.f32 -1.442695, %v5156_v24  ;;  %v5210_v50 = vpop.permute.xlu1 %778 }
 0x1bd   : > { %v3620_v11 = vpop.eup %3619  ;;  %6097 = vst [vmem:[#allocation48_spill] sm:$0xff] %v5173_v15  ;;  %v5176_v28 = vmul.f32 %v3618_v56, %v4992_v27  ;;  %3639 = vrcp.f32 %v1827_v53  ;;  %v5184_v8 = vadd.f32 %v6100_v37, %v774_v2  ;;  %v5186_v52 = vpop.f32.mrb[55].mxu0  ;;  %v6103_v56 = vld [vmem:[#allocation52_spill] sm:$0xff]  ;;  %v3148_v37 = vmul.f32 -1.442695, %v5167_v41  ;;  %v6104_v27 = vld [vmem:[#allocation14_spill] sm:$0xff] }
 0x1be   : > { %v3622_v4 = vpop.eup %3621  ;;  %3641 = vrcp.f32 %v1738_v35  ;;  %6101 = vst [vmem:[#allocation50_spill] sm:$0xff] %v5186_v52  ;;  %v5194_v57 = vadd.f32 %v6103_v56, %v774_v2  ;;  %v2119_v18 = vmul.f32 %v3620_v11, %v4997_v0 }
 0x1bf   : > { %6098 = vst [vmem:[#allocation49_spill] sm:$0xff] %v5176_v28  ;;  %v3624_v36 = vpop.eup %3623  ;;  %v5191_v53 = vmul.f32 %v3622_v4, %v5016_v9  ;;  %3643 = vpow2.f32 %v3054_v29  ;;  %v5202_v9 = vadd.f32 %v4970_v47, %v6104_v27  ;;  %v3149_v0 = vmul.f32 -1.442695, %v5184_v8  ;;  %v6106_v47 = vld [vmem:[#allocation53_spill] sm:$0xff] }
 0x1c0   : > { %v3626_v35 = vpop.eup %3625  ;;  %v2120_v3 = vmul.f32 %v3624_v36, %v5028_v54  ;;  %3645 = vpow2.f32 %v3144_v20  ;;  %v5215_v11 = vadd.f32 %v6106_v47, %v5210_v50 }
 0x1c1   : > { %6102 = vst [vmem:[#allocation69_spill] sm:$0xff] %v5191_v53  ;;  %v3628_v52 = vpop.eup %3627  ;;  %3647 = vpow2.f32 %v3055_v60  ;;  %v5207_v31 = vmul.f32 %v3626_v35, %v5021_v12  ;;  %v5217_v60 = vpop.f32.mrb[56].mxu0 }
 0x1c2   : > { %v3630_v2 = vpop.eup %3629  ;;  %v2266_v4 = vpack.c.bf16 %v2120_v3, %v2118_v43  ;;  %v2121_v54 = vmul.f32 %v3628_v52, %v5042_v22  ;;  %3649 = vpow2.f32 %v3145_v13  ;;  %v5225_v43 = vpop.f32.mrb[57].mxu0  ;;  %v3150_v52 = vmul.f32 -1.442695, %v5194_v57 }
 0x1c3   : > { %6105 = vst [vmem:[#allocation52_spill] sm:$0xff] %v5207_v31  ;;  %v3632_v20 = vpop.eup %3631  ;;  %3651 = vpow2.f32 %v3056_v44  ;;  %v5220_v3 = vmul.f32 %v3630_v2, %v5024_v10  ;;  %v5228_v56 = vpop.f32.mrb[58].mxu0 }
 0x1c4   : > { %v3634_v36 = vpop.eup %3633  ;;  %v5223_v12 = vmul.f32 %v3632_v20, %v5031_v21  ;;  %3653 = vpow2.f32 %v3146_v59  ;;  %v2267_v22 = vpack.c.bf16 %v2121_v54, %v2119_v18  ;;  %v3057_v21 = vmul.f32 -1.442695, %v5202_v9  ;;  %v5236_v18 = vpop.f32.mrb[59].mxu0 }
 0x1c5   : > { %6107 = vst [vmem:[#allocation14_spill] sm:$0xff] %v5220_v3  ;;  %v3636_v13 = vpop.eup %3635  ;;  %v1828_v44 = vadd.f32 1.0, %v3634_v36  ;;  %3655 = vpow2.f32 %v3147_v39  ;;  %v3151_v39 = vmul.f32 -1.442695, %v5215_v11 }
 0x1c6   : > { %6108 = vst [vmem:[#allocation53_spill] sm:$0xff] %v5223_v12  ;;  %v3638_v35 = vpop.eup %3637  ;;  %v5233_v10 = vmul.f32 %v3636_v13, %v5060_v1  ;;  %3657 = vpow2.f32 %v3148_v37  ;;  %2586 = vmatprep.subr.bf16.mxu1 %v2267_v22  ;;  %v5245_v13 = vpop.f32.mrb[60].mxu0  ;;  %v6111_v12 = vld [vmem:[#allocation56_spill] sm:$0xff] }
 0x1c7   : > { %v5238_v59 = vpop.eup %3639  ;;  %3659 = vrcp.f32 %v1828_v44  ;;  %2587 = vmatpush1.bf16.msra.mxu1 %v2266_v4  ;;  %v5249_v4 = vadd.f32 %v4978_v30, %v6104_v27  ;;  %v5258_v31 = vmul.f32 %v3638_v35, %v5075_v48  ;;  %v6114_v35 = vld [vmem:[#allocation16_spill] sm:$0xff] }
 0x1c8   : > { %6109 = vst [vmem:[#allocation70_spill] sm:$0xff] %v5233_v10  ;;  %v5241_v2 = vpop.eup %3641  ;;  %3661 = vpow2.f32 %v3149_v0  ;;  %v5251_v0 = vpop.f32.mrb[61].mxu0 }
 0x1c9   : > { %v3644_v1 = vpop.eup %3643  ;;  %3663 = vpow2.f32 %v3150_v52  ;;  %v5253_v29 = vpop.f32.mrb[62].mxu0  ;;  %6110 = vst [vmem:[#allocation71_spill] sm:$0xff] %v5258_v31  ;;  %v3058_v27 = vmul.f32 -1.442695, %v5249_v4 }
 0x1ca   : > { %v3646_v37 = vpop.eup %3645  ;;  %v1739_v20 = vadd.f32 1.0, %v3644_v1  ;;  %3665 = vpow2.f32 %v3057_v21 }
 0x1cb   : > { %v3648_v36 = vpop.eup %3647  ;;  %v1829_v22 = vadd.f32 1.0, %v3646_v37  ;;  %3667 = vpow2.f32 %v3151_v39  ;;  %v5255_v39 = vpop.f32.mrb[63].mxu0 }
 0x1cc   : > { %v3650_v44 = vpop.eup %3649  ;;  %3669 = vrcp.f32 %v1739_v20  ;;  %v1740_v47 = vadd.f32 1.0, %v3648_v36 }
 0x1cd   : > { %v3652_v54 = vpop.eup %3651  ;;  %3671 = vrcp.f32 %v1829_v22  ;;  %v1830_v52 = vadd.f32 1.0, %v3650_v44 }
 0x1ce   : > { %v3654_v21 = vpop.eup %3653  ;;  %3673 = vrcp.f32 %v1740_v47  ;;  %v1741_v1 = vadd.f32 1.0, %v3652_v54  ;;  %v5263_v47 = vadd.f32 %v6111_v12, %v5210_v50  ;;  %v6112_v54 = vld [vmem:[#allocation15_spill] sm:$0xff]  ;;  %v6115_v12 = vld [vmem:[#allocation17_spill] sm:$0xff] }
 0x1cf   : > { %v3656_v37 = vpop.eup %3655  ;;  %3675 = vrcp.f32 %v1830_v52  ;;  %v1831_v20 = vadd.f32 1.0, %v3654_v21  ;;  %v5267_v3 = vadd.f32 %v4980_v25, %v6112_v54  ;;  %v5274_v48 = vadd.f32 %v4984_v6, %v6112_v54 }
 0x1d0   : > { %v3658_v36 = vpop.eup %3657  ;;  %3677 = vrcp.f32 %v1741_v1  ;;  %v1832_v30 = vadd.f32 1.0, %v3656_v37  ;;  %v5278_v1 = vadd.f32 %v4999_v7, %v6114_v35  ;;  %v5282_v25 = vadd.f32 %v5006_v62, %v6114_v35 }
 0x1d1   : > { %v3660_v22 = vpop.eup %3659  ;;  %3679 = vrcp.f32 %v1831_v20  ;;  %v1833_v44 = vadd.f32 1.0, %v3658_v36  ;;  %v5288_v20 = vpop.f32.mrb[64].mxu0  ;;  %v5294_v7 = vadd.f32 %v5018_v61, %v6115_v12  ;;  %v3059_v54 = vmul.f32 -1.442695, %v5267_v3 }
 0x1d2   : > { %v3662_v52 = vpop.eup %3661  ;;  %v5270_v21 = vmul.f32 %v3660_v22, %v5121_v58  ;;  %3681 = vrcp.f32 %v1832_v30  ;;  %v5286_v58 = vadd.f32 %v5012_v33, %v6115_v12  ;;  %v5296_v22 = vpop.f32.mrb[65].mxu0  ;;  %v3152_v33 = vmul.f32 -1.442695, %v5263_v47 }
 0x1d3   : > { %v3664_v37 = vpop.eup %3663  ;;  %3683 = vrcp.f32 %v1833_v44  ;;  %v1834_v50 = vadd.f32 1.0, %v3662_v52  ;;  %v5300_v52 = vpop.f32.mrb[66].mxu0  ;;  %v3060_v61 = vmul.f32 -1.442695, %v5274_v48 }
 0x1d4   : > { %6113 = vst [vmem:[#allocation56_spill] sm:$0xff] %v5270_v21  ;;  %v3666_v36 = vpop.eup %3665  ;;  %v1835_v30 = vadd.f32 1.0, %v3664_v37  ;;  %3685 = vpow2.f32 %v3058_v27  ;;  %v5304_v37 = vmul.f32 %v5238_v59, %v5078_v38  ;;  %v5307_v12 = vpop.f32.mrb[67].mxu0  ;;  %v3063_v31 = vmul.f32 -1.442695, %v5286_v58  ;;  %v6118_v59 = vld [vmem:[#allocation18_spill] sm:$0xff] }
 0x1d5   : > { %v3668_v62 = vpop.eup %3667  ;;  %3687 = vrcp.f32 %v1834_v50  ;;  %v1742_v44 = vadd.f32 1.0, %v3666_v36  ;;  %v3061_v50 = vmul.f32 -1.442695, %v5278_v1  ;;  %v3062_v36 = vmul.f32 -1.442695, %v5282_v25 }
 0x1d6   : > { %v3670_v35 = vpop.eup %3669  ;;  %6116 = vst [vmem:[#allocation15_spill] sm:$0xff] %v5304_v37  ;;  %3689 = vrcp.f32 %v1835_v30  ;;  %v1836_v27 = vadd.f32 1.0, %v3668_v62  ;;  %v3064_v38 = vmul.f32 -1.442695, %v5294_v7  ;;  %v5318_v30 = vadd.f32 %v5046_v45, %v6118_v59 }
 0x1d7   : > { %v3672_v6 = vpop.eup %3671  ;;  %3691 = vrcp.f32 %v1742_v44  ;;  %v2122_v44 = vmul.f32 %v5241_v2, %v5082_v23  ;;  %v5325_v28 = vadd.f32 %v5055_v40, %v6118_v59  ;;  %v5338_v40 = vpop.f32.mrb[68].mxu0 }
 0x1d8   : > { %v3674_v21 = vpop.eup %3673  ;;  %v5313_v10 = vmul.f32 %v3672_v6, %v5132_v26  ;;  %3693 = vrcp.f32 %v1836_v27  ;;  %v2123_v6 = vmul.f32 %v3670_v35, %v5129_v51  ;;  %v6119_v27 = vld [vmem:[#allocation19_spill] sm:$0xff]  ;;  %v3065_v51 = vmul.f32 -1.442695, %v5318_v30 }
 0x1d9   : > { %v3676_v62 = vpop.eup %3675  ;;  %v2124_v42 = vmul.f32 %v3674_v21, %v5144_v14  ;;  %3695 = vpow2.f32 %v3152_v33  ;;  %v5330_v15 = vadd.f32 %v5062_v63, %v6119_v27  ;;  %v5343_v63 = vadd.f32 %v5070_v34, %v6119_v27  ;;  %v6121_v33 = vld [vmem:[#allocation20_spill] sm:$0xff] }
 0x1da   : > { %6117 = vst [vmem:[#allocation16_spill] sm:$0xff] %v5313_v10  ;;  %v3678_v26 = vpop.eup %3677  ;;  %3697 = vpow2.f32 %v3059_v54  ;;  %v5335_v14 = vmul.f32 %v3676_v62, %v5140_v49  ;;  %v5347_v54 = vadd.f32 %v5093_v55, %v6121_v33  ;;  %v3066_v55 = vmul.f32 -1.442695, %v5325_v28  ;;  %v6138_v10 = vld [vmem:[#allocation24_spill] sm:$0xff] }
 0x1db   : > { %v3680_v53 = vpop.eup %3679  ;;  %v2268_v23 = vpack.c.bf16 %v2124_v42, %v2122_v44  ;;  %v2125_v2 = vmul.f32 %v3678_v26, %v5153_v32  ;;  %3699 = vpow2.f32 %v3060_v61  ;;  %v5349_v42 = vpop.f32.mrb[69].mxu0 }
 0x1dc   : > { %6120 = vst [vmem:[#allocation17_spill] sm:$0xff] %v5335_v14  ;;  %v3682_v21 = vpop.eup %3681  ;;  %3701 = vpow2.f32 %v3061_v50  ;;  %v5352_v32 = vmul.f32 %v3680_v53, %v5147_v5  ;;  %v5357_v50 = vpop.f32.mrb[70].mxu0 }
 0x1dd   : > { %v3684_v49 = vpop.eup %3683  ;;  %v5355_v35 = vmul.f32 %v3682_v21, %v5156_v24  ;;  %3703 = vpow2.f32 %v3062_v36  ;;  %v2269_v61 = vpack.c.bf16 %v2125_v2, %v2123_v6  ;;  %v5363_v62 = vpop.f32.mrb[71].mxu0  ;;  %v3067_v24 = vmul.f32 -1.442695, %v5330_v15 }
 0x1de   : > { %6122 = vst [vmem:[#allocation18_spill] sm:$0xff] %v5352_v32  ;;  %v3686_v59 = vpop.eup %3685  ;;  %v5360_v34 = vmul.f32 %v3684_v49, %v5167_v41  ;;  %3705 = vpow2.f32 %v3063_v31  ;;  %v3068_v41 = vmul.f32 -1.442695, %v5343_v63  ;;  %v3069_v6 = vmul.f32 -1.442695, %v5347_v54 }
 0x1df   : > { %6123 = vst [vmem:[#allocation19_spill] sm:$0xff] %v5355_v35  ;;  %v3688_v44 = vpop.eup %3687  ;;  %v1743_v53 = vadd.f32 1.0, %v3686_v59  ;;  %3707 = vpow2.f32 %v3064_v38  ;;  %2588 = vmatprep.subr.bf16.mxu1 %v2269_v61 }
 0x1e0   : > { %6124 = vst [vmem:[#allocation20_spill] sm:$0xff] %v5360_v34  ;;  %v5368_v36 = vpop.eup %3689  ;;  %3709 = vpow2.f32 %v3065_v51  ;;  %2589 = vmatpush1.bf16.msra.mxu1 %v2268_v23  ;;  %v5374_v26 = vmul.f32 %v3688_v44, %v5184_v8  ;;  %v5382_v51 = vpop.f32.mrb[72].mxu0 }
 0x1e1   : > { %v5371_v31 = vpop.eup %3691  ;;  %3711 = vrcp.f32 %v1743_v53  ;;  %v5384_v8 = vpop.f32.mrb[73].mxu0 }
 0x1e2   : > { %6125 = vst [vmem:[#allocation72_spill] sm:$0xff] %v5374_v26  ;;  %v3694_v27 = vpop.eup %3693  ;;  %3713 = vpow2.f32 %v3066_v55  ;;  %v5388_v53 = vpop.f32.mrb[74].mxu0 }
 0x1e3   : > { %v3696_v2 = vpop.eup %3695  ;;  %v5380_v21 = vmul.f32 %v3694_v27, %v5215_v11  ;;  %3715 = vpow2.f32 %v3067_v24  ;;  %v5392_v24 = vadd.f32 %v5102_v16, %v6121_v33  ;;  %v5394_v27 = vpop.f32.mrb[75].mxu0 }
 0x1e4   : > { %v3698_v23 = vpop.eup %3697  ;;  %v1837_v49 = vadd.f32 1.0, %v3696_v2  ;;  %3717 = vpow2.f32 %v3068_v41 }
 0x1e5   : > { %6126 = vst [vmem:[#allocation73_spill] sm:$0xff] %v5380_v21  ;;  %v3700_v61 = vpop.eup %3699  ;;  %v1744_v44 = vadd.f32 1.0, %v3698_v23  ;;  %3719 = vpow2.f32 %v3069_v6  ;;  %v6127_v23 = vld [vmem:[#allocation21_spill] sm:$0xff]  ;;  %v3070_v16 = vmul.f32 -1.442695, %v5392_v24 }
 0x1e6   : > { %v3702_v55 = vpop.eup %3701  ;;  %3721 = vrcp.f32 %v1837_v49  ;;  %v1745_v11 = vadd.f32 1.0, %v3700_v61  ;;  %v5398_v45 = vadd.f32 %v5110_v46, %v6127_v23  ;;  %v5403_v33 = vadd.f32 %v5116_v17, %v6127_v23  ;;  %v6132_v23 = vld [vmem:[#allocation23_spill] sm:$0xff] }
 0x1e7   : > { %v3704_v41 = vpop.eup %3703  ;;  %3723 = vrcp.f32 %v1744_v44  ;;  %v1746_v2 = vadd.f32 1.0, %v3702_v55 }
 0x1e8   : > { %v3706_v5 = vpop.eup %3705  ;;  %3725 = vrcp.f32 %v1745_v11  ;;  %v1747_v38 = vadd.f32 1.0, %v3704_v41  ;;  %v6128_v11 = vld [vmem:[#allocation22_spill] sm:$0xff] }
 0x1e9   : > { %v3708_v59 = vpop.eup %3707  ;;  %3727 = vrcp.f32 %v1746_v2  ;;  %v1748_v6 = vadd.f32 1.0, %v3706_v5  ;;  %v5407_v41 = vadd.f32 %v5123_v19, %v6128_v11  ;;  %v5409_v5 = vpop.f32.mrb[76].mxu0 }
 0x1ea   : > { %v3710_v49 = vpop.eup %3709  ;;  %3729 = vrcp.f32 %v1747_v38  ;;  %v1749_v61 = vadd.f32 1.0, %v3708_v59  ;;  %6129 = vst [vmem:[#allocation21_spill] sm:$0xff] %v5409_v5  ;;  %v6130_v38 = vld [vmem:[#allocation65_spill] sm:$0xff]  ;;  %v5415_v2 = vpop.f32.mrb[77].mxu0 }
 0x1eb   : > { %v3712_v44 = vpop.eup %3711  ;;  %3731 = vrcp.f32 %v1748_v6  ;;  %v1750_v55 = vadd.f32 1.0, %v3710_v49  ;;  %v5413_v59 = vadd.f32 %v6130_v38, %v6128_v11  ;;  %6131 = vst [vmem:[#allocation22_spill] sm:$0xff] %v5415_v2  ;;  %v3071_v6 = vmul.f32 -1.442695, %v5398_v45  ;;  %v6133_v49 = vld [vmem:[#allocation66_spill] sm:$0xff]  ;;  %v5422_v19 = vpop.f32.mrb[78].mxu0 }
 0x1ec   : > { %v3714_v46 = vpop.eup %3713  ;;  %3733 = vrcp.f32 %v1749_v61  ;;  %v5420_v21 = vadd.f32 %v6133_v49, %v6132_v23  ;;  %6134 = vst [vmem:[#allocation65_spill] sm:$0xff] %v5422_v19  ;;  %v3072_v61 = vmul.f32 -1.442695, %v5403_v33  ;;  %v6135_v11 = vld [vmem:[#allocation67_spill] sm:$0xff]  ;;  %v5429_v32 = vpop.f32.mrb[79].mxu0 }
 0x1ed   : > { %v3716_v26 = vpop.eup %3715  ;;  %3735 = vrcp.f32 %v1750_v55  ;;  %v1751_v17 = vadd.f32 1.0, %v3714_v46  ;;  %v5427_v38 = vadd.f32 %v6135_v11, %v6132_v23  ;;  %6136 = vst [vmem:[#allocation23_spill] sm:$0xff] %v5429_v32  ;;  %v5433_v46 = vmul.f32 %v5368_v36, %v5194_v57  ;;  %v6139_v19 = vld [vmem:[#allocation47_spill] sm:$0xff] }
 0x1ee   : > { %v3718_v14 = vpop.eup %3717  ;;  %v1752_v35 = vadd.f32 1.0, %v3716_v26  ;;  %3737 = vpow2.f32 %v3070_v16  ;;  %v3073_v34 = vmul.f32 -1.442695, %v5407_v41  ;;  %v3074_v16 = vmul.f32 -1.442695, %v5413_v59 }
 0x1ef   : > { %v3720_v55 = vpop.eup %3719  ;;  %6137 = vst [vmem:[#allocation66_spill] sm:$0xff] %v5433_v46  ;;  %3739 = vrcp.f32 %v1751_v17  ;;  %v1753_v49 = vadd.f32 1.0, %v3718_v14  ;;  %v5439_v23 = vadd.f32 %v6139_v19, %v6138_v10  ;;  %v3075_v57 = vmul.f32 -1.442695, %v5420_v21  ;;  %v6141_v14 = vld [vmem:[#allocation55_spill] sm:$0xff] }
 0x1f0   : > { %v3722_v37 = vpop.eup %3721  ;;  %3741 = vrcp.f32 %v1752_v35  ;;  %v1754_v26 = vadd.f32 1.0, %v3720_v55  ;;  %v5447_v36 = vadd.f32 %v6141_v14, %v6138_v10  ;;  %v2126_v35 = vmul.f32 %v5371_v31, %v5202_v9  ;;  %v6143_v31 = vld [vmem:[#allocation68_spill] sm:$0xff] }
 0x1f1   : > { %v3724_v11 = vpop.eup %3723  ;;  %v5442_v32 = vmul.f32 %v3722_v37, %v5263_v47  ;;  %3743 = vrcp.f32 %v1753_v49  ;;  %v3076_v19 = vmul.f32 -1.442695, %v5427_v38  ;;  %v2127_v47 = vmul.f32 %v3712_v44, %v5249_v4  ;;  %v5455_v49 = vpop.f32.mrb[80].mxu0 }
 0x1f2   : > { %v3726_v17 = vpop.eup %3725  ;;  %v2128_v55 = vmul.f32 %v3724_v11, %v5267_v3  ;;  %3745 = vrcp.f32 %v1754_v26  ;;  %v3077_v9 = vmul.f32 -1.442695, %v5439_v23  ;;  %v6142_v3 = vld [vmem:[#allocation25_spill] sm:$0xff]  ;;  %v5464_v11 = vpop.f32.mrb[81].mxu0  ;;  %v3078_v44 = vmul.f32 -1.442695, %v5447_v36 }
 0x1f3   : > { %6140 = vst [vmem:[#allocation67_spill] sm:$0xff] %v5442_v32  ;;  %v3728_v2 = vpop.eup %3727  ;;  %v2129_v37 = vmul.f32 %v3726_v17, %v5274_v48  ;;  %3747 = vpow2.f32 %v3071_v6  ;;  %v5462_v26 = vadd.f32 %v6143_v31, %v6142_v3  ;;  %v6144_v6 = vld [vmem:[#allocation50_spill] sm:$0xff]  ;;  %v5471_v10 = vpop.f32.mrb[82].mxu0 }
 0x1f4   : > { %v3730_v14 = vpop.eup %3729  ;;  %v2270_v5 = vpack.c.bf16 %v2128_v55, %v2126_v35  ;;  %3749 = vpow2.f32 %v3072_v61  ;;  %v5469_v17 = vadd.f32 %v6144_v6, %v6142_v3  ;;  %v2130_v35 = vmul.f32 %v3728_v2, %v5278_v1  ;;  %v6145_v31 = vld [vmem:[#allocation26_spill] sm:$0xff] }
 0x1f5   : > { %v3732_v4 = vpop.eup %3731  ;;  %3751 = vpow2.f32 %v3073_v34  ;;  %v2271_v48 = vpack.c.bf16 %v2129_v37, %v2127_v47  ;;  %v5477_v46 = vadd.f32 %v5217_v60, %v6145_v31  ;;  %v5479_v34 = vpop.f32.mrb[83].mxu0  ;;  %v2131_v37 = vmul.f32 %v3730_v14, %v5282_v25 }
 0x1f6   : > { %v3734_v61 = vpop.eup %3733  ;;  %v2132_v55 = vmul.f32 %v3732_v4, %v5286_v58  ;;  %3753 = vpow2.f32 %v3074_v16  ;;  %v5485_v6 = vadd.f32 %v5225_v43, %v6145_v31  ;;  %v3079_v60 = vmul.f32 -1.442695, %v5462_v26 }
 0x1f7   : > { %v3736_v47 = vpop.eup %3735  ;;  %v2133_v3 = vmul.f32 %v3734_v61, %v5294_v7  ;;  %3755 = vpow2.f32 %v3075_v57  ;;  %2590 = vmatprep.subr.bf16.mxu1 %v2271_v48  ;;  %v3080_v4 = vmul.f32 -1.442695, %v5469_v17  ;;  %v3081_v7 = vmul.f32 -1.442695, %v5477_v46 }
 0x1f8   : > { %v3738_v1 = vpop.eup %3737  ;;  %v2272_v58 = vpack.c.bf16 %v2132_v55, %v2130_v35  ;;  %3757 = vpow2.f32 %v3076_v19  ;;  %2591 = vmatpush1.bf16.msra.mxu1 %v2270_v5  ;;  %v2134_v43 = vmul.f32 %v3736_v47, %v5318_v30  ;;  %v3082_v5 = vmul.f32 -1.442695, %v5485_v6  ;;  %v5493_v19 = vpop.f32.mrb[84].mxu0 }
 0x1f9   : > { %v3740_v2 = vpop.eup %3739  ;;  %v1755_v16 = vadd.f32 1.0, %v3738_v1  ;;  %3759 = vpow2.f32 %v3077_v9  ;;  %v2273_v25 = vpack.c.bf16 %v2133_v3, %v2131_v37 }
 0x1fa   : > { %v3742_v14 = vpop.eup %3741  ;;  %3761 = vpow2.f32 %v3078_v44  ;;  %v2135_v9 = vmul.f32 %v3740_v2, %v5325_v28  ;;  %v5499_v44 = vpop.f32.mrb[85].mxu0 }
 0x1fb   : > { %v3744_v57 = vpop.eup %3743  ;;  %v2136_v48 = vmul.f32 %v3742_v14, %v5330_v15  ;;  %3763 = vrcp.f32 %v1755_v16  ;;  %2592 = vmatprep.subr.bf16.mxu1 %v2273_v25  ;;  %v5501_v15 = vpop.f32.mrb[86].mxu0 }
 0x1fc   : > { %v5495_v61 = vpop.eup %3745  ;;  %v2137_v35 = vmul.f32 %v3744_v57, %v5343_v63  ;;  %3765 = vpow2.f32 %v3079_v60  ;;  %2593 = vmatpush1.bf16.msra.mxu1 %v2272_v58  ;;  %v5503_v3 = vpop.f32.mrb[87].mxu0  ;;  %v6146_v58 = vld [vmem:[#allocation27_spill] sm:$0xff] }
 0x1fd   : > { %v3748_v55 = vpop.eup %3747  ;;  %v2274_v30 = vpack.c.bf16 %v2136_v48, %v2134_v43  ;;  %3767 = vpow2.f32 %v3080_v4  ;;  %v5507_v60 = vadd.f32 %v5228_v56, %v6146_v58  ;;  %v5511_v43 = vadd.f32 %v5236_v18, %v6146_v58  ;;  %v6149_v58 = vld [vmem:[#allocation29_spill] sm:$0xff] }
 0x1fe   : > { %v3750_v31 = vpop.eup %3749  ;;  %v1756_v47 = vadd.f32 1.0, %v3748_v55  ;;  %3769 = vpow2.f32 %v3081_v7  ;;  %v2275_v37 = vpack.c.bf16 %v2137_v35, %v2135_v9  ;;  %v5513_v48 = vpop.f32.mrb[88].mxu0  ;;  %v6147_v35 = vld [vmem:[#allocation28_spill] sm:$0xff] }
 0x1ff   : > { %v3752_v1 = vpop.eup %3751  ;;  %v1757_v16 = vadd.f32 1.0, %v3750_v31  ;;  %3771 = vpow2.f32 %v3082_v5  ;;  %v3083_v9 = vmul.f32 -1.442695, %v5507_v60  ;;  %v5518_v55 = vadd.f32 %v5245_v13, %v6147_v35 }
 0x200   : > { %v3754_v28 = vpop.eup %3753  ;;  %3773 = vrcp.f32 %v1756_v47  ;;  %v1758_v63 = vadd.f32 1.0, %v3752_v1  ;;  %2594 = vmatprep.subr.bf16.mxu1 %v2275_v37  ;;  %v5526_v1 = vadd.f32 %v5251_v0, %v6147_v35  ;;  %v3084_v13 = vmul.f32 -1.442695, %v5511_v43 }
 0x201   : > { %v3756_v2 = vpop.eup %3755  ;;  %3775 = vrcp.f32 %v1757_v16  ;;  %v1759_v4 = vadd.f32 1.0, %v3754_v28  ;;  %2595 = vmatpush1.bf16.msra.mxu1 %v2274_v30  ;;  %v5520_v30 = vpop.f32.mrb[89].mxu0  ;;  %v5538_v0 = vadd.f32 %v5255_v39, %v6149_v58 }
 0x202   : > { %v3758_v25 = vpop.eup %3757  ;;  %3777 = vrcp.f32 %v1758_v63  ;;  %v1760_v14 = vadd.f32 1.0, %v3756_v2  ;;  %v5522_v37 = vpop.f32.mrb[90].mxu0  ;;  %v5533_v2 = vadd.f32 %v5253_v29, %v6149_v58 }
 0x203   : > { %v3760_v7 = vpop.eup %3759  ;;  %3779 = vrcp.f32 %v1759_v4  ;;  %v1761_v57 = vadd.f32 1.0, %v3758_v25  ;;  %v5528_v16 = vpop.f32.mrb[91].mxu0 }
 0x204   : > { %v3762_v5 = vpop.eup %3761  ;;  %3781 = vrcp.f32 %v1760_v14  ;;  %v1762_v56 = vadd.f32 1.0, %v3760_v7  ;;  %6148 = vst [vmem:[#allocation24_spill] sm:$0xff] %v5528_v16  ;;  %v3085_v14 = vmul.f32 -1.442695, %v5518_v55  ;;  %v3087_v58 = vmul.f32 -1.442695, %v5533_v2 }
 0x205   : > { %v3764_v31 = vpop.eup %3763  ;;  %3783 = vrcp.f32 %v1761_v57  ;;  %v1763_v47 = vadd.f32 1.0, %v3762_v5  ;;  %v6150_v5 = vld [vmem:[#allocation30_spill] sm:$0xff] }
 0x206   : > { %v3766_v18 = vpop.eup %3765  ;;  %3785 = vrcp.f32 %v1762_v56  ;;  %v5542_v56 = vadd.f32 %v5288_v20, %v6150_v5  ;;  %v5546_v29 = vadd.f32 %v5296_v22, %v6150_v5  ;;  %v5557_v22 = vpop.f32.mrb[92].mxu0 }
 0x207   : > { %v3768_v28 = vpop.eup %3767  ;;  %3787 = vrcp.f32 %v1763_v47  ;;  %v1764_v63 = vadd.f32 1.0, %v3766_v18  ;;  %v3086_v47 = vmul.f32 -1.442695, %v5526_v1  ;;  %v6151_v18 = vld [vmem:[#allocation31_spill] sm:$0xff]  ;;  %v5562_v5 = vpop.f32.mrb[93].mxu0 }
 0x208   : > { %v3770_v4 = vpop.eup %3769  ;;  %v1765_v25 = vadd.f32 1.0, %v3768_v28  ;;  %3789 = vpow2.f32 %v3083_v9  ;;  %v5551_v39 = vadd.f32 %v5300_v52, %v6151_v18  ;;  %v3088_v52 = vmul.f32 -1.442695, %v5538_v0 }
 0x209   : > { %v3772_v7 = vpop.eup %3771  ;;  %3791 = vrcp.f32 %v1764_v63  ;;  %v1766_v57 = vadd.f32 1.0, %v3770_v4  ;;  %v2138_v63 = vmul.f32 %v5495_v61, %v5347_v54  ;;  %v3090_v54 = vmul.f32 -1.442695, %v5546_v29  ;;  %v5566_v61 = vpop.f32.mrb[94].mxu0 }
 0x20a   : > { %v3774_v35 = vpop.eup %3773  ;;  %3793 = vrcp.f32 %v1765_v25  ;;  %v1767_v9 = vadd.f32 1.0, %v3772_v7  ;;  %v2139_v25 = vmul.f32 %v3764_v31, %v5392_v24  ;;  %v3091_v24 = vmul.f32 -1.442695, %v5551_v39  ;;  %v5573_v31 = vpop.f32.mrb[95].mxu0 }
 0x20b   : > { %v3776_v28 = vpop.eup %3775  ;;  %v2140_v20 = vmul.f32 %v3774_v35, %v5398_v45  ;;  %3795 = vrcp.f32 %v1766_v57  ;;  %v3089_v45 = vmul.f32 -1.442695, %v5542_v56 }
 0x20c   : > { %v3778_v4 = vpop.eup %3777  ;;  %v2141_v7 = vmul.f32 %v3776_v28, %v5403_v33  ;;  %3797 = vrcp.f32 %v1767_v9  ;;  %v5571_v33 = vadd.f32 %v5307_v12, %v6151_v18 }
 0x20d   : > { %v3780_v32 = vpop.eup %3779  ;;  %v2276_v16 = vpack.c.bf16 %v2140_v20, %v2138_v63  ;;  %3799 = vpow2.f32 %v3084_v13  ;;  %v2142_v13 = vmul.f32 %v3778_v4, %v5407_v41  ;;  %v6152_v63 = vld [vmem:[#allocation32_spill] sm:$0xff] }
 0x20e   : > { %v3782_v57 = vpop.eup %3781  ;;  %3801 = vpow2.f32 %v3085_v14  ;;  %v2277_v35 = vpack.c.bf16 %v2141_v7, %v2139_v25  ;;  %v5579_v20 = vadd.f32 %v5338_v40, %v6152_v63  ;;  %v2143_v25 = vmul.f32 %v3780_v32, %v5413_v59 }
 0x20f   : > { %v3784_v9 = vpop.eup %3783  ;;  %v2144_v28 = vmul.f32 %v3782_v57, %v5420_v21  ;;  %3803 = vpow2.f32 %v3086_v47  ;;  %v5585_v12 = vadd.f32 %v5349_v42, %v6152_v63  ;;  %v6153_v21 = vld [vmem:[#allocation33_spill] sm:$0xff]  ;;  %v3092_v32 = vmul.f32 -1.442695, %v5571_v33 }
 0x210   : > { %v3786_v14 = vpop.eup %3785  ;;  %v2145_v7 = vmul.f32 %v3784_v9, %v5427_v38  ;;  %3805 = vpow2.f32 %v3087_v58  ;;  %2596 = vmatprep.subr.bf16.mxu1 %v2277_v35  ;;  %v5589_v47 = vadd.f32 %v5357_v50, %v6153_v21  ;;  %v3093_v4 = vmul.f32 -1.442695, %v5579_v20 }
 0x211   : > { %v3788_v18 = vpop.eup %3787  ;;  %v2278_v41 = vpack.c.bf16 %v2144_v28, %v2142_v13  ;;  %3807 = vpow2.f32 %v3088_v52  ;;  %2597 = vmatpush1.bf16.msra.mxu1 %v2276_v16  ;;  %v2146_v57 = vmul.f32 %v3786_v14, %v5439_v23  ;;  %v3094_v50 = vmul.f32 -1.442695, %v5585_v12 }
 0x212   : > { %v3790_v40 = vpop.eup %3789  ;;  %3809 = vpow2.f32 %v3089_v45  ;;  %v2279_v59 = vpack.c.bf16 %v2145_v7, %v2143_v25  ;;  %v2147_v45 = vmul.f32 %v3788_v18, %v5447_v36  ;;  %v5601_v25 = vadd.f32 %v5363_v62, %v6153_v21  ;;  %v6154_v62 = vld [vmem:[#allocation34_spill] sm:$0xff] }
 0x213   : > { %v3792_v38 = vpop.eup %3791  ;;  %v1768_v58 = vadd.f32 1.0, %v3790_v40  ;;  %3811 = vpow2.f32 %v3090_v54  ;;  %v3095_v54 = vmul.f32 -1.442695, %v5589_v47  ;;  %v5606_v21 = vadd.f32 %v5382_v51, %v6154_v62 }
 0x214   : > { %v3794_v42 = vpop.eup %3793  ;;  %v2148_v52 = vmul.f32 %v3792_v38, %v5462_v26  ;;  %3813 = vpow2.f32 %v3091_v24  ;;  %2598 = vmatprep.subr.bf16.mxu1 %v2279_v59 }
 0x215   : > { %v3796_v16 = vpop.eup %3795  ;;  %v2149_v35 = vmul.f32 %v3794_v42, %v5469_v17  ;;  %3815 = vrcp.f32 %v1768_v58  ;;  %2599 = vmatpush1.bf16.msra.mxu1 %v2278_v41 }
 0x216   : > { %v3798_v9 = vpop.eup %3797  ;;  %v2280_v13 = vpack.c.bf16 %v2148_v52, %v2146_v57  ;;  %3817 = vpow2.f32 %v3092_v32  ;;  %v5610_v52 = vadd.f32 %v5384_v8, %v6154_v62  ;;  %v6157_v8 = vld [vmem:[#allocation21_spill] sm:$0xff] }
 0x217   : > { %v3800_v28 = vpop.eup %3799  ;;  %3819 = vpow2.f32 %v3093_v4  ;;  %v2281_v23 = vpack.c.bf16 %v2149_v35, %v2147_v45  ;;  %v3096_v4 = vmul.f32 -1.442695, %v5601_v25  ;;  %v2150_v45 = vmul.f32 %v3796_v16, %v5477_v46 }
 0x218   : > { %v3802_v26 = vpop.eup %3801  ;;  %v1769_v24 = vadd.f32 1.0, %v3800_v28  ;;  %3821 = vpow2.f32 %v3094_v50 }
 0x219   : > { %v3804_v63 = vpop.eup %3803  ;;  %v1770_v14 = vadd.f32 1.0, %v3802_v26  ;;  %3823 = vpow2.f32 %v3095_v54  ;;  %2600 = vmatprep.subr.bf16.mxu1 %v2281_v23  ;;  %v6155_v54 = vld [vmem:[#allocation35_spill] sm:$0xff]  ;;  %v6156_v26 = vld [vmem:[#allocation36_spill] sm:$0xff] }
 0x21a   : > { %v3806_v36 = vpop.eup %3805  ;;  %3825 = vrcp.f32 %v1769_v24  ;;  %v1771_v17 = vadd.f32 1.0, %v3804_v63  ;;  %2601 = vmatpush1.bf16.msra.mxu1 %v2280_v13  ;;  %v5616_v13 = vadd.f32 %v5388_v53, %v6155_v54  ;;  %v5620_v51 = vadd.f32 %v5394_v27, %v6155_v54  ;;  %v6160_v27 = vld [vmem:[#allocation65_spill] sm:$0xff] }
 0x21b   : > { %v3808_v7 = vpop.eup %3807  ;;  %3827 = vrcp.f32 %v1770_v14  ;;  %v1772_v18 = vadd.f32 1.0, %v3806_v36  ;;  %v5624_v24 = vadd.f32 %v6157_v8, %v6156_v26 }
 0x21c   : > { %v3810_v41 = vpop.eup %3809  ;;  %3829 = vrcp.f32 %v1771_v17  ;;  %v1773_v40 = vadd.f32 1.0, %v3808_v7  ;;  %v3097_v17 = vmul.f32 -1.442695, %v5606_v21  ;;  %v6159_v7 = vld [vmem:[#allocation37_spill] sm:$0xff] }
 0x21d   : > { %v3812_v32 = vpop.eup %3811  ;;  %3831 = vrcp.f32 %v1772_v18  ;;  %v1774_v59 = vadd.f32 1.0, %v3810_v41  ;;  %v5633_v18 = vadd.f32 %v6160_v27, %v6159_v7  ;;  %v3101_v62 = vmul.f32 -1.442695, %v5624_v24 }
 0x21e   : > { %v3814_v38 = vpop.eup %3813  ;;  %3833 = vrcp.f32 %v1773_v40  ;;  %v1775_v58 = vadd.f32 1.0, %v3812_v32  ;;  %v3098_v32 = vmul.f32 -1.442695, %v5610_v52 }
 0x21f   : > { %v3816_v42 = vpop.eup %3815  ;;  %3835 = vrcp.f32 %v1774_v59  ;;  %v1776_v57 = vadd.f32 1.0, %v3814_v38  ;;  %v3099_v59 = vmul.f32 -1.442695, %v5616_v13 }
 0x220   : > { %v3818_v50 = vpop.eup %3817  ;;  %v2152_v35 = vmul.f32 %v3816_v42, %v5507_v60  ;;  %3837 = vrcp.f32 %v1775_v58  ;;  %v6158_v60 = vld [vmem:[#allocation22_spill] sm:$0xff]  ;;  %v2151_v58 = vmul.f32 %v3798_v9, %v5485_v6  ;;  %v3100_v42 = vmul.f32 -1.442695, %v5620_v51 }
 0x221   : > { %v3820_v28 = vpop.eup %3819  ;;  %3839 = vrcp.f32 %v1776_v57  ;;  %v1777_v23 = vadd.f32 1.0, %v3818_v50  ;;  %v5628_v14 = vadd.f32 %v6158_v60, %v6156_v26  ;;  %v3103_v6 = vmul.f32 -1.442695, %v5633_v18  ;;  %v6162_v9 = vld [vmem:[#allocation38_spill] sm:$0xff] }
 0x222   : > { %v3822_v63 = vpop.eup %3821  ;;  %v2282_v46 = vpack.c.bf16 %v2152_v35, %v2150_v45  ;;  %v1778_v16 = vadd.f32 1.0, %v3820_v28  ;;  %3841 = vpow2.f32 %v3096_v4  ;;  %v6161_v45 = vld [vmem:[#allocation23_spill] sm:$0xff] }
 0x223   : > { %v3824_v53 = vpop.eup %3823  ;;  %3843 = vrcp.f32 %v1777_v23  ;;  %v1779_v36 = vadd.f32 1.0, %v3822_v63  ;;  %v3102_v50 = vmul.f32 -1.442695, %v5628_v14  ;;  %v5644_v35 = vadd.f32 %v6161_v45, %v6159_v7 }
 0x224   : > { %v3826_v41 = vpop.eup %3825  ;;  %3845 = vrcp.f32 %v1778_v16  ;;  %v1780_v40 = vadd.f32 1.0, %v3824_v53  ;;  %v5655_v63 = vadd.f32 %v5464_v11, %v6162_v9 }
 0x225   : > { %v3828_v38 = vpop.eup %3827  ;;  %v2153_v4 = vmul.f32 %v3826_v41, %v5511_v43  ;;  %3847 = vrcp.f32 %v1779_v36  ;;  %v5649_v43 = vadd.f32 %v5455_v49, %v6162_v9  ;;  %v6163_v36 = vld [vmem:[#allocation39_spill] sm:$0xff] }
 0x226   : > { %v3830_v57 = vpop.eup %3829  ;;  %3849 = vrcp.f32 %v1780_v40  ;;  %v2154_v26 = vmul.f32 %v3828_v38, %v5518_v55  ;;  %v5661_v49 = vadd.f32 %v5471_v10, %v6163_v36  ;;  %v3389_v40 = vld [vmem:[#allocation5] ss:$16 sps:$4 sm:$0xff]  }
 0x227   : > { %v3832_v54 = vpop.eup %3831  ;;  %3851 = vpow2.f32 %v3097_v17  ;;  %v2283_v28 = vpack.c.bf16 %v2153_v4, %v2151_v58  ;;  %v2155_v60 = vmul.f32 %v3830_v57, %v5526_v1  ;;  %v5666_v1 = vadd.f32 %v5479_v34, %v6163_v36 }
 0x228   : > { %v3834_v23 = vpop.eup %3833  ;;  %v2156_v8 = vmul.f32 %v3832_v54, %v5533_v2  ;;  %3853 = vpow2.f32 %v3098_v32  ;;  %v3104_v2 = vmul.f32 -1.442695, %v5644_v35  ;;  %v3105_v10 = vmul.f32 -1.442695, %v5649_v43 }
 0x229   : > { %v3836_v16 = vpop.eup %3835  ;;  %v2157_v53 = vmul.f32 %v3834_v23, %v5538_v0  ;;  %3855 = vpow2.f32 %v3099_v59  ;;  %2602 = vmatprep.subr.bf16.mxu1 %v2283_v28  ;;  %v3106_v59 = vmul.f32 -1.442695, %v5655_v63  ;;  %v3107_v38 = vmul.f32 -1.442695, %v5661_v49 }
 0x22a   : > { %v3838_v17 = vpop.eup %3837  ;;  %v2284_v55 = vpack.c.bf16 %v2156_v8, %v2154_v26  ;;  %3857 = vpow2.f32 %v3100_v42  ;;  %2603 = vmatpush1.bf16.msra.mxu1 %v2282_v46  ;;  %v2158_v27 = vmul.f32 %v3836_v16, %v5542_v56  ;;  %v3108_v57 = vmul.f32 -1.442695, %v5666_v1  ;;  %v6164_v8 = vld [vmem:[#allocation40_spill] sm:$0xff] }
 0x22b   : > { %v3840_v7 = vpop.eup %3839  ;;  %3859 = vpow2.f32 %v3101_v62  ;;  %v2285_v11 = vpack.c.bf16 %v2157_v53, %v2155_v60  ;;  %v2159_v34 = vmul.f32 %v3838_v17, %v5546_v29  ;;  %v3394_v53 = vld [vmem:[#allocation5 + $0x20] ss:$16 sps:$4 sm:$0xff]  }
 0x22c   : > { %v3842_v0 = vpop.eup %3841  ;;  %v2160_v41 = vmul.f32 %v3840_v7, %v5551_v39  ;;  %3861 = vpow2.f32 %v3102_v50  ;;  %v3392_v39 = vld [vmem:[#allocation5 + $0x24] ss:$16 sps:$4 sm:$0xff]  }
 0x22d   : > { %v3844_v32 = vpop.eup %3843  ;;  %v1781_v46 = vadd.f32 1.0, %v3842_v0  ;;  %3863 = vpow2.f32 %v3103_v6  ;;  %2604 = vmatprep.subr.bf16.mxu1 %v2285_v11 }
 0x22e   : > { %v3846_v58 = vpop.eup %3845  ;;  %v2286_v4 = vpack.c.bf16 %v2160_v41, %v2158_v27  ;;  %v2161_v56 = vmul.f32 %v3844_v32, %v5571_v33  ;;  %3865 = vpow2.f32 %v3104_v2  ;;  %2605 = vmatpush1.bf16.msra.mxu1 %v2284_v55  ;;  %v3395_v55 = vld [vmem:[#allocation5 + $0x44] ss:$16 sps:$4 sm:$0xff]  }
 0x22f   : > { %v3848_v42 = vpop.eup %3847  ;;  %3867 = vrcp.f32 %v1781_v46  ;;  %v5677_v54 = vmul.f32 %v3846_v58, %v5579_v20 }
 0x230   : > { %v3850_v62 = vpop.eup %3849  ;;  %3869 = vpow2.f32 %v3105_v10  ;;  %v2287_v50 = vpack.c.bf16 %v2161_v56, %v2159_v34  ;;  %v5691_v10 = vadd.f32 %v5499_v44, %v6164_v8  ;;  %v2163_v32 = vmul.f32 %v3848_v42, %v5585_v12  ;;  %v6166_v44 = vld [vmem:[#allocation42_spill] sm:$0xff] }
 0x231   : > { %v3852_v45 = vpop.eup %3851  ;;  %v5680_v28 = vmul.f32 %v3850_v62, %v5589_v47  ;;  %3871 = vpow2.f32 %v3106_v59  ;;  %2607 = vmatmul.mubr.bf16.vlgmr.msra.gmra.mrb[32].mxu1 %v3389_v40  ;;  %v5686_v47 = vadd.f32 %v5493_v19, %v6164_v8  ;;  %v6165_v59 = vld [vmem:[#allocation41_spill] sm:$0xff]  ;;  %v5705_v56 = vadd.f32 %v5513_v48, %v6166_v44  ;;  %v6169_v8 = vld [vmem:[#allocation44_spill] sm:$0xff] }
 0x232   : > { %v3854_v29 = vpop.eup %3853  ;;  %v1782_v33 = vadd.f32 1.0, %v3852_v45  ;;  %3873 = vpow2.f32 %v3107_v38  ;;  %2687 = vmatprep.subr.bf16.mxu1 %v2287_v50  ;;  %2616 = vmatprep.mubr.bf16.mxu1 %v3392_v39  ;;  %v5697_v38 = vadd.f32 %v5501_v15, %v6165_v59  ;;  %v5709_v15 = vadd.f32 %v5520_v30, %v6166_v44  ;;  %v6167_v50 = vld [vmem:[#allocation43_spill] sm:$0xff]  ;;  %v3397_v45 = vld [vmem:[#allocation5 + $0x40] ss:$16 sps:$4 sm:$0xff]  }
 0x233   : > { %v3856_v6 = vpop.eup %3855  ;;  %v2288_v9 = vpack.c.bf16 %v5680_v28, %v5677_v54  ;;  %v1783_v23 = vadd.f32 1.0, %v3854_v29  ;;  %3875 = vpow2.f32 %v3108_v57  ;;  %2688 = vmatpush1.bf16.msra.mxu1 %v2286_v4  ;;  %v3109_v27 = vmul.f32 -1.442695, %v5686_v47  ;;  %v3398_v29 = vld [vmem:[#allocation5 + $0x64] ss:$16 sps:$4 sm:$0xff]  }
 0x234   : > { %v3858_v26 = vpop.eup %3857  ;;  %3877 = vrcp.f32 %v1782_v33  ;;  %v1784_v20 = vadd.f32 1.0, %v3856_v6  ;;  %v5701_v4 = vadd.f32 %v5503_v3, %v6165_v59  ;;  %v3110_v62 = vmul.f32 -1.442695, %v5691_v10  ;;  %v6168_v6 = vld [vmem:[#allocation24_spill] sm:$0xff] }
 0x235   : > { %v3860_v16 = vpop.eup %3859  ;;  %3879 = vrcp.f32 %v1783_v23  ;;  %v1785_v60 = vadd.f32 1.0, %v3858_v26  ;;  %v5714_v3 = vadd.f32 %v5522_v37, %v6167_v50  ;;  %v3111_v28 = vmul.f32 -1.442695, %v5697_v38 }
 0x236   : > { %v3862_v36 = vpop.eup %3861  ;;  %3881 = vrcp.f32 %v1784_v20  ;;  %v1786_v17 = vadd.f32 1.0, %v3860_v16  ;;  %v3112_v30 = vmul.f32 -1.442695, %v5701_v4  ;;  %v5720_v23 = vadd.f32 %v6168_v6, %v6167_v50 }
 0x237   : > { %v3864_v2 = vpop.eup %3863  ;;  %3883 = vrcp.f32 %v1785_v60  ;;  %v1787_v7 = vadd.f32 1.0, %v3862_v36  ;;  %v3113_v37 = vmul.f32 -1.442695, %v5705_v56  ;;  %v3114_v20 = vmul.f32 -1.442695, %v5709_v15 }
 0x238   : > { %v3866_v11 = vpop.eup %3865  ;;  %3885 = vrcp.f32 %v1786_v17  ;;  %v1788_v0 = vadd.f32 1.0, %v3864_v2  ;;  %v5726_v16 = vadd.f32 %v5557_v22, %v6169_v8 }
 0x239   : > { %v3868_v41 = vpop.eup %3867  ;;  %3887 = vrcp.f32 %v1787_v7  ;;  %v1789_v19 = vadd.f32 1.0, %v3866_v11  ;;  %2617 = vmatmul.mubr.bf16.gmra.mrb[36].mxu1 %v3394_v53  ;;  %v5735_v7 = vadd.f32 %v5562_v5, %v6169_v8 }
 0x23a   : > { %v3870_v40 = vpop.eup %3869  ;;  %v2165_v46 = vmul.f32 %v3868_v41, %v5601_v25  ;;  %3889 = vrcp.f32 %v1788_v0  ;;  %2626 = vmatprep.mubr.bf16.mxu1 %v3395_v55 }
 0x23b   : > { %v3872_v58 = vpop.eup %3871  ;;  %3891 = vrcp.f32 %v1789_v19  ;;  %v1790_v34 = vadd.f32 1.0, %v3870_v40 }
 0x23c   : > { %v3874_v12 = vpop.eup %3873  ;;  %v1791_v39 = vadd.f32 1.0, %v3872_v58  ;;  %3893 = vpow2.f32 %v3109_v27  ;;  %v2289_v25 = vpack.c.bf16 %v2165_v46, %v2163_v32  ;;  %v3400_v32 = vld [vmem:[#allocation5 + $0x60] ss:$16 sps:$4 sm:$0xff]   ;;  %v3118_v58 = vmul.f32 -1.442695, %v5735_v7 }
 0x23d   : > { %v3876_v42 = vpop.eup %3875  ;;  %3895 = vrcp.f32 %v1790_v34  ;;  %v1792_v57 = vadd.f32 1.0, %v3874_v12  ;;  %v3401_v34 = vld [vmem:[#allocation5 + $0x84] ss:$16 sps:$4 sm:$0xff]  }
 0x23e   : > { %v3878_v48 = vpop.eup %3877  ;;  %3897 = vrcp.f32 %v1791_v39  ;;  %v1793_v54 = vadd.f32 1.0, %v3876_v42  ;;  %2689 = vmatprep.subr.bf16.mxu1 %v2289_v25 }
 0x23f   : > { %v3880_v33 = vpop.eup %3879  ;;  %3899 = vrcp.f32 %v1792_v57  ;;  %2690 = vmatpush1.bf16.msra.mxu1 %v2288_v9  ;;  %v2166_v53 = vmul.f32 %v3878_v48, %v5606_v21  ;;  %v3115_v9 = vmul.f32 -1.442695, %v5714_v3  ;;  %v3116_v21 = vmul.f32 -1.442695, %v5720_v23 }
 0x240   : > { %v3882_v26 = vpop.eup %3881  ;;  %3901 = vrcp.f32 %v1793_v54  ;;  %v2167_v55 = vmul.f32 %v3880_v33, %v5610_v52 }
 0x241   : > { %v3884_v60 = vpop.eup %3883  ;;  %v2168_v36 = vmul.f32 %v3882_v26, %v5616_v13  ;;  %3903 = vpow2.f32 %v3110_v62  ;;  %2627 = vmatmul.mubr.bf16.gmra.mrb[40].mxu1 %v3397_v45  ;;  %v6170_v13 = vld [vmem:[#allocation45_spill] sm:$0xff]  ;;  %v3404_v26 = vld [vmem:[#allocation5 + $0xa4] ss:$16 sps:$4 sm:$0xff]  }
 0x242   : > { %v3886_v17 = vpop.eup %3885  ;;  %v2169_v2 = vmul.f32 %v3884_v60, %v5620_v51  ;;  %3905 = vpow2.f32 %v3111_v28  ;;  %2636 = vmatprep.mubr.bf16.mxu1 %v3398_v29  ;;  %v5740_v0 = vadd.f32 %v5566_v61, %v6170_v13  ;;  %v3117_v51 = vmul.f32 -1.442695, %v5726_v16 }
 0x243   : > { %v3888_v22 = vpop.eup %3887  ;;  %v2290_v11 = vpack.c.bf16 %v2168_v36, %v2166_v53  ;;  %3907 = vpow2.f32 %v3112_v30  ;;  %v5745_v41 = vadd.f32 %v5573_v31, %v6170_v13  ;;  %v2170_v19 = vmul.f32 %v3886_v17, %v5624_v24  ;;  %v3403_v30 = vld [vmem:[#allocation5 + $0x80] ss:$16 sps:$4 sm:$0xff]   ;;  %v3407_v13 = vld [vmem:[#allocation5 + $0xc4] ss:$16 sps:$4 sm:$0xff]  }
 0x244   : > { %v3890_v27 = vpop.eup %3889  ;;  %3909 = vpow2.f32 %v3113_v37  ;;  %v2291_v52 = vpack.c.bf16 %v2169_v2, %v2167_v55  ;;  %v2171_v61 = vmul.f32 %v3888_v22, %v5628_v14  ;;  %v3119_v24 = vmul.f32 -1.442695, %v5740_v0  ;;  %v3406_v22 = vld [vmem:[#allocation5 + $0xa0] ss:$16 sps:$4 sm:$0xff]  }
 0x245   : > { %v3892_v5 = vpop.eup %3891  ;;  %v2172_v40 = vmul.f32 %v3890_v27, %v5633_v18  ;;  %3911 = vpow2.f32 %v3114_v20  ;;  %v3120_v18 = vmul.f32 -1.442695, %v5745_v41 }
 0x246   : > { %v3894_v46 = vpop.eup %3893  ;;  %v2173_v59 = vmul.f32 %v3892_v5, %v5644_v35  ;;  %3913 = vpow2.f32 %v3115_v9  ;;  %2691 = vmatprep.subr.bf16.mxu1 %v2291_v52 }
 0x247   : > { %v3896_v44 = vpop.eup %3895  ;;  %v2292_v31 = vpack.c.bf16 %v2172_v40, %v2170_v19  ;;  %3915 = vpow2.f32 %v3116_v21  ;;  %2692 = vmatpush1.bf16.msra.mxu1 %v2290_v11  ;;  %v1794_v14 = vadd.f32 1.0, %v3894_v46 }
 0x248   : > { %v3898_v12 = vpop.eup %3897  ;;  %3917 = vpow2.f32 %v3117_v51  ;;  %v2293_v39 = vpack.c.bf16 %v2173_v59, %v2171_v61  ;;  %v2174_v42 = vmul.f32 %v3896_v44, %v5649_v43 }
 0x249   : > { %v3900_v25 = vpop.eup %3899  ;;  %2637 = vmatmul.mubr.bf16.gmra.mrb[44].mxu1 %v3400_v32  ;;  %3919 = vpow2.f32 %v3118_v58  ;;  %v2175_v50 = vmul.f32 %v3898_v12, %v5655_v63 }
 0x24a   : > { %v3902_v35 = vpop.eup %3901  ;;  %v2176_v57 = vmul.f32 %v3900_v25, %v5661_v49  ;;  %2693 = vmatprep.subr.bf16.mxu1 %v2293_v39  ;;  %2646 = vmatprep.mubr.bf16.mxu1 %v3401_v34  ;;  %3921 = vpow2.f32 %v3119_v24  ;;  %v3409_v24 = vld [vmem:[#allocation5 + $0xc0] ss:$16 sps:$4 sm:$0xff]   ;;  %v3410_v25 = vld [vmem:[#allocation5 + $0xe4] ss:$16 sps:$4 sm:$0xff]  }
 0x24b   : > { %v3904_v62 = vpop.eup %3903  ;;  %v2177_v45 = vmul.f32 %v3902_v35, %v5666_v1  ;;  %2694 = vmatpush1.bf16.msra.mxu1 %v2292_v31  ;;  %3923 = vpow2.f32 %v3120_v18 }
 0x24c   : > { %v3906_v48 = vpop.eup %3905  ;;  %v2294_v54 = vpack.c.bf16 %v2176_v57, %v2174_v42  ;;  %v1795_v28 = vadd.f32 1.0, %v3904_v62  ;;  %3925 = vrcp.f32 %v1794_v14 }
 0x24d   : > { %v3908_v29 = vpop.eup %3907  ;;  %v1796_v33 = vadd.f32 1.0, %v3906_v48  ;;  %v2295_v43 = vpack.c.bf16 %v2177_v45, %v2175_v50  ;;  %v3412_v45 = vld [vmem:[#allocation5 + $0xe0] ss:$16 sps:$4 sm:$0xff]   ;;  %v3415_v48 = vld [vmem:[#allocation5 + $0xc] ss:$16 sps:$4 sm:$0xff]  }
 0x24e   : > { %v3910_v49 = vpop.eup %3909  ;;  %3927 = vrcp.f32 %v1795_v28  ;;  %v1797_v6 = vadd.f32 1.0, %v3908_v29  ;;  %v6172_v28 = vld [vmem:[#allocation57_spill] sm:$0xff] }
 0x24f   : > { %v3912_v37 = vpop.eup %3911  ;;  %3929 = vrcp.f32 %v1796_v33  ;;  %v1798_v63 = vadd.f32 1.0, %v3910_v49  ;;  %2695 = vmatprep.subr.bf16.mxu1 %v2295_v43  ;;  %v6178_v43 = vld [vmem:[#allocation60_spill] sm:$0xff]  ;;  %v6181_v49 = vld [vmem:[#allocation59_spill] sm:$0xff] }
 0x250   : > { %v3914_v1 = vpop.eup %3913  ;;  %3931 = vrcp.f32 %v1797_v6  ;;  %v1799_v20 = vadd.f32 1.0, %v3912_v37  ;;  %2696 = vmatpush1.bf16.msra.mxu1 %v2294_v54  ;;  %v6171_v54 = vld [vmem:[#allocation58_spill] sm:$0xff] }
 0x251   : > { %v3916_v8 = vpop.eup %3915  ;;  %3933 = vrcp.f32 %v1798_v63  ;;  %v1800_v60 = vadd.f32 1.0, %v3914_v1  ;;  %2647 = vmatmul.mubr.bf16.gmra.mrb[48].mxu1 %v3403_v30  ;;  %v6173_v29 = vpack.c.bf16 %v6171_v54, %v6172_v28  ;;  %v6180_v30 = vld [vmem:[#allocation61_spill] sm:$0xff]  ;;  %v6184_v37 = vld [vmem:[#allocation62_spill] sm:$0xff]  ;;  %v6186_v1 = vld [vmem:[#allocation63_spill] sm:$0xff] }
 0x252   : > { %v3918_v53 = vpop.eup %3917  ;;  %3935 = vrcp.f32 %v1799_v20  ;;  %v1801_v36 = vadd.f32 1.0, %v3916_v8  ;;  %2656 = vmatprep.mubr.bf16.mxu1 %v3404_v26  ;;  %v6182_v6 = vpack.c.bf16 %v6180_v30, %v6181_v49  ;;  %v6183_v26 = vld [vmem:[#allocation64_spill] sm:$0xff]  ;;  %v3950_v49 = vld [vmem:[%s4304_s16 + $0x8] sm:$0xff] }
 0x253   : > { %3937 = vrcp.f32 %v1800_v60  ;;  %v1802_v9 = vadd.f32 1.0, %v3918_v53  ;;  %v3920_v17 = vpop.eup %3919  ;;  %v6185_v63 = vpack.c.bf16 %v6183_v26, %v6184_v37  ;;  %v6187_v20 = vld [vmem:[#allocation12_spill] sm:$0xff]  ;;  %v6189_v60 = vld [vmem:[#allocation69_spill] sm:$0xff]  ;;  %v3951_v37 = vld [vmem:[%s4304_s16 + $0x10] sm:$0xff] }
 0x254   : > { %3939 = vrcp.f32 %v1801_v36  ;;  %v3922_v55 = vpop.eup %3921  ;;  %v1803_v2 = vadd.f32 1.0, %v3920_v17  ;;  %v6188_v8 = vpack.c.bf16 %v6186_v1, %v6187_v20  ;;  %v6190_v53 = vld [vmem:[#allocation48_spill] sm:$0xff]  ;;  %v6193_v17 = vld [vmem:[#allocation13_spill] sm:$0xff]  ;;  %v3952_v1 = vld [vmem:[%s4304_s16 + $0x18] sm:$0xff] }
 0x255   : > { %v3924_v11 = vpop.eup %3923  ;;  %3941 = vrcp.f32 %v1802_v9  ;;  %v1804_v21 = vadd.f32 1.0, %v3922_v55  ;;  %v6191_v36 = vpack.c.bf16 %v6189_v60, %v6190_v53  ;;  %v6192_v9 = vld [vmem:[#allocation49_spill] sm:$0xff] }
 0x256   : > { %v3926_v27 = vpop.eup %3925  ;;  %3943 = vrcp.f32 %v1803_v2  ;;  %v1805_v52 = vadd.f32 1.0, %v3924_v11  ;;  %v6194_v55 = vpack.c.bf16 %v6192_v9, %v6193_v17  ;;  %v6195_v2 = vld [vmem:[#allocation70_spill] sm:$0xff] }
 0x257   : > { %3945 = vrcp.f32 %v1804_v21  ;;  %v2178_v40 = vmul.f32 %v3926_v27, %v5686_v47  ;;  %v6198_v21 = vld [vmem:[#allocation53_spill] sm:$0xff] }
 0x258   : > { %v3928_v51 = vpop.eup %3927  ;;  %3947 = vrcp.f32 %v1805_v52  ;;  %v6201_v52 = vld [vmem:[#allocation16_spill] sm:$0xff] }
 0x259   : > { %v3930_v5 = vpop.eup %3929  ;;  %2657 = vmatmul.mubr.bf16.gmra.mrb[52].mxu1 %v3406_v22  ;;  %v2179_v61 = vmul.f32 %v3928_v51, %v5691_v10  ;;  %v6196_v22 = vld [vmem:[#allocation14_spill] sm:$0xff]  ;;  %v6202_v51 = vld [vmem:[#allocation15_spill] sm:$0xff] }
 0x25a   : > { %v3932_v19 = vpop.eup %3931  ;;  %v2180_v32 = vmul.f32 %v3930_v5, %v5697_v38  ;;  %2666 = vmatprep.mubr.bf16.mxu1 %v3407_v13  ;;  %v6197_v11 = vpack.c.bf16 %v6195_v2, %v6196_v22  ;;  %v6199_v13 = vld [vmem:[#allocation52_spill] sm:$0xff]  ;;  %v6203_v5 = vpack.c.bf16 %v6201_v52, %v6202_v51  ;;  %v3955_v51 = vld [vmem:[%s4304_s16 + $0x30] sm:$0xff] }
 0x25b   : > { %v3934_v46 = vpop.eup %3933  ;;  %v2181_v59 = vmul.f32 %v3932_v19, %v5701_v4  ;;  %v6200_v27 = vpack.c.bf16 %v6198_v21, %v6199_v13  ;;  %v6204_v19 = vld [vmem:[#allocation56_spill] sm:$0xff]  ;;  %v3954_v13 = vld [vmem:[%s4304_s16 + $0x28] sm:$0xff] }
 0x25c   : > { %v3936_v58 = vpop.eup %3935  ;;  %v2296_v34 = vpack.c.bf16 %v2180_v32, %v2178_v40  ;;  %v2182_v18 = vmul.f32 %v3934_v46, %v5705_v56  ;;  %v6205_v40 = vld [vmem:[#allocation71_spill] sm:$0xff]  ;;  %v6207_v46 = vld [vmem:[#allocation20_spill] sm:$0xff] }
 0x25d   : > { %v3938_v44 = vpop.eup %3937  ;;  %v2297_v31 = vpack.c.bf16 %v2181_v59, %v2179_v61  ;;  %v2183_v47 = vmul.f32 %v3936_v58, %v5709_v15  ;;  %v6206_v32 = vpack.c.bf16 %v6204_v19, %v6205_v40  ;;  %v6208_v61 = vld [vmem:[#allocation18_spill] sm:$0xff]  ;;  %v6210_v58 = vld [vmem:[#allocation19_spill] sm:$0xff]  ;;  %v3953_v2 = vld [vmem:[%s4304_s16 + $0x20] sm:$0xff] }
 0x25e   : > { %v3940_v12 = vpop.eup %3939  ;;  %v2184_v39 = vmul.f32 %v3938_v44, %v5714_v3  ;;  %v6209_v59 = vpack.c.bf16 %v6207_v46, %v6208_v61  ;;  %v3956_v19 = vld [vmem:[%s4304_s16 + $0x38] sm:$0xff] }
 0x25f   : > { %v2185_v38 = vmul.f32 %v3940_v12, %v5720_v23  ;;  %2697 = vmatprep.subr.bf16.mxu1 %v2297_v31  ;;  %v3942_v14 = vpop.eup %3941  ;;  %v6213_v31 = vld [vmem:[#allocation67_spill] sm:$0xff] }
 0x260   : > { %v2298_v10 = vpack.c.bf16 %v2184_v39, %v2182_v18  ;;  %2698 = vmatpush1.bf16.msra.mxu1 %v2296_v34  ;;  %v3944_v4 = vpop.eup %3943  ;;  %v2186_v62 = vmul.f32 %v3942_v14, %v5726_v16  ;;  %v6174_v16 = vld [vmem:[#allocation54_spill] sm:$0xff]  ;;  %v6211_v34 = vld [vmem:[#allocation17_spill] sm:$0xff] }
 0x261   : > { %v2299_v35 = vpack.c.bf16 %v2185_v38, %v2183_v47  ;;  %2667 = vmatmul.mubr.bf16.gmra.mrb[56].mxu1 %v3409_v24  ;;  %v3946_v42 = vpop.eup %3945  ;;  %v2187_v3 = vmul.f32 %v3944_v4, %v5735_v7  ;;  %v6177_v7 = vld [vmem:[#allocation46_spill] sm:$0xff]  ;;  %v6212_v44 = vpack.c.bf16 %v6210_v58, %v6211_v34  ;;  %v3413_v18 = vld [vmem:[#allocation5 + $0x8] ss:$16 sps:$4 sm:$0xff]   ;;  %v3416_v38 = vld [vmem:[#allocation5 + $0x2c] ss:$16 sps:$4 sm:$0xff]  }
 0x262   : > { %2676 = vmatprep.mubr.bf16.mxu1 %v3410_v25  ;;  %v3948_v57 = vpop.eup %3947  ;;  %v2188_v56 = vmul.f32 %v3946_v42, %v5740_v0  ;;  %v6175_v0 = vld [vmem:[#allocation51_spill] sm:$0xff]  ;;  %v6214_v24 = vld [vmem:[#allocation66_spill] sm:$0xff]  ;;  %v6216_v39 = vld [vmem:[#allocation73_spill] sm:$0xff] }
 0x263   : > { %2699 = vmatprep.subr.bf16.mxu1 %v2299_v35  ;;  %v2189_v15 = vmul.f32 %v3948_v57, %v5745_v41  ;;  %v6176_v33 = vpack.c.bf16 %v6174_v16, %v6175_v0  ;;  %v6179_v41 = vpack.c.bf16 %v6177_v7, %v6178_v43  ;;  %v6215_v12 = vpack.c.bf16 %v6213_v31, %v6214_v24  ;;  %v6217_v25 = vld [vmem:[#allocation72_spill] sm:$0xff]  ;;  %v3418_v14 = vld [vmem:[#allocation5 + $0x28] ss:$16 sps:$4 sm:$0xff]   ;;  %v3422_v35 = vld [vmem:[#allocation5 + $0x6c] ss:$16 sps:$4 sm:$0xff]   ;;  %v2342_v16 = vpop.permute.xlu1 %2341 }
 0x264   : > { %2700 = vmatpush1.bf16.msra.mxu1 %v2298_v10  ;;  %v2300_v23 = vpack.c.bf16 %v2188_v56, %v2186_v62  ;;  %v6218_v47 = vpack.c.bf16 %v6216_v39, %v6217_v25  ;;  %v3419_v10 = vld [vmem:[#allocation5 + $0x4c] ss:$16 sps:$4 sm:$0xff]   ;;  %v3421_v4 = vld [vmem:[#allocation5 + $0x48] ss:$16 sps:$4 sm:$0xff]   ;;  %v3949_v7 = vld [vmem:[%s4304_s16] sm:$0xff] }
 0x265   : > { %v2301_v50 = vpack.c.bf16 %v2189_v15, %v2187_v3  ;;  %v3424_v42 = vld [vmem:[#allocation5 + $0x68] ss:$16 sps:$4 sm:$0xff]   ;;  %v3425_v57 = vld [vmem:[#allocation5 + $0x8c] ss:$16 sps:$4 sm:$0xff]   ;;  %v3957_v31 = vld [vmem:[%s4304_s16 + $0x40] sm:$0xff] }
 0x266   : > { %v3427_v62 = vld [vmem:[#allocation5 + $0x88] ss:$16 sps:$4 sm:$0xff]   ;;  %v3428_v56 = vld [vmem:[#allocation5 + $0xac] ss:$16 sps:$4 sm:$0xff]  }
 0x267   : > { %2701 = vmatprep.subr.bf16.mxu1 %v2301_v50  ;;  %v3430_v3 = vld [vmem:[#allocation5 + $0xa8] ss:$16 sps:$4 sm:$0xff]   ;;  %v3431_v15 = vld [vmem:[#allocation5 + $0xcc] ss:$16 sps:$4 sm:$0xff]   ;;  %v2352_v9 = vpop.permute.xlu1 %2351 }
 0x268   : > { %2702 = vmatpush1.bf16.msra.mxu1 %v2300_v23  ;;  %v3433_v23 = vld [vmem:[#allocation5 + $0xc8] ss:$16 sps:$4 sm:$0xff]   ;;  %v3434_v50 = vld [vmem:[#allocation5 + $0xec] ss:$16 sps:$4 sm:$0xff]  }
 0x269   : > { %2703 = vmatprep.subr.bf16.mxu1 %v6173_v29  ;;  %2677 = vmatmul.mubr.bf16.gmra.mrb[60].mxu1 %v3412_v45  ;;  %v3436_v45 = vld [vmem:[#allocation5 + $0xe8] ss:$16 sps:$4 sm:$0xff]  }
 0x26a   : > { %2719 = vmatprep.mubr.bf16.mxu1 %v3415_v48  ;;  %v2337_v48 = vpop.permute.xlu0 %2336  ;;  %v3958_v39 = vld [vmem:[%s4304_s16 + $0x48] sm:$0xff] }
 0x26b   : > { %v2362_v58 = vpop.permute.xlu1 %2361 }
 0x26c   : > { %2704 = vmatpush1.bf16.msra.mxu1 %v6176_v33 }
 0x26d   : > { %2705 = vmatprep.subr.bf16.mxu1 %v6179_v41 }
 0x270   : > { %2706 = vmatpush1.bf16.msra.mxu1 %v6182_v6 }
 0x271   : > { %2707 = vmatprep.subr.bf16.mxu1 %v6185_v63 }
 0x274   : > { %2708 = vmatpush1.bf16.msra.mxu1 %v6188_v8  ;;  %v2347_v8 = vpop.permute.xlu0 %2346 }
 0x275   : > { %2709 = vmatprep.subr.bf16.mxu1 %v6191_v36 }
 0x278   : > { %2710 = vmatpush1.bf16.msra.mxu1 %v6194_v55 }
 0x279   : > { %2711 = vmatprep.subr.bf16.mxu1 %v6197_v11 }
 0x27c   : > { %2712 = vmatpush1.bf16.msra.mxu1 %v6200_v27 }
 0x27d   : > { %2713 = vmatprep.subr.bf16.mxu1 %v6203_v5 }
 0x280   : > { %2714 = vmatpush1.bf16.msra.mxu1 %v6206_v32  ;;  %v2357_v32 = vpop.permute.xlu0 %2356 }
 0x281   : > { %2715 = vmatprep.subr.bf16.mxu1 %v6209_v59 }
 0x284   : > { %2716 = vmatpush1.bf16.msra.mxu1 %v6212_v44 }
 0x285   : > { %2717 = vmatprep.subr.bf16.mxu1 %v6215_v12 }
 0x288   : > { %2718 = vmatpush1.bf16.msra.mxu1 %v6218_v47 }
 0x28b   : > { %2720 = vmatmul.mubr.bf16.vlgmr.msra.gmra.mrb[32].mxu1 %v3413_v18 }
 0x28c   : > { %2729 = vmatprep.mubr.bf16.mxu1 %v3416_v38  ;;  %v3959_v38 = vld [vmem:[%s4304_s16 + $0x50] sm:$0xff] }
 0x293   : > { %2730 = vmatmul.mubr.bf16.gmra.mrb[36].mxu1 %v3418_v14 }
 0x294   : > { %2739 = vmatprep.mubr.bf16.mxu1 %v3419_v10  ;;  %v3960_v10 = vld [vmem:[%s4304_s16 + $0x58] sm:$0xff] }
 0x29b   : > { %2740 = vmatmul.mubr.bf16.gmra.mrb[40].mxu1 %v3421_v4 }
 0x29c   : > { %2749 = vmatprep.mubr.bf16.mxu1 %v3422_v35  ;;  %v2367_v35 = vpop.permute.xlu0 %2366 }
 0x2a3   : > { %2750 = vmatmul.mubr.bf16.gmra.mrb[44].mxu1 %v3424_v42 }
 0x2a4   : > { %2759 = vmatprep.mubr.bf16.mxu1 %v3425_v57 }
 0x2ab   : > { %2760 = vmatmul.mubr.bf16.gmra.mrb[48].mxu1 %v3427_v62 }
 0x2ac   : > { %2769 = vmatprep.mubr.bf16.mxu1 %v3428_v56  ;;  %v2372_v56 = vpop.permute.xlu1 %2371 }
 0x2b3   : > { %2770 = vmatmul.mubr.bf16.gmra.mrb[52].mxu1 %v3430_v3 }
 0x2b4   : > { %2779 = vmatprep.mubr.bf16.mxu1 %v3431_v15 }
 0x2bb   : > { %2780 = vmatmul.mubr.bf16.gmra.mrb[56].mxu1 %v3433_v23  ;;  %v3961_v23 = vld [vmem:[%s4304_s16 + $0x60] sm:$0xff] }
 0x2bc   : > { %2789 = vmatprep.mubr.bf16.mxu1 %v3434_v50 }
 0x2c3   : > { %2790 = vmatmul.mubr.bf16.gmra.mrb[60].mxu1 %v3436_v45 }
 0x35e   : > { %v2721_v54 = vpop.f32.mrb[32].mxu1 }
 0x35f   : > { %v3208_v28 = vadd.f32 %v2721_v54, %v2337_v48  ;;  %v2723_v29 = vpop.f32.mrb[33].mxu1  ;;  %v3962_v54 = vld [vmem:[%s4304_s16 + $0x68] sm:$0xff] }
 0x360   : > { %v3209_v0 = vadd.f32 %v2723_v29, %v2337_v48  ;;  %v2725_v33 = vpop.f32.mrb[34].mxu1 }
 0x361   : > { %v2800_v43 = vadd.f32 %v3949_v7, %v3208_v28  ;;  %v3210_v41 = vadd.f32 %v2725_v33, %v2342_v16  ;;  %v2727_v30 = vpop.f32.mrb[35].mxu1  ;;  %v3964_v33 = vld [vmem:[%s4304_s16 + $0x78] sm:$0xff] }
 0x362   : > { %v2801_v6 = vadd.f32 %v3950_v49, %v3209_v0  ;;  %v3211_v26 = vadd.f32 %v2727_v30, %v2342_v16  ;;  %v3963_v16 = vld [vmem:[%s4304_s16 + $0x70] sm:$0xff] }
 0x363   : > { %2832 = vst [vmem:[%s5823_s11] sm:$0xff] %v2800_v43  ;;  %v2802_v63 = vadd.f32 %v3951_v37, %v3210_v41  ;;  %v2377_v43 = vpop.permute.xlu0 %2376 }
 0x364   : > { %2833 = vst [vmem:[%s5823_s11 + $0x8] sm:$0xff] %v2801_v6  ;;  %v2803_v20 = vadd.f32 %v3952_v1, %v3211_v26  ;;  %v2382_v6 = vpop.permute.xlu1 %2381 }
 0x365   : > { %2834 = vst [vmem:[%s5823_s11 + $0x10] sm:$0xff] %v2802_v63  ;;  %v3965_v63 = vld [vmem:[%s4304_s16 + $0x80] sm:$0xff] }
 0x366   : > { %2835 = vst [vmem:[%s5823_s11 + $0x18] sm:$0xff] %v2803_v20  ;;  %v2731_v60 = vpop.f32.mrb[36].mxu1 }
 0x367   : > { %v3212_v53 = vadd.f32 %v2731_v60, %v2347_v8  ;;  %v2733_v36 = vpop.f32.mrb[37].mxu1  ;;  %v3966_v60 = vld [vmem:[%s4304_s16 + $0x88] sm:$0xff] }
 0x368   : > { %v3213_v17 = vadd.f32 %v2733_v36, %v2347_v8  ;;  %v2735_v55 = vpop.f32.mrb[38].mxu1 }
 0x369   : > { %v2804_v22 = vadd.f32 %v3953_v2, %v3212_v53  ;;  %v3214_v11 = vadd.f32 %v2735_v55, %v2352_v9  ;;  %v2737_v21 = vpop.f32.mrb[39].mxu1  ;;  %v3968_v55 = vld [vmem:[%s4304_s16 + $0x98] sm:$0xff] }
 0x36a   : > { %v2805_v27 = vadd.f32 %v3954_v13, %v3213_v17  ;;  %v3215_v52 = vadd.f32 %v2737_v21, %v2352_v9  ;;  %v3967_v9 = vld [vmem:[%s4304_s16 + $0x90] sm:$0xff] }
 0x36b   : > { %2836 = vst [vmem:[%s5823_s11 + $0x20] sm:$0xff] %v2804_v22  ;;  %v2806_v5 = vadd.f32 %v3955_v51, %v3214_v11  ;;  %v2387_v22 = vpop.permute.xlu0 %2386 }
 0x36c   : > { %2837 = vst [vmem:[%s5823_s11 + $0x28] sm:$0xff] %v2805_v27  ;;  %v2807_v40 = vadd.f32 %v3956_v19, %v3215_v52  ;;  %v2392_v27 = vpop.permute.xlu1 %2391 }
 0x36d   : > { %2838 = vst [vmem:[%s5823_s11 + $0x30] sm:$0xff] %v2806_v5  ;;  %v3969_v5 = vld [vmem:[%s4304_s16 + $0xa0] sm:$0xff] }
 0x36e   : > { %2839 = vst [vmem:[%s5823_s11 + $0x38] sm:$0xff] %v2807_v40  ;;  %v2741_v46 = vpop.f32.mrb[40].mxu1 }
 0x36f   : > { %v3216_v61 = vadd.f32 %v2741_v46, %v2357_v32  ;;  %v2743_v59 = vpop.f32.mrb[41].mxu1  ;;  %v3970_v46 = vld [vmem:[%s4304_s16 + $0xa8] sm:$0xff] }
 0x370   : > { %v3217_v34 = vadd.f32 %v2743_v59, %v2357_v32  ;;  %v2745_v44 = vpop.f32.mrb[42].mxu1 }
 0x371   : > { %v2808_v24 = vadd.f32 %v3957_v31, %v3216_v61  ;;  %v3218_v12 = vadd.f32 %v2745_v44, %v2362_v58  ;;  %v2747_v18 = vpop.f32.mrb[43].mxu1  ;;  %v3972_v44 = vld [vmem:[%s4304_s16 + $0xb8] sm:$0xff] }
 0x372   : > { %v2809_v25 = vadd.f32 %v3958_v39, %v3217_v34  ;;  %v3219_v47 = vadd.f32 %v2747_v18, %v2362_v58  ;;  %v3971_v58 = vld [vmem:[%s4304_s16 + $0xb0] sm:$0xff] }
 0x373   : > { %2840 = vst [vmem:[%s5823_s11 + $0x40] sm:$0xff] %v2808_v24  ;;  %v2810_v14 = vadd.f32 %v3959_v38, %v3218_v12  ;;  %v2397_v24 = vpop.permute.xlu0 %2396 }
 0x374   : > { %2841 = vst [vmem:[%s5823_s11 + $0x48] sm:$0xff] %v2809_v25  ;;  %v2811_v4 = vadd.f32 %v3960_v10, %v3219_v47  ;;  %v2402_v25 = vpop.permute.xlu1 %2401 }
 0x375   : > { %2842 = vst [vmem:[%s5823_s11 + $0x50] sm:$0xff] %v2810_v14  ;;  %v3973_v14 = vld [vmem:[%s4304_s16 + $0xc0] sm:$0xff] }
 0x376   : > { %2843 = vst [vmem:[%s5823_s11 + $0x58] sm:$0xff] %v2811_v4  ;;  %v2751_v42 = vpop.f32.mrb[44].mxu1 }
 0x377   : > { %v3220_v57 = vadd.f32 %v2751_v42, %v2367_v35  ;;  %v2753_v62 = vpop.f32.mrb[45].mxu1  ;;  %v3974_v42 = vld [vmem:[%s4304_s16 + $0xc8] sm:$0xff] }
 0x378   : > { %v3221_v3 = vadd.f32 %v2753_v62, %v2367_v35  ;;  %v2755_v15 = vpop.f32.mrb[46].mxu1 }
 0x379   : > { %v2812_v50 = vadd.f32 %v3961_v23, %v3220_v57  ;;  %v3222_v45 = vadd.f32 %v2755_v15, %v2372_v56  ;;  %v2757_v48 = vpop.f32.mrb[47].mxu1  ;;  %v3976_v15 = vld [vmem:[%s4304_s16 + $0xd8] sm:$0xff] }
 0x37a   : > { %v2813_v28 = vadd.f32 %v3962_v54, %v3221_v3  ;;  %v3223_v29 = vadd.f32 %v2757_v48, %v2372_v56  ;;  %v3975_v56 = vld [vmem:[%s4304_s16 + $0xd0] sm:$0xff] }
 0x37b   : > { %2844 = vst [vmem:[%s5823_s11 + $0x60] sm:$0xff] %v2812_v50  ;;  %v2814_v0 = vadd.f32 %v3963_v16, %v3222_v45  ;;  %v2407_v50 = vpop.permute.xlu0 %2406 }
 0x37c   : > { %2845 = vst [vmem:[%s5823_s11 + $0x68] sm:$0xff] %v2813_v28  ;;  %v2815_v7 = vadd.f32 %v3964_v33, %v3223_v29  ;;  %v2412_v28 = vpop.permute.xlu1 %2411 }
 0x37d   : > { %2846 = vst [vmem:[%s5823_s11 + $0x70] sm:$0xff] %v2814_v0  ;;  %v3977_v0 = vld [vmem:[%s4304_s16 + $0xe0] sm:$0xff] }
 0x37e   : > { %2847 = vst [vmem:[%s5823_s11 + $0x78] sm:$0xff] %v2815_v7  ;;  %v2761_v41 = vpop.f32.mrb[48].mxu1 }
 0x37f   : > { %v3224_v30 = vadd.f32 %v2761_v41, %v2377_v43  ;;  %v2763_v49 = vpop.f32.mrb[49].mxu1  ;;  %v3978_v41 = vld [vmem:[%s4304_s16 + $0xe8] sm:$0xff] }
 0x380   : > { %v3225_v26 = vadd.f32 %v2763_v49, %v2377_v43  ;;  %v2765_v37 = vpop.f32.mrb[50].mxu1 }
 0x381   : > { %v2816_v1 = vadd.f32 %v3965_v63, %v3224_v30  ;;  %v3226_v20 = vadd.f32 %v2765_v37, %v2382_v6  ;;  %v2767_v8 = vpop.f32.mrb[51].mxu1  ;;  %v3980_v37 = vld [vmem:[%s4304_s16 + $0xf8] sm:$0xff] }
 0x382   : > { %v2817_v53 = vadd.f32 %v3966_v60, %v3225_v26  ;;  %v3227_v36 = vadd.f32 %v2767_v8, %v2382_v6  ;;  %v3979_v6 = vld [vmem:[%s4304_s16 + $0xf0] sm:$0xff] }
 0x383   : > { %2848 = vst [vmem:[%s5823_s11 + $0x80] sm:$0xff] %v2816_v1  ;;  %v2818_v17 = vadd.f32 %v3967_v9, %v3226_v20 }
 0x384   : > { %2849 = vst [vmem:[%s5823_s11 + $0x88] sm:$0xff] %v2817_v53  ;;  %v2819_v2 = vadd.f32 %v3968_v55, %v3227_v36 }
 0x385   : > { %2850 = vst [vmem:[%s5823_s11 + $0x90] sm:$0xff] %v2818_v17 }
 0x386   : > { %2851 = vst [vmem:[%s5823_s11 + $0x98] sm:$0xff] %v2819_v2  ;;  %v2771_v11 = vpop.f32.mrb[52].mxu1 }
 0x387   : > { %v3228_v21 = vadd.f32 %v2771_v11, %v2387_v22  ;;  %v2773_v13 = vpop.f32.mrb[53].mxu1 }
 0x388   : > { %v3229_v52 = vadd.f32 %v2773_v13, %v2387_v22  ;;  %v2775_v51 = vpop.f32.mrb[54].mxu1 }
 0x389   : > { %v2820_v19 = vadd.f32 %v3969_v5, %v3228_v21  ;;  %v3230_v40 = vadd.f32 %v2775_v51, %v2392_v27  ;;  %v2777_v32 = vpop.f32.mrb[55].mxu1 }
 0x38a   : > { %v2821_v61 = vadd.f32 %v3970_v46, %v3229_v52  ;;  %v3231_v59 = vadd.f32 %v2777_v32, %v2392_v27 }
 0x38b   : > { %2852 = vst [vmem:[%s5823_s11 + $0xa0] sm:$0xff] %v2820_v19  ;;  %v2822_v34 = vadd.f32 %v3971_v58, %v3230_v40 }
 0x38c   : > { %2853 = vst [vmem:[%s5823_s11 + $0xa8] sm:$0xff] %v2821_v61  ;;  %v2823_v31 = vadd.f32 %v3972_v44, %v3231_v59 }
 0x38d   : > { %2854 = vst [vmem:[%s5823_s11 + $0xb0] sm:$0xff] %v2822_v34 }
 0x38e   : > { %2855 = vst [vmem:[%s5823_s11 + $0xb8] sm:$0xff] %v2823_v31  ;;  %v2781_v12 = vpop.f32.mrb[56].mxu1 }
 0x38f   : > { %v3232_v18 = vadd.f32 %v2781_v12, %v2397_v24  ;;  %v2783_v39 = vpop.f32.mrb[57].mxu1 }
 0x390   : > { %v3233_v47 = vadd.f32 %v2783_v39, %v2397_v24  ;;  %v2785_v38 = vpop.f32.mrb[58].mxu1 }
 0x391   : > { %v2824_v10 = vadd.f32 %v3973_v14, %v3232_v18  ;;  %v3234_v4 = vadd.f32 %v2785_v38, %v2402_v25  ;;  %v2787_v35 = vpop.f32.mrb[59].mxu1 }
 0x392   : > { %v2825_v57 = vadd.f32 %v3974_v42, %v3233_v47  ;;  %v3235_v62 = vadd.f32 %v2787_v35, %v2402_v25 }
 0x393   : > { %2856 = vst [vmem:[%s5823_s11 + $0xc0] sm:$0xff] %v2824_v10  ;;  %v2826_v3 = vadd.f32 %v3975_v56, %v3234_v4 }
 0x394   : > { %2857 = vst [vmem:[%s5823_s11 + $0xc8] sm:$0xff] %v2825_v57  ;;  %v2827_v23 = vadd.f32 %v3976_v15, %v3235_v62 }
 0x395   : > { %2858 = vst [vmem:[%s5823_s11 + $0xd0] sm:$0xff] %v2826_v3 }
 0x396   : > { %2859 = vst [vmem:[%s5823_s11 + $0xd8] sm:$0xff] %v2827_v23  ;;  %v2791_v45 = vpop.f32.mrb[60].mxu1 }
 0x397   : > { %v3236_v48 = vadd.f32 %v2791_v45, %v2407_v50  ;;  %v2793_v54 = vpop.f32.mrb[61].mxu1 }
 0x398   : > { %v3237_v29 = vadd.f32 %v2793_v54, %v2407_v50  ;;  %v2795_v16 = vpop.f32.mrb[62].mxu1 }
 0x399   : > { %v2828_v33 = vadd.f32 %v3977_v0, %v3236_v48  ;;  %v3238_v7 = vadd.f32 %v2795_v16, %v2412_v28  ;;  %v2797_v43 = vpop.f32.mrb[63].mxu1 }
 0x39a   : > { %v2829_v30 = vadd.f32 %v3978_v41, %v3237_v29  ;;  %v3239_v49 = vadd.f32 %v2797_v43, %v2412_v28 }
 0x39b   : > { %2860 = vst [vmem:[%s5823_s11 + $0xe0] sm:$0xff] %v2828_v33  ;;  %v2830_v26 = vadd.f32 %v3979_v6, %v3238_v7 }
 0x39c   : > { %2861 = vst [vmem:[%s5823_s11 + $0xe8] sm:$0xff] %v2829_v30  ;;  %v2831_v63 = vadd.f32 %v3980_v37, %v3239_v49 }
 0x39d   : > { %2862 = vst [vmem:[%s5823_s11 + $0xf0] sm:$0xff] %v2830_v26 }
 0x39e   : > { %2863 = vst [vmem:[%s5823_s11 + $0xf8] sm:$0xff] %v2831_v63 }
 0x39f   : > { %4050 = shalt.err (!%p4047_p6)
}
 0x3a0   : > { %s4051_s16 = scalar_lea.hbm %s5888_s24, 4096  ;;  %s4055_s12 = scalar_lea.hbm %s5949_s5, 8192 }
 0x3a1   : > { %p4052_p7 = scmp.ne.s32.totalorder %s5888_s24, %s4051_s16  ;;  %p4056_p0 = scmp.lt.u32.totalorder %s5888_s24, %s5949_s5 }
 0x3a2   : > { %p4057_p1 = scmp.lt.u32.totalorder %s4055_s12, %s4051_s16  ;;  %p4059_p13 = scmp.lt.u32.totalorder %s4051_s16, %s5888_s24 }
 0x3a3   : > { %p4053_p9 = pnand %p4052_p7, %p6219_p8 }
 0x3a4   : > { %p4058_p4 = por %p4057_p1, %p4056_p0 }
 0x3a5   : > { %p4054_p12 = pneg %p4053_p9 }
 0x3a6   : > { %p4060_p10 = por %p4059_p13, %p4058_p4 }
 0x3a8   : > { %p4061_p11 = pnand %p4060_p10, %p4054_p12 }
 0x3aa   : > { %4064 = shalt.err (!%p4061_p11)
}
 0x3ab   : > { %s4133_s11 = smov 256   ;;  %s4134_s13 = smov 16  }
 0x3ac   : > { %3280 = dma.vmem_to_hbm [thread:$0]  (%p6219_p8), %s5890_s15, 4096, %s5888_s24, %s5898_s21, %s4133_s11, %s4133_s11, %s4134_s13  }
 0x3ad PF: > { %p3297_p2 = scmp.ge.s32.totalorder %s4123_s23, 2  ;;  %s2895_s8 = sand.u32 1, %s4103_s18  }
 0x3ae   : > { %p6220_p3 = scmp.ne.s32.totalorder %s6023_s30, 0  ;;  %s2896_s17 = scalar_lea.sflag [#allocation4], %s2895_s8 }
 0x3b0   : > { %p3290_p5 = pnand %p3297_p2, %p6220_p3 }
 0x3b2   : > { %4098 = dma.done.wait (!%p3290_p5), %s2896_s17, 4096  }
 0x3b3   : > { %4100 = vsyncadd (!%p3290_p5), %s2896_s17, 4294963200  ;;  %s20_s23 = sadd.s32 1, %s4123_s23   ;;  %s6221_s28 = sld [smem:[#allocation11_spill]] }
 0x3b4   : > { %p17_p6 = scmp.ge.s32.totalorder %s20_s23, 4   ;;  %s6222_s18 = smov %s4107_s19 }
 0x3b5   : > { %s6223_s19 = smov %s4111_s20  ;;  %s6224_s20 = smov %s4218_s6 }
 0x3b6   : > { %s6225_s21 = smov %s4119_s22  ;;  %19 = sbr.rel (!%p17_p6) target bundleno = 6 (0x6), region = 84 }
 0x3b9   : > { %s6226_s22 = smov %s6221_s28 }
 0x3bd   :  { %2901 = vsyncpa [#allocation3], 1 }
 0x3be   :  { %2903 = vsyncpa [#allocation3 + $0x1], 1 }
 0x3bf   :  { %2904 = vsyncpa [#allocation6], 1 }
 0x3c0   :  { %2905 = vsyncpa [#allocation4], 1 }
 0x3c1   :  { %2907 = vsyncpa [#allocation4 + $0x1], 1 }

</bundles_post_ra>
